<compile_context>
chip_gen: v6e
topology: v6e:2x2x1
jax: 0.10.0
libtpu: 0.0.40
codegen_flags: <defaults>
</compile_context>

<pallas_src>
import functools

import jax
import jax.numpy as jnp
from jax.experimental import pallas as pl
from jax.experimental.pallas import tpu as pltpu


def _round_up(x, m):
    return ((x + m - 1) // m) * m


def _cdiv(a, b):
    return (a + b - 1) // b


def _bytes(*arrs):
    return int(sum(a.size * a.dtype.itemsize for a in arrs))


def _batch_tile_cap():
    """Per-generation batch-tile cap: 512 on v5e and older, 1024 on v6e/v7x."""
    try:
        kind = jax.devices()[0].device_kind.lower()
    except Exception:
        return 512
    if any(v in kind for v in ("v2", "v3", "v4", "v5")):
        return 512
    return 1024


# ----------------------------------------------------------------------------
# Kernels
# ----------------------------------------------------------------------------
def _logits_kernel(x_ref, w1_ref, b1_ref, w2_ref, b2_ref, w3_ref, b3_ref,
                   out_ref):
    # fc1 + ReLU (bf16 inputs, f32 accumulation)
    h1 = jnp.dot(x_ref[...], w1_ref[...], preferred_element_type=jnp.float32)
    h1 = jnp.maximum(h1 + b1_ref[...], 0.0)
    # fc2 + ReLU
    h2 = jnp.dot(h1.astype(w2_ref.dtype), w2_ref[...],
                 preferred_element_type=jnp.float32)
    h2 = jnp.maximum(h2 + b2_ref[...], 0.0)
    # fc3 (logits, no activation) -- hidden slab is NOT written back to HBM
    logits = jnp.dot(h2.astype(w3_ref.dtype), w3_ref[...],
                     preferred_element_type=jnp.float32)
    out_ref[...] = (logits + b3_ref[...]).astype(out_ref.dtype)


def _hidden_kernel(x_ref, w1_ref, b1_ref, w2_ref, b2_ref, hid_ref):
    # fc1 + ReLU
    h1 = jnp.dot(x_ref[...], w1_ref[...], preferred_element_type=jnp.float32)
    h1 = jnp.maximum(h1 + b1_ref[...], 0.0)
    # fc2 + ReLU ("last_layer") -- fc3 is skipped entirely on this path
    h2 = jnp.dot(h1.astype(w2_ref.dtype), w2_ref[...],
                 preferred_element_type=jnp.float32)
    hid_ref[...] = jnp.maximum(h2 + b2_ref[...], 0.0).astype(hid_ref.dtype)


def _both_kernel(x_ref, w1_ref, b1_ref, w2_ref, b2_ref, w3_ref, b3_ref,
                 out_ref, hid_ref):
    # Single pass producing both logits and hidden (no weight re-fetch).
    h1 = jnp.dot(x_ref[...], w1_ref[...], preferred_element_type=jnp.float32)
    h1 = jnp.maximum(h1 + b1_ref[...], 0.0)
    h2 = jnp.dot(h1.astype(w2_ref.dtype), w2_ref[...],
                 preferred_element_type=jnp.float32)
    h2 = jnp.maximum(h2 + b2_ref[...], 0.0)
    hid_ref[...] = h2.astype(hid_ref.dtype)
    logits = jnp.dot(h2.astype(w3_ref.dtype), w3_ref[...],
                     preferred_element_type=jnp.float32)
    out_ref[...] = (logits + b3_ref[...]).astype(out_ref.dtype)


# ----------------------------------------------------------------------------
# One-time parameter preparation (pad to (8,128)-friendly shapes, cast to bf16)
# ----------------------------------------------------------------------------
def prepare_params(params, weight_dtype=jnp.bfloat16):
    w1, b1 = params["w1"], params["b1"]
    w2, b2 = params["w2"], params["b2"]
    w3, b3 = params["w3"], params["b3"]
    input_dim, d1 = w1.shape
    dh = w2.shape[1]
    nc = w3.shape[1]
    in_p, d1_p, dh_p, nc_p = (_round_up(d, 128) for d in (input_dim, d1, dh, nc))

    def pad_w(w, rp, cp):
        out = jnp.zeros((rp, cp), weight_dtype)
        return out.at[:w.shape[0], :w.shape[1]].set(w.astype(weight_dtype))

    def pad_b(b, cp):
        return jnp.zeros((1, cp), jnp.float32).at[0, :b.shape[0]].set(
            b.astype(jnp.float32))

    padded = {
        "w1": pad_w(w1, in_p, d1_p), "b1": pad_b(b1, d1_p),
        "w2": pad_w(w2, d1_p, dh_p), "b2": pad_b(b2, dh_p),
        "w3": pad_w(w3, dh_p, nc_p), "b3": pad_b(b3, nc_p),
    }
    dims = dict(input_dim=input_dim, hidden_dim=dh, num_classes=nc)
    return padded, dims


# ----------------------------------------------------------------------------
# Forward (jitted internal)
# ----------------------------------------------------------------------------
@functools.partial(
    jax.jit,
    static_argnames=("input_dim", "hidden_dim", "num_classes", "mode",
                     "tm_cap", "single_buffer_weights", "hidden_dtype"))
def _forward(x, padded_params, *, input_dim, hidden_dim, num_classes, mode,
             tm_cap, single_buffer_weights, hidden_dtype):
    w1, b1 = padded_params["w1"], padded_params["b1"]
    w2, b2 = padded_params["w2"], padded_params["b2"]
    w3, b3 = padded_params["w3"], padded_params["b3"]
    in_p, d1_p = w1.shape
    dh_p = w2.shape[1]
    nc_p = w3.shape[1]
    cdt = w1.dtype  # compute (input) dtype, bf16 by default

    batch = x.shape[0]
    bp = _round_up(batch, 8)            # round rows to sublane multiple only
    tm = bp if bp <= tm_cap else tm_cap  # 512 (v5e-) / 1024 (v6e/v7x) cap
    steps = _cdiv(bp, tm)                # ragged last tile handled by Pallas

    # Feature-only pad (K-dim correctness) + tiny row round-up, fused with the
    # bf16 cast in a single XLA op.  No batch-to-TM padding is materialized.
    xp = x.astype(cdt)
    pad_rows, pad_cols = bp - batch, in_p - input_dim
    if pad_rows or pad_cols:
        xp = jnp.pad(xp, ((0, pad_rows), (0, pad_cols)))

    grid = (steps,)
    x_spec = pl.BlockSpec((tm, in_p), lambda i: (i, 0))

    def w_spec(shape):
        # Weights/biases are grid-invariant: single-buffer them (saves ~1.7 MiB
        # of pointless double-buffer VMEM).
        if single_buffer_weights:
            return pl.BlockSpec(shape, lambda i: (0, 0),
                                pipeline_mode=pl.Buffered(buffer_count=1))
        return pl.BlockSpec(shape, lambda i: (0, 0))

    # Megacore: only split the batch across TensorCores when compute-bound;
    # small batches sit at the weight-DMA floor and splitting would double the
    # weight HBM traffic.
    use_parallel = steps >= 2 and bp >= 2048
    cparams = pltpu.CompilerParams(
        dimension_semantics=(("parallel",) if use_parallel else ("arbitrary",)))

    logits_sds = jax.ShapeDtypeStruct((bp, nc_p), jnp.float32)
    hidden_sds = jax.ShapeDtypeStruct((bp, dh_p), hidden_dtype)
    logits_spec = pl.BlockSpec((tm, nc_p), lambda i: (i, 0))
    hidden_spec = pl.BlockSpec((tm, dh_p), lambda i: (i, 0))

    if mode == "hidden":
        cost = pl.CostEstimate(
            flops=2 * bp * (in_p * d1_p + d1_p * dh_p), transcendentals=0,
            bytes_accessed=_bytes(xp, w1, b1, w2, b2)
            + bp * dh_p * jnp.dtype(hidden_dtype).itemsize)
        hid = pl.pallas_call(
            _hidden_kernel,
            out_shape=hidden_sds,
            grid_spec=pltpu.PrefetchScalarGridSpec(
                num_scalar_prefetch=0, grid=grid,
                in_specs=[x_spec,
                          w_spec((in_p, d1_p)), w_spec((1, d1_p)),
                          w_spec((d1_p, dh_p)), w_spec((1, dh_p))],
                out_specs=hidden_spec),
            compiler_params=cparams,
            cost_estimate=cost,
        )(xp, w1, b1, w2, b2)
        return hid[:batch, :hidden_dim]

    if mode == "logits":
        cost = pl.CostEstimate(
            flops=2 * bp * (in_p * d1_p + d1_p * dh_p + dh_p * nc_p),
            transcendentals=0,
            bytes_accessed=_bytes(xp, w1, b1, w2, b2, w3, b3) + bp * nc_p * 4)
        logits = pl.pallas_call(
            _logits_kernel,
            out_shape=logits_sds,
            grid_spec=pltpu.PrefetchScalarGridSpec(
                num_scalar_prefetch=0, grid=grid,
                in_specs=[x_spec,
                          w_spec((in_p, d1_p)), w_spec((1, d1_p)),
                          w_spec((d1_p, dh_p)), w_spec((1, dh_p)),
                          w_spec((dh_p, nc_p)), w_spec((1, nc_p))],
                out_specs=logits_spec),
            compiler_params=cparams,
            cost_estimate=cost,
        )(xp, w1, b1, w2, b2, w3, b3)
        return logits[:batch, :num_classes]

    # mode == "both": one pass, two outputs (no weight re-fetch / fc recompute)
    cost = pl.CostEstimate(
        flops=2 * bp * (in_p * d1_p + d1_p * dh_p + dh_p * nc_p),
        transcendentals=0,
        bytes_accessed=_bytes(xp, w1, b1, w2, b2, w3, b3)
        + bp * nc_p * 4 + bp * dh_p * jnp.dtype(hidden_dtype).itemsize)
    logits, hid = pl.pallas_call(
        _both_kernel,
        out_shape=(logits_sds, hidden_sds),
        grid_spec=pltpu.PrefetchScalarGridSpec(
            num_scalar_prefetch=0, grid=grid,
            in_specs=[x_spec,
                      w_spec((in_p, d1_p)), w_spec((1, d1_p)),
                      w_spec((d1_p, dh_p)), w_spec((1, dh_p)),
                      w_spec((dh_p, nc_p)), w_spec((1, nc_p))],
            out_specs=[logits_spec, hidden_spec]),
        compiler_params=cparams,
        cost_estimate=cost,
    )(xp, w1, b1, w2, b2, w3, b3)
    return logits[:batch, :num_classes], hid[:batch, :hidden_dim]


# ----------------------------------------------------------------------------
# Public wrapper (probes pipeline_mode support once, then caches the decision)
# ----------------------------------------------------------------------------
_SINGLE_BUFFER_WEIGHTS = None


def image_embedding_classifier(x, padded_params, *, input_dim, hidden_dim,
                               num_classes, return_hidden=False,
                               return_both=False,
                               hidden_dtype=jnp.bfloat16):
    """Forward pass matching ImageEmbeddingClassifier.forward.

    return_hidden=True  -> returns last_layer (relu(fc2(...)))
    return_both=True    -> returns (logits, last_layer) from a single kernel
    otherwise           -> returns logits
    """
    global _SINGLE_BUFFER_WEIGHTS
    mode = "both" if return_both else ("hidden" if return_hidden else "logits")
    kwargs = dict(input_dim=input_dim, hidden_dim=hidden_dim,
                  num_classes=num_classes, mode=mode,
                  tm_cap=_batch_tile_cap(), hidden_dtype=hidden_dtype)
    if _SINGLE_BUFFER_WEIGHTS is None:
        try:
            out = _forward(x, padded_params, single_buffer_weights=True,
                           **kwargs)
            jax.block_until_ready(out)
            _SINGLE_BUFFER_WEIGHTS = True
            return out
        except Exception:
            # pipeline_mode=pl.Buffered(1) unsupported on this jax build;
            # fall back to default double-buffered (still correct).
            _SINGLE_BUFFER_WEIGHTS = False
    return _forward(x, padded_params,
                    single_buffer_weights=_SINGLE_BUFFER_WEIGHTS, **kwargs)


# ----------------------------------------------------------------------------
# Synthetic parameters + reference
# ----------------------------------------------------------------------------
def init_params(key, input_dim=1000, hidden_dim=512, num_classes=14):
    """Deterministic synthetic parameters (PyTorch-Linear-style uniform init)."""
    ks = jax.random.split(key, 6)

    def lin(kw, kb, fan_in, fan_out):
        bound = 1.0 / jnp.sqrt(fan_in)
        w = jax.random.uniform(kw, (fan_in, fan_out), jnp.float32, -bound, bound)
        b = jax.random.uniform(kb, (fan_out,), jnp.float32, -bound, bound)
        return w, b

    w1, b1 = lin(ks[0], ks[1], input_dim, 512)
    w2, b2 = lin(ks[2], ks[3], 512, hidden_dim)
    w3, b3 = lin(ks[4], ks[5], hidden_dim, num_classes)
    return {"w1": w1, "b1": b1, "w2": w2, "b2": b2, "w3": w3, "b3": b3}


def _reference(x, p):
    """Pure-JAX reference with the same bf16-input / f32-accumulate math."""
    bf = jnp.bfloat16
    xb = x.astype(bf)
    h1 = jnp.maximum(
        jnp.dot(xb, p["w1"].astype(bf), preferred_element_type=jnp.float32)
        + p["b1"], 0.0)
    h2 = jnp.maximum(
        jnp.dot(h1.astype(bf), p["w2"].astype(bf),
                preferred_element_type=jnp.float32) + p["b2"], 0.0)
    logits = jnp.dot(h2.astype(bf), p["w3"].astype(bf),
                     preferred_element_type=jnp.float32) + p["b3"]
    return logits, h2


if __name__ == "__main__":
    key = jax.random.PRNGKey(0)
    k_x, k_x2, k_p = jax.random.split(key, 3)

    batch, input_dim, hidden_dim, num_classes = 4, 1000, 512, 14
    x = jax.random.normal(k_x, (batch, input_dim), jnp.float32)
    params = init_params(k_p, input_dim, hidden_dim, num_classes)

    # Pad + cast weights ONCE (outside the jitted forward).
    padded, dims = prepare_params(params)

    logits = image_embedding_classifier(x, padded, **dims)
    hidden = image_embedding_classifier(x, padded, return_hidden=True, **dims)
    both_logits, both_hidden = image_embedding_classifier(
        x, padded, return_both=True, **dims)
    jax.block_until_ready((logits, hidden, both_logits, both_hidden))

    ref_logits, ref_hidden = _reference(x, params)
    assert logits.shape == (batch, num_classes)
    assert hidden.shape == (batch, hidden_dim)
    assert jnp.allclose(logits, ref_logits, atol=2e-2, rtol=2e-2)
    assert jnp.allclose(hidden.astype(jnp.float32), ref_hidden,
                        atol=2e-2, rtol=2e-2)
    assert jnp.allclose(both_logits, ref_logits, atol=2e-2, rtol=2e-2)
    assert jnp.allclose(both_hidden.astype(jnp.float32), ref_hidden,
                        atol=2e-2, rtol=2e-2)

    # Non-multiple-of-8 batch to exercise the masked ragged tail.
    x2 = jax.random.normal(k_x2, (13, input_dim), jnp.float32)
    logits2 = image_embedding_classifier(x2, padded, **dims)
    jax.block_until_ready(logits2)
    ref_logits2, _ = _reference(x2, params)
    assert logits2.shape == (13, num_classes)
    assert jnp.allclose(logits2, ref_logits2, atol=2e-2, rtol=2e-2)

    print("KERNEL_OK")
</pallas_src>

<mosaic_0001>
module attributes {stable_mosaic.version = 11 : i64} {
  func.func @_logits_kernel(%arg0: i32, %arg1: memref<8x1024xbf16, #tpu.memory_space<vmem>>, %arg2: memref<1024x512xbf16, #tpu.memory_space<vmem>>, %arg3: memref<1x512xf32, #tpu.memory_space<vmem>>, %arg4: memref<512x512xbf16, #tpu.memory_space<vmem>>, %arg5: memref<1x512xf32, #tpu.memory_space<vmem>>, %arg6: memref<512x128xbf16, #tpu.memory_space<vmem>>, %arg7: memref<1x128xf32, #tpu.memory_space<vmem>>, %arg8: memref<8x128xf32, #tpu.memory_space<vmem>>) attributes {dimension_semantics = [#tpu.dimension_semantics<arbitrary>], iteration_bounds = array<i64: 1>, scalar_prefetch = 0 : i64, scratch_operands = 0 : i64, tpu.core_type = #tpu.core_type<tc>, window_params = [{transform_indices = @transform_0, window_bounds = array<i64: 8, 1024>}, {pipeline_mode = #tpu.pipeline_mode<synchronous>, transform_indices = @transform_1, window_bounds = array<i64: 1024, 512>}, {pipeline_mode = #tpu.pipeline_mode<synchronous>, transform_indices = @transform_2, window_bounds = array<i64: 1, 512>}, {pipeline_mode = #tpu.pipeline_mode<synchronous>, transform_indices = @transform_3, window_bounds = array<i64: 512, 512>}, {pipeline_mode = #tpu.pipeline_mode<synchronous>, transform_indices = @transform_4, window_bounds = array<i64: 1, 512>}, {pipeline_mode = #tpu.pipeline_mode<synchronous>, transform_indices = @transform_5, window_bounds = array<i64: 512, 128>}, {pipeline_mode = #tpu.pipeline_mode<synchronous>, transform_indices = @transform_6, window_bounds = array<i64: 1, 128>}, {transform_indices = @transform_7, window_bounds = array<i64: 8, 128>}]} {
    %c0 = arith.constant 0 : index
    %c0_0 = arith.constant 0 : index
    %0 = vector.load %arg1[%c0, %c0_0] : memref<8x1024xbf16, #tpu.memory_space<vmem>>, vector<8x1024xbf16>
    %c0_1 = arith.constant 0 : index
    %c0_2 = arith.constant 0 : index
    %1 = vector.load %arg2[%c0_1, %c0_2] : memref<1024x512xbf16, #tpu.memory_space<vmem>>, vector<1024x512xbf16>
    %cst = arith.constant dense<0.000000e+00> : vector<8x512xf32>
    %2 = tpu.matmul %0, %1, %cst {dimension_numbers = #tpu.dot_dimension_numbers<[1], [0], [0], [1], [0, 0, 1, 1], [], []>} : vector<8x1024xbf16>, vector<1024x512xbf16>, vector<8x512xf32> -> vector<8x512xf32>
    %c0_3 = arith.constant 0 : index
    %c0_4 = arith.constant 0 : index
    %3 = vector.load %arg3[%c0_3, %c0_4] : memref<1x512xf32, #tpu.memory_space<vmem>>, vector<1x512xf32>
    %4 = vector.broadcast %3 : vector<1x512xf32> to vector<8x512xf32>
    %5 = arith.addf %2, %4 : vector<8x512xf32>
    %cst_5 = arith.constant 0.000000e+00 : f32
    %6 = vector.broadcast %cst_5 : f32 to vector<8x512xf32>
    %7 = arith.maximumf %5, %6 : vector<8x512xf32>
    %8 = arith.truncf %7 : vector<8x512xf32> to vector<8x512xbf16>
    %c0_6 = arith.constant 0 : index
    %c0_7 = arith.constant 0 : index
    %9 = vector.load %arg4[%c0_6, %c0_7] : memref<512x512xbf16, #tpu.memory_space<vmem>>, vector<512x512xbf16>
    %cst_8 = arith.constant dense<0.000000e+00> : vector<8x512xf32>
    %10 = tpu.matmul %8, %9, %cst_8 {dimension_numbers = #tpu.dot_dimension_numbers<[1], [0], [0], [1], [0, 0, 1, 1], [], []>} : vector<8x512xbf16>, vector<512x512xbf16>, vector<8x512xf32> -> vector<8x512xf32>
    %c0_9 = arith.constant 0 : index
    %c0_10 = arith.constant 0 : index
    %11 = vector.load %arg5[%c0_9, %c0_10] : memref<1x512xf32, #tpu.memory_space<vmem>>, vector<1x512xf32>
    %12 = vector.broadcast %11 : vector<1x512xf32> to vector<8x512xf32>
    %13 = arith.addf %10, %12 : vector<8x512xf32>
    %cst_11 = arith.constant 0.000000e+00 : f32
    %14 = vector.broadcast %cst_11 : f32 to vector<8x512xf32>
    %15 = arith.maximumf %13, %14 : vector<8x512xf32>
    %16 = arith.truncf %15 : vector<8x512xf32> to vector<8x512xbf16>
    %c0_12 = arith.constant 0 : index
    %c0_13 = arith.constant 0 : index
    %17 = vector.load %arg6[%c0_12, %c0_13] : memref<512x128xbf16, #tpu.memory_space<vmem>>, vector<512x128xbf16>
    %cst_14 = arith.constant dense<0.000000e+00> : vector<8x128xf32>
    %18 = tpu.matmul %16, %17, %cst_14 {dimension_numbers = #tpu.dot_dimension_numbers<[1], [0], [0], [1], [0, 0, 1, 1], [], []>} : vector<8x512xbf16>, vector<512x128xbf16>, vector<8x128xf32> -> vector<8x128xf32>
    %c0_15 = arith.constant 0 : index
    %c0_16 = arith.constant 0 : index
    %19 = vector.load %arg7[%c0_15, %c0_16] : memref<1x128xf32, #tpu.memory_space<vmem>>, vector<1x128xf32>
    %20 = vector.broadcast %19 : vector<1x128xf32> to vector<8x128xf32>
    %21 = arith.addf %18, %20 : vector<8x128xf32>
    %c0_17 = arith.constant 0 : index
    %c0_18 = arith.constant 0 : index
    %22 = vector.load %arg8[%c0_17, %c0_18] : memref<8x128xf32, #tpu.memory_space<vmem>>, vector<8x128xf32>
    tpu.vector_store %arg8[%c0_17, %c0_18], %21 {strides = array<i32>} : memref<8x128xf32, #tpu.memory_space<vmem>>, vector<8x128xf32>,
    return
  }
  func.func @transform_0(%arg0: i32) -> (i32, i32) {
    %c0_i32 = arith.constant 0 : i32
    %c0_i32_0 = arith.constant 0 : i32
    return %arg0, %c0_i32 : i32, i32
  }
  func.func @transform_1(%arg0: i32) -> (i32, i32) {
    %c0_i32 = arith.constant 0 : i32
    %c0_i32_0 = arith.constant 0 : i32
    %c0_i32_1 = arith.constant 0 : i32
    return %c0_i32, %c0_i32_0 : i32, i32
  }
  func.func @transform_2(%arg0: i32) -> (i32, i32) {
    %c0_i32 = arith.constant 0 : i32
    %c0_i32_0 = arith.constant 0 : i32
    %c0_i32_1 = arith.constant 0 : i32
    return %c0_i32, %c0_i32_0 : i32, i32
  }
  func.func @transform_3(%arg0: i32) -> (i32, i32) {
    %c0_i32 = arith.constant 0 : i32
    %c0_i32_0 = arith.constant 0 : i32
    %c0_i32_1 = arith.constant 0 : i32
    return %c0_i32, %c0_i32_0 : i32, i32
  }
  func.func @transform_4(%arg0: i32) -> (i32, i32) {
    %c0_i32 = arith.constant 0 : i32
    %c0_i32_0 = arith.constant 0 : i32
    %c0_i32_1 = arith.constant 0 : i32
    return %c0_i32, %c0_i32_0 : i32, i32
  }
  func.func @transform_5(%arg0: i32) -> (i32, i32) {
    %c0_i32 = arith.constant 0 : i32
    %c0_i32_0 = arith.constant 0 : i32
    %c0_i32_1 = arith.constant 0 : i32
    return %c0_i32, %c0_i32_0 : i32, i32
  }
  func.func @transform_6(%arg0: i32) -> (i32, i32) {
    %c0_i32 = arith.constant 0 : i32
    %c0_i32_0 = arith.constant 0 : i32
    %c0_i32_1 = arith.constant 0 : i32
    return %c0_i32, %c0_i32_0 : i32, i32
  }
  func.func @transform_7(%arg0: i32) -> (i32, i32) {
    %c0_i32 = arith.constant 0 : i32
    %c0_i32_0 = arith.constant 0 : i32
    return %arg0, %c0_i32 : i32, i32
  }
}

module attributes {stable_mosaic.version = 11 : i64} {
  func.func @_logits_kernel(%arg0: i32, %arg1: memref<8x1024xbf16, #tpu.memory_space<vmem>>, %arg2: memref<1024x512xbf16, #tpu.memory_space<vmem>>, %arg3: memref<1x512xf32, #tpu.memory_space<vmem>>, %arg4: memref<512x512xbf16, #tpu.memory_space<vmem>>, %arg5: memref<1x512xf32, #tpu.memory_space<vmem>>, %arg6: memref<512x128xbf16, #tpu.memory_space<vmem>>, %arg7: memref<1x128xf32, #tpu.memory_space<vmem>>, %arg8: memref<8x128xf32, #tpu.memory_space<vmem>>) attributes {dimension_semantics = [#tpu.dimension_semantics<arbitrary>], iteration_bounds = array<i64: 1>, scalar_prefetch = 0 : i64, scratch_operands = 0 : i64, tpu.core_type = #tpu.core_type<tc>, window_params = [{transform_indices = @transform_0, window_bounds = array<i64: 8, 1024>}, {pipeline_mode = #tpu.pipeline_mode<synchronous>, transform_indices = @transform_1, window_bounds = array<i64: 1024, 512>}, {pipeline_mode = #tpu.pipeline_mode<synchronous>, transform_indices = @transform_2, window_bounds = array<i64: 1, 512>}, {pipeline_mode = #tpu.pipeline_mode<synchronous>, transform_indices = @transform_3, window_bounds = array<i64: 512, 512>}, {pipeline_mode = #tpu.pipeline_mode<synchronous>, transform_indices = @transform_4, window_bounds = array<i64: 1, 512>}, {pipeline_mode = #tpu.pipeline_mode<synchronous>, transform_indices = @transform_5, window_bounds = array<i64: 512, 128>}, {pipeline_mode = #tpu.pipeline_mode<synchronous>, transform_indices = @transform_6, window_bounds = array<i64: 1, 128>}, {transform_indices = @transform_7, window_bounds = array<i64: 8, 128>}]} {
    %c0 = arith.constant 0 : index
    %c0_0 = arith.constant 0 : index
    %0 = vector.load %arg1[%c0, %c0_0] : memref<8x1024xbf16, #tpu.memory_space<vmem>>, vector<8x1024xbf16>
    %c0_1 = arith.constant 0 : index
    %c0_2 = arith.constant 0 : index
    %1 = vector.load %arg2[%c0_1, %c0_2] : memref<1024x512xbf16, #tpu.memory_space<vmem>>, vector<1024x512xbf16>
    %cst = arith.constant dense<0.000000e+00> : vector<8x512xf32>
    %2 = tpu.matmul %0, %1, %cst {dimension_numbers = #tpu.dot_dimension_numbers<[1], [0], [0], [1], [0, 0, 1, 1], [], []>} : vector<8x1024xbf16>, vector<1024x512xbf16>, vector<8x512xf32> -> vector<8x512xf32>
    %c0_3 = arith.constant 0 : index
    %c0_4 = arith.constant 0 : index
    %3 = vector.load %arg3[%c0_3, %c0_4] : memref<1x512xf32, #tpu.memory_space<vmem>>, vector<1x512xf32>
    %4 = vector.broadcast %3 : vector<1x512xf32> to vector<8x512xf32>
    %5 = arith.addf %2, %4 : vector<8x512xf32>
    %cst_5 = arith.constant 0.000000e+00 : f32
    %6 = vector.broadcast %cst_5 : f32 to vector<8x512xf32>
    %7 = arith.maximumf %5, %6 : vector<8x512xf32>
    %8 = arith.truncf %7 : vector<8x512xf32> to vector<8x512xbf16>
    %c0_6 = arith.constant 0 : index
    %c0_7 = arith.constant 0 : index
    %9 = vector.load %arg4[%c0_6, %c0_7] : memref<512x512xbf16, #tpu.memory_space<vmem>>, vector<512x512xbf16>
    %cst_8 = arith.constant dense<0.000000e+00> : vector<8x512xf32>
    %10 = tpu.matmul %8, %9, %cst_8 {dimension_numbers = #tpu.dot_dimension_numbers<[1], [0], [0], [1], [0, 0, 1, 1], [], []>} : vector<8x512xbf16>, vector<512x512xbf16>, vector<8x512xf32> -> vector<8x512xf32>
    %c0_9 = arith.constant 0 : index
    %c0_10 = arith.constant 0 : index
    %11 = vector.load %arg5[%c0_9, %c0_10] : memref<1x512xf32, #tpu.memory_space<vmem>>, vector<1x512xf32>
    %12 = vector.broadcast %11 : vector<1x512xf32> to vector<8x512xf32>
    %13 = arith.addf %10, %12 : vector<8x512xf32>
    %cst_11 = arith.constant 0.000000e+00 : f32
    %14 = vector.broadcast %cst_11 : f32 to vector<8x512xf32>
    %15 = arith.maximumf %13, %14 : vector<8x512xf32>
    %16 = arith.truncf %15 : vector<8x512xf32> to vector<8x512xbf16>
    %c0_12 = arith.constant 0 : index
    %c0_13 = arith.constant 0 : index
    %17 = vector.load %arg6[%c0_12, %c0_13] : memref<512x128xbf16, #tpu.memory_space<vmem>>, vector<512x128xbf16>
    %cst_14 = arith.constant dense<0.000000e+00> : vector<8x128xf32>
    %18 = tpu.matmul %16, %17, %cst_14 {dimension_numbers = #tpu.dot_dimension_numbers<[1], [0], [0], [1], [0, 0, 1, 1], [], []>} : vector<8x512xbf16>, vector<512x128xbf16>, vector<8x128xf32> -> vector<8x128xf32>
    %c0_15 = arith.constant 0 : index
    %c0_16 = arith.constant 0 : index
    %19 = vector.load %arg7[%c0_15, %c0_16] : memref<1x128xf32, #tpu.memory_space<vmem>>, vector<1x128xf32>
    %20 = vector.broadcast %19 : vector<1x128xf32> to vector<8x128xf32>
    %21 = arith.addf %18, %20 : vector<8x128xf32>
    %c0_17 = arith.constant 0 : index
    %c0_18 = arith.constant 0 : index
    %22 = vector.load %arg8[%c0_17, %c0_18] : memref<8x128xf32, #tpu.memory_space<vmem>>, vector<8x128xf32>
    tpu.vector_store %arg8[%c0_17, %c0_18], %21 {strides = array<i32>} : memref<8x128xf32, #tpu.memory_space<vmem>>, vector<8x128xf32>,
    return
  }
  func.func @transform_0(%arg0: i32) -> (i32, i32) {
    %c0_i32 = arith.constant 0 : i32
    %c0_i32_0 = arith.constant 0 : i32
    return %arg0, %c0_i32 : i32, i32
  }
  func.func @transform_1(%arg0: i32) -> (i32, i32) {
    %c0_i32 = arith.constant 0 : i32
    %c0_i32_0 = arith.constant 0 : i32
    %c0_i32_1 = arith.constant 0 : i32
    return %c0_i32, %c0_i32_0 : i32, i32
  }
  func.func @transform_2(%arg0: i32) -> (i32, i32) {
    %c0_i32 = arith.constant 0 : i32
    %c0_i32_0 = arith.constant 0 : i32
    %c0_i32_1 = arith.constant 0 : i32
    return %c0_i32, %c0_i32_0 : i32, i32
  }
  func.func @transform_3(%arg0: i32) -> (i32, i32) {
    %c0_i32 = arith.constant 0 : i32
    %c0_i32_0 = arith.constant 0 : i32
    %c0_i32_1 = arith.constant 0 : i32
    return %c0_i32, %c0_i32_0 : i32, i32
  }
  func.func @transform_4(%arg0: i32) -> (i32, i32) {
    %c0_i32 = arith.constant 0 : i32
    %c0_i32_0 = arith.constant 0 : i32
    %c0_i32_1 = arith.constant 0 : i32
    return %c0_i32, %c0_i32_0 : i32, i32
  }
  func.func @transform_5(%arg0: i32) -> (i32, i32) {
    %c0_i32 = arith.constant 0 : i32
    %c0_i32_0 = arith.constant 0 : i32
    %c0_i32_1 = arith.constant 0 : i32
    return %c0_i32, %c0_i32_0 : i32, i32
  }
  func.func @transform_6(%arg0: i32) -> (i32, i32) {
    %c0_i32 = arith.constant 0 : i32
    %c0_i32_0 = arith.constant 0 : i32
    %c0_i32_1 = arith.constant 0 : i32
    return %c0_i32, %c0_i32_0 : i32, i32
  }
  func.func @transform_7(%arg0: i32) -> (i32, i32) {
    %c0_i32 = arith.constant 0 : i32
    %c0_i32_0 = arith.constant 0 : i32
    return %arg0, %c0_i32 : i32, i32
  }
}

</mosaic_0001>

<bundles_post_ra>
// kernel: _forward.1
= control target key start
LH: loop header
LB: loop body
LE: loop exit
PB: predicated region body
PF: predicated region fallthrough
CT: control target
= control target key end

     0   :  { %12 = vsyncpa [#allocation3], 0  ;;  %s4634_s0 = inlined_call_operand.vmem [shape: bf16[8,1024], index: 0, kind: input, shape index: {}]   ;;  %s4635_s1 = inlined_call_operand.hbm [shape: bf16[1024,512], index: 1, kind: input, shape index: {}]   ;;  %s4636_s2 = inlined_call_operand.vmem [shape: f32[1,512], index: 2, kind: input, shape index: {}]   ;;  %s4637_s3 = inlined_call_operand.hbm [shape: bf16[512,512], index: 3, kind: input, shape index: {}]   ;;  %s4638_s4 = inlined_call_operand.vmem [shape: f32[1,512], index: 4, kind: input, shape index: {}]   ;;  %s4639_s5 = inlined_call_operand.hbm [shape: bf16[512,128], index: 5, kind: input, shape index: {}]   ;;  %s4640_s6 = inlined_call_operand.vmem [shape: f32[1,128], index: 6, kind: input, shape index: {}]   ;;  %s4641_s7 = inlined_call_operand.vmem [shape: f32[8,128], index: 7, kind: output, shape index: {}]  }
   0x1   :  { %13 = vsyncpa [#allocation5], 0  ;;  %s4462_s24 = smov [#allocation4]   ;;  %s4463_s26 = smov [#allocation2]  }
   0x2   :  { %s35_s25 = sshll.u32 %s4462_s24, 4  ;;  %s21_s27 = sshll.u32 %s4463_s26, 4  ;;  %s36_s25 = int_to_ptr.vmem [resolvable:$true] %s35_s25  ;;  %s22_s27 = int_to_ptr.vmem [resolvable:$true] %s21_s27 }
   0x3   :  { %s4406_s28 = scalar_lea.vmem %s36_s25, 16384  ;;  %p4411_p1 = scmp.lt.s32.totalorder %s36_s25, %s36_s25 }
   0x4   :  { %p4407_p0 = scmp.ne.s32.totalorder %s36_s25, %s4406_s28  ;;  %p4412_p2 = scmp.lt.s32.totalorder %s4406_s28, %s4406_s28 }
   0x6   :  { %p4413_p3 = por %p4412_p2, %p4411_p1 }
   0x8   :  { %p4414_p4 = pnand %p4413_p3, %p4407_p0 }
   0xa   :  { %4417 = shalt.err (!%p4414_p4)
}
   0xb   :  { %s4464_s29 = smov 256   ;;  %s4465_s30 = smov 16  }
   0xc   :  { %41 = dma.hbm_to_vmem [thread:$0]  %s4637_s3, 16384, %s36_s25, [#allocation5], %s4464_s29, %s4464_s29, %s4465_s30  }
   0xd   :  { %s4426_s10 = scalar_lea.vmem %s22_s27, 32768  ;;  %p4431_p6 = scmp.lt.s32.totalorder %s22_s27, %s22_s27 }
   0xe   :  { %p4427_p5 = scmp.ne.s32.totalorder %s22_s27, %s4426_s10  ;;  %p4432_p7 = scmp.lt.s32.totalorder %s4426_s10, %s4426_s10 }
  0x10   :  { %p4433_p8 = por %p4432_p7, %p4431_p6 }
  0x12   :  { %p4434_p9 = pnand %p4433_p8, %p4427_p5 }
  0x14   :  { %4437 = shalt.err (!%p4434_p9)
}
  0x15   :  { %27 = dma.hbm_to_vmem [thread:$0]  %s4635_s1, 32768, %s22_s27, [#allocation3], %s4464_s29, %s4464_s29, %s4465_s30  }
  0x16   :  { %s4466_s13 = smov [#allocation6]  }
  0x17   :  { %s49_s14 = sshll.u32 %s4466_s13, 4  ;;  %s50_s14 = int_to_ptr.vmem [resolvable:$true] %s49_s14 }
  0x18   :  { %s4446_s15 = scalar_lea.vmem %s50_s14, 4096  ;;  %p4451_p11 = scmp.lt.s32.totalorder %s50_s14, %s50_s14 }
  0x19   :  { %p4447_p10 = scmp.ne.s32.totalorder %s50_s14, %s4446_s15  ;;  %p4452_p12 = scmp.lt.s32.totalorder %s4446_s15, %s4446_s15 }
  0x1b   :  { %p4453_p13 = por %p4452_p12, %p4451_p11 }
  0x1d   :  { %p4454_p0 = pnand %p4453_p13, %p4447_p10 }
  0x1f   :  { %4457 = shalt.err (!%p4454_p0)
}
  0x20   :  { %s4467_s3 = smov 64   ;;  %s4468_s16 = smov 4  }
  0x21   :  { %55 = dma.hbm_to_vmem [thread:$0]  %s4639_s5, 4096, %s50_s14, [#allocation5], %s4467_s3, %s4467_s3, %s4468_s16  }
  0x22   :  { %4458 = dma.done.wait [#allocation3], 32768  }
  0x23   :  { %4459 = vsyncadd [#allocation3], 4294934528 }
  0x24   :  { %4460 = dma.done.wait [#allocation5], 20480  }
  0x25   :  { %4461 = vsyncadd [#allocation5], 4294946816  ;;  %v3782_v0 = vld [vmem:[#allocation2 + $0xe4] ss:$16 sps:$4 sm:$0xff]   ;;  %v3786_v2 = vld [vmem:[#allocation2 + $0xe0] ss:$16 sps:$4 sm:$0xff]  }
  0x26   :  { %v3784_v1 = vld [vmem:[#allocation2 + $0x2e4] ss:$16 sps:$4 sm:$0xff]   ;;  %1658 = vmatprep.subr.bf16.mxu0 %v3782_v0  ;;  %v3787_v3 = vld [vmem:[#allocation2 + $0x2e0] ss:$16 sps:$4 sm:$0xff]   ;;  %v69_v48 = vld [vmem:[%s4634_s0 + $0x8] sm:$0xff] }
  0x27   :  { %1699 = vmatprep.subr.bf16.mxu1 %v3784_v1  ;;  %v3788_v4 = vld [vmem:[#allocation2 + $0xc4] ss:$16 sps:$4 sm:$0xff]   ;;  %1659 = vmatpush1.bf16.msra.mxu0 %v3786_v2  ;;  %v3792_v6 = vld [vmem:[#allocation2 + $0xc0] ss:$16 sps:$4 sm:$0xff]   ;;  %v4526_v51 = vcombine.high %v69_v48, %v69_v48 }
  0x28   :  { %1700 = vmatpush1.bf16.msra.mxu1 %v3787_v3  ;;  %v3790_v5 = vld [vmem:[#allocation2 + $0x2c4] ss:$16 sps:$4 sm:$0xff]   ;;  %1660 = vmatprep.subr.bf16.mxu0 %v3788_v4  ;;  %v3793_v7 = vld [vmem:[#allocation2 + $0x2c0] ss:$16 sps:$4 sm:$0xff]  }
  0x29   :  { %1701 = vmatprep.subr.bf16.mxu1 %v3790_v5  ;;  %v3794_v8 = vld [vmem:[#allocation2 + $0xa4] ss:$16 sps:$4 sm:$0xff]   ;;  %v3798_v10 = vld [vmem:[#allocation2 + $0xa0] ss:$16 sps:$4 sm:$0xff]   ;;  %1731 = vmatprep.mubr.bf16.mxu1 %v4526_v51 }
  0x2a   :  { %v3796_v9 = vld [vmem:[#allocation2 + $0x2a4] ss:$16 sps:$4 sm:$0xff]   ;;  %v3799_v11 = vld [vmem:[#allocation2 + $0x2a0] ss:$16 sps:$4 sm:$0xff]  }
  0x2b   :  { %1661 = vmatpush1.bf16.msra.mxu0 %v3792_v6  ;;  %v3800_v12 = vld [vmem:[#allocation2 + $0x84] ss:$16 sps:$4 sm:$0xff]   ;;  %v3804_v14 = vld [vmem:[#allocation2 + $0x80] ss:$16 sps:$4 sm:$0xff]  }
  0x2c   :  { %1702 = vmatpush1.bf16.msra.mxu1 %v3793_v7  ;;  %1662 = vmatprep.subr.bf16.mxu0 %v3794_v8  ;;  %v3802_v13 = vld [vmem:[#allocation2 + $0x284] ss:$16 sps:$4 sm:$0xff]   ;;  %v3805_v15 = vld [vmem:[#allocation2 + $0x280] ss:$16 sps:$4 sm:$0xff]   ;;  %v4532_v7 = vcombine.low %v69_v48, %v69_v48 }
  0x2d   :  { %1703 = vmatprep.subr.bf16.mxu1 %v3796_v9  ;;  %v3806_v16 = vld [vmem:[#allocation2 + $0x64] ss:$16 sps:$4 sm:$0xff]   ;;  %v3810_v18 = vld [vmem:[#allocation2 + $0x60] ss:$16 sps:$4 sm:$0xff]  }
  0x2e   :  { %v3808_v17 = vld [vmem:[#allocation2 + $0x264] ss:$16 sps:$4 sm:$0xff]   ;;  %v3811_v19 = vld [vmem:[#allocation2 + $0x260] ss:$16 sps:$4 sm:$0xff]  }
  0x2f   :  { %1663 = vmatpush1.bf16.msra.mxu0 %v3798_v10  ;;  %v3812_v20 = vld [vmem:[#allocation2 + $0x44] ss:$16 sps:$4 sm:$0xff]   ;;  %v3816_v22 = vld [vmem:[#allocation2 + $0x40] ss:$16 sps:$4 sm:$0xff]  }
  0x30   :  { %1704 = vmatpush1.bf16.msra.mxu1 %v3799_v11  ;;  %1664 = vmatprep.subr.bf16.mxu0 %v3800_v12  ;;  %v3814_v21 = vld [vmem:[#allocation2 + $0x244] ss:$16 sps:$4 sm:$0xff]   ;;  %v3817_v23 = vld [vmem:[#allocation2 + $0x240] ss:$16 sps:$4 sm:$0xff]  }
  0x31   :  { %1705 = vmatprep.subr.bf16.mxu1 %v3802_v13  ;;  %v3818_v24 = vld [vmem:[#allocation2 + $0x24] ss:$16 sps:$4 sm:$0xff]   ;;  %v3822_v26 = vld [vmem:[#allocation2 + $0x20] ss:$16 sps:$4 sm:$0xff]  }
  0x32   :  { %v3820_v25 = vld [vmem:[#allocation2 + $0x224] ss:$16 sps:$4 sm:$0xff]   ;;  %v3823_v27 = vld [vmem:[#allocation2 + $0x220] ss:$16 sps:$4 sm:$0xff]  }
  0x33   :  { %1665 = vmatpush1.bf16.msra.mxu0 %v3804_v14  ;;  %v3824_v28 = vld [vmem:[#allocation2 + $0x4] ss:$16 sps:$4 sm:$0xff]   ;;  %v3828_v30 = vld [vmem:[#allocation2] ss:$16 sps:$4 sm:$0xff]  }
  0x34   :  { %1706 = vmatpush1.bf16.msra.mxu1 %v3805_v15  ;;  %1666 = vmatprep.subr.bf16.mxu0 %v3806_v16  ;;  %v3826_v29 = vld [vmem:[#allocation2 + $0x204] ss:$16 sps:$4 sm:$0xff]   ;;  %v3829_v31 = vld [vmem:[#allocation2 + $0x200] ss:$16 sps:$4 sm:$0xff]  }
  0x35   :  { %1707 = vmatprep.subr.bf16.mxu1 %v3808_v17  ;;  %v3830_v32 = vld [vmem:[#allocation2 + $0x1e4] ss:$16 sps:$4 sm:$0xff]   ;;  %v3834_v34 = vld [vmem:[#allocation2 + $0x1e0] ss:$16 sps:$4 sm:$0xff]  }
  0x36   :  { %v3832_v33 = vld [vmem:[#allocation2 + $0x3e4] ss:$16 sps:$4 sm:$0xff]   ;;  %v3835_v35 = vld [vmem:[#allocation2 + $0x3e0] ss:$16 sps:$4 sm:$0xff]  }
  0x37   :  { %1667 = vmatpush1.bf16.msra.mxu0 %v3810_v18  ;;  %v3836_v36 = vld [vmem:[#allocation2 + $0x1c4] ss:$16 sps:$4 sm:$0xff]   ;;  %v3840_v38 = vld [vmem:[#allocation2 + $0x1c0] ss:$16 sps:$4 sm:$0xff]  }
  0x38   :  { %1708 = vmatpush1.bf16.msra.mxu1 %v3811_v19  ;;  %1668 = vmatprep.subr.bf16.mxu0 %v3812_v20  ;;  %v3838_v37 = vld [vmem:[#allocation2 + $0x3c4] ss:$16 sps:$4 sm:$0xff]   ;;  %v3841_v39 = vld [vmem:[#allocation2 + $0x3c0] ss:$16 sps:$4 sm:$0xff]  }
  0x39   :  { %1709 = vmatprep.subr.bf16.mxu1 %v3814_v21  ;;  %v3842_v40 = vld [vmem:[#allocation2 + $0x1a4] ss:$16 sps:$4 sm:$0xff]   ;;  %v3846_v42 = vld [vmem:[#allocation2 + $0x1a0] ss:$16 sps:$4 sm:$0xff]  }
  0x3a   :  { %v3844_v41 = vld [vmem:[#allocation2 + $0x3a4] ss:$16 sps:$4 sm:$0xff]   ;;  %v3847_v43 = vld [vmem:[#allocation2 + $0x3a0] ss:$16 sps:$4 sm:$0xff]  }
  0x3b   :  { %1669 = vmatpush1.bf16.msra.mxu0 %v3816_v22  ;;  %v3848_v44 = vld [vmem:[#allocation2 + $0x184] ss:$16 sps:$4 sm:$0xff]   ;;  %v3852_v49 = vld [vmem:[#allocation2 + $0x180] ss:$16 sps:$4 sm:$0xff]  }
  0x3c   :  { %1710 = vmatpush1.bf16.msra.mxu1 %v3817_v23  ;;  %1670 = vmatprep.subr.bf16.mxu0 %v3818_v24  ;;  %v3850_v45 = vld [vmem:[#allocation2 + $0x384] ss:$16 sps:$4 sm:$0xff]   ;;  %v3853_v50 = vld [vmem:[#allocation2 + $0x380] ss:$16 sps:$4 sm:$0xff]  }
  0x3d   :  { %1711 = vmatprep.subr.bf16.mxu1 %v3820_v25  ;;  %v68_v46 = vld [vmem:[%s4634_s0] sm:$0xff] }
  0x3e   :  { %v4521_v47 = vcombine.high %v68_v46, %v68_v46  ;;  %v3854_v52 = vld [vmem:[#allocation2 + $0x164] ss:$16 sps:$4 sm:$0xff]   ;;  %v3858_v54 = vld [vmem:[#allocation2 + $0x160] ss:$16 sps:$4 sm:$0xff]   ;;  %v4530_v6 = vcombine.low %v68_v46, %v68_v46 }
  0x3f   :  { %1671 = vmatpush1.bf16.msra.mxu0 %v3822_v26  ;;  %v3856_v53 = vld [vmem:[#allocation2 + $0x364] ss:$16 sps:$4 sm:$0xff]   ;;  %v3859_v55 = vld [vmem:[#allocation2 + $0x360] ss:$16 sps:$4 sm:$0xff]  }
  0x40   :  { %1712 = vmatpush1.bf16.msra.mxu1 %v3823_v27  ;;  %1672 = vmatprep.subr.bf16.mxu0 %v3824_v28  ;;  %v3860_v56 = vld [vmem:[#allocation2 + $0x144] ss:$16 sps:$4 sm:$0xff]   ;;  %v3864_v58 = vld [vmem:[#allocation2 + $0x140] ss:$16 sps:$4 sm:$0xff]  }
  0x41   :  { %1713 = vmatprep.subr.bf16.mxu1 %v3826_v29  ;;  %1690 = vmatprep.mubr.bf16.mxu0 %v4521_v47  ;;  %v3862_v57 = vld [vmem:[#allocation2 + $0x344] ss:$16 sps:$4 sm:$0xff]   ;;  %v3865_v59 = vld [vmem:[#allocation2 + $0x340] ss:$16 sps:$4 sm:$0xff]  }
  0x42   :  { %v3866_v60 = vld [vmem:[#allocation2 + $0x124] ss:$16 sps:$4 sm:$0xff]   ;;  %v3870_v62 = vld [vmem:[#allocation2 + $0x120] ss:$16 sps:$4 sm:$0xff]  }
  0x43   :  { %1673 = vmatpush1.bf16.msra.mxu0 %v3828_v30  ;;  %v3868_v61 = vld [vmem:[#allocation2 + $0x324] ss:$16 sps:$4 sm:$0xff]   ;;  %v3871_v63 = vld [vmem:[#allocation2 + $0x320] ss:$16 sps:$4 sm:$0xff]  }
  0x44   :  { %1714 = vmatpush1.bf16.msra.mxu1 %v3829_v31  ;;  %1674 = vmatprep.subr.bf16.mxu0 %v3830_v32  ;;  %v3872_v0 = vld [vmem:[#allocation2 + $0x104] ss:$16 sps:$4 sm:$0xff]   ;;  %v3876_v2 = vld [vmem:[#allocation2 + $0x100] ss:$16 sps:$4 sm:$0xff]  }
  0x45   :  { %1715 = vmatprep.subr.bf16.mxu1 %v3832_v33  ;;  %v3874_v1 = vld [vmem:[#allocation2 + $0x304] ss:$16 sps:$4 sm:$0xff]   ;;  %v3877_v3 = vld [vmem:[#allocation2 + $0x300] ss:$16 sps:$4 sm:$0xff]   ;;  %v4544_v33 = vld [vmem:[%s4634_s0 + $0x18] sm:$0xff] }
  0x46   :  { %v3884_v4 = vld [vmem:[#allocation2 + $0x4e4] ss:$16 sps:$4 sm:$0xff]   ;;  %v3882_v8 = vld [vmem:[#allocation2 + $0x4e0] ss:$16 sps:$4 sm:$0xff]  }
  0x47   :  { %1675 = vmatpush2.bf16.msra.mxu0 %v3834_v34  ;;  %v3887_v5 = vld [vmem:[#allocation2 + $0x6e4] ss:$16 sps:$4 sm:$0xff]   ;;  %v3885_v9 = vld [vmem:[#allocation2 + $0x6e0] ss:$16 sps:$4 sm:$0xff]  }
  0x48   :  { %1716 = vmatpush2.bf16.msra.mxu1 %v3835_v35  ;;  %1676 = vmatprep.subr.bf16.mxu0 %v3836_v36  ;;  %v3890_v10 = vld [vmem:[#allocation2 + $0x4c4] ss:$16 sps:$4 sm:$0xff]   ;;  %v3888_v12 = vld [vmem:[#allocation2 + $0x4c0] ss:$16 sps:$4 sm:$0xff]  }
  0x49   :  { %1717 = vmatprep.subr.bf16.mxu1 %v3838_v37  ;;  %v3893_v11 = vld [vmem:[#allocation2 + $0x6c4] ss:$16 sps:$4 sm:$0xff]   ;;  %v3891_v13 = vld [vmem:[#allocation2 + $0x6c0] ss:$16 sps:$4 sm:$0xff]   ;;  %v4552_v37 = vcombine.high %v4544_v33, %v4544_v33 }
  0x4a   :  { %v3896_v14 = vld [vmem:[#allocation2 + $0x4a4] ss:$16 sps:$4 sm:$0xff]   ;;  %v3894_v16 = vld [vmem:[#allocation2 + $0x4a0] ss:$16 sps:$4 sm:$0xff]  }
  0x4b   :  { %1677 = vmatpush2.bf16.msra.mxu0 %v3840_v38  ;;  %v3899_v15 = vld [vmem:[#allocation2 + $0x6a4] ss:$16 sps:$4 sm:$0xff]   ;;  %v3897_v17 = vld [vmem:[#allocation2 + $0x6a0] ss:$16 sps:$4 sm:$0xff]  }
  0x4c   :  { %1718 = vmatpush2.bf16.msra.mxu1 %v3841_v39  ;;  %1678 = vmatprep.subr.bf16.mxu0 %v3842_v40  ;;  %v3902_v18 = vld [vmem:[#allocation2 + $0x484] ss:$16 sps:$4 sm:$0xff]   ;;  %v3900_v20 = vld [vmem:[#allocation2 + $0x480] ss:$16 sps:$4 sm:$0xff]  }
  0x4d   :  { %1719 = vmatprep.subr.bf16.mxu1 %v3844_v41  ;;  %v3905_v19 = vld [vmem:[#allocation2 + $0x684] ss:$16 sps:$4 sm:$0xff]   ;;  %v3903_v21 = vld [vmem:[#allocation2 + $0x680] ss:$16 sps:$4 sm:$0xff]  }
  0x4e   :  { %v3908_v22 = vld [vmem:[#allocation2 + $0x464] ss:$16 sps:$4 sm:$0xff]   ;;  %v3906_v24 = vld [vmem:[#allocation2 + $0x460] ss:$16 sps:$4 sm:$0xff]  }
  0x4f   :  { %1679 = vmatpush2.bf16.msra.mxu0 %v3846_v42  ;;  %v3911_v23 = vld [vmem:[#allocation2 + $0x664] ss:$16 sps:$4 sm:$0xff]   ;;  %v3909_v25 = vld [vmem:[#allocation2 + $0x660] ss:$16 sps:$4 sm:$0xff]  }
  0x50   :  { %1720 = vmatpush2.bf16.msra.mxu1 %v3847_v43  ;;  %1680 = vmatprep.subr.bf16.mxu0 %v3848_v44  ;;  %v3914_v26 = vld [vmem:[#allocation2 + $0x444] ss:$16 sps:$4 sm:$0xff]   ;;  %v3912_v28 = vld [vmem:[#allocation2 + $0x440] ss:$16 sps:$4 sm:$0xff]  }
  0x51   :  { %1721 = vmatprep.subr.bf16.mxu1 %v3850_v45  ;;  %v3917_v27 = vld [vmem:[#allocation2 + $0x644] ss:$16 sps:$4 sm:$0xff]   ;;  %v3915_v29 = vld [vmem:[#allocation2 + $0x640] ss:$16 sps:$4 sm:$0xff]  }
  0x52   :  { %v3920_v30 = vld [vmem:[#allocation2 + $0x424] ss:$16 sps:$4 sm:$0xff]   ;;  %v3918_v34 = vld [vmem:[#allocation2 + $0x420] ss:$16 sps:$4 sm:$0xff]  }
  0x53   :  { %1681 = vmatpush2.bf16.msra.mxu0 %v3852_v49  ;;  %v3923_v31 = vld [vmem:[#allocation2 + $0x624] ss:$16 sps:$4 sm:$0xff]   ;;  %v3921_v35 = vld [vmem:[#allocation2 + $0x620] ss:$16 sps:$4 sm:$0xff]  }
  0x54   :  { %1722 = vmatpush2.bf16.msra.mxu1 %v3853_v50  ;;  %1682 = vmatprep.subr.bf16.mxu0 %v3854_v52  ;;  %v4539_v32 = vld [vmem:[%s4634_s0 + $0x10] sm:$0xff] }
  0x55   :  { %1723 = vmatprep.subr.bf16.mxu1 %v3856_v53  ;;  %v4548_v36 = vcombine.high %v4539_v32, %v4539_v32  ;;  %v3926_v38 = vld [vmem:[#allocation2 + $0x404] ss:$16 sps:$4 sm:$0xff]   ;;  %v3924_v40 = vld [vmem:[#allocation2 + $0x400] ss:$16 sps:$4 sm:$0xff]  }
  0x56   :  { %v3929_v39 = vld [vmem:[#allocation2 + $0x604] ss:$16 sps:$4 sm:$0xff]   ;;  %v3927_v41 = vld [vmem:[#allocation2 + $0x600] ss:$16 sps:$4 sm:$0xff]  }
  0x57   :  { %1683 = vmatpush2.bf16.msra.mxu0 %v3858_v54  ;;  %v3932_v42 = vld [vmem:[#allocation2 + $0x5e4] ss:$16 sps:$4 sm:$0xff]   ;;  %v3930_v44 = vld [vmem:[#allocation2 + $0x5e0] ss:$16 sps:$4 sm:$0xff]  }
  0x58   :  { %1724 = vmatpush2.bf16.msra.mxu1 %v3859_v55  ;;  %1684 = vmatprep.subr.bf16.mxu0 %v3860_v56  ;;  %v3935_v43 = vld [vmem:[#allocation2 + $0x7e4] ss:$16 sps:$4 sm:$0xff]   ;;  %v3933_v45 = vld [vmem:[#allocation2 + $0x7e0] ss:$16 sps:$4 sm:$0xff]  }
  0x59   :  { %1725 = vmatprep.subr.bf16.mxu1 %v3862_v57  ;;  %v3938_v46 = vld [vmem:[#allocation2 + $0x5c4] ss:$16 sps:$4 sm:$0xff]   ;;  %v3936_v49 = vld [vmem:[#allocation2 + $0x5c0] ss:$16 sps:$4 sm:$0xff]  }
  0x5a   :  { %v3941_v48 = vld [vmem:[#allocation2 + $0x7c4] ss:$16 sps:$4 sm:$0xff]   ;;  %v3939_v50 = vld [vmem:[#allocation2 + $0x7c0] ss:$16 sps:$4 sm:$0xff]  }
  0x5b   :  { %1685 = vmatpush2.bf16.msra.mxu0 %v3864_v58  ;;  %v3944_v52 = vld [vmem:[#allocation2 + $0x5a4] ss:$16 sps:$4 sm:$0xff]   ;;  %v3942_v54 = vld [vmem:[#allocation2 + $0x5a0] ss:$16 sps:$4 sm:$0xff]  }
  0x5c   :  { %1726 = vmatpush2.bf16.msra.mxu1 %v3865_v59  ;;  %1686 = vmatprep.subr.bf16.mxu0 %v3866_v60  ;;  %v3947_v53 = vld [vmem:[#allocation2 + $0x7a4] ss:$16 sps:$4 sm:$0xff]   ;;  %v3945_v55 = vld [vmem:[#allocation2 + $0x7a0] ss:$16 sps:$4 sm:$0xff]  }
  0x5d   :  { %1727 = vmatprep.subr.bf16.mxu1 %v3868_v61  ;;  %v3950_v56 = vld [vmem:[#allocation2 + $0x584] ss:$16 sps:$4 sm:$0xff]   ;;  %v3948_v58 = vld [vmem:[#allocation2 + $0x580] ss:$16 sps:$4 sm:$0xff]  }
  0x5e   :  { %v3953_v57 = vld [vmem:[#allocation2 + $0x784] ss:$16 sps:$4 sm:$0xff]   ;;  %v3951_v59 = vld [vmem:[#allocation2 + $0x780] ss:$16 sps:$4 sm:$0xff]  }
  0x5f   :  { %1687 = vmatpush2.bf16.msra.mxu0 %v3870_v62  ;;  %v3956_v60 = vld [vmem:[#allocation2 + $0x564] ss:$16 sps:$4 sm:$0xff]   ;;  %v3954_v62 = vld [vmem:[#allocation2 + $0x560] ss:$16 sps:$4 sm:$0xff]  }
  0x60   :  { %1728 = vmatpush2.bf16.msra.mxu1 %v3871_v63  ;;  %1688 = vmatprep.subr.bf16.mxu0 %v3872_v0  ;;  %v3959_v61 = vld [vmem:[#allocation2 + $0x764] ss:$16 sps:$4 sm:$0xff]   ;;  %v3957_v63 = vld [vmem:[#allocation2 + $0x760] ss:$16 sps:$4 sm:$0xff]  }
  0x61   :  { %1729 = vmatprep.subr.bf16.mxu1 %v3874_v1  ;;  %v3962_v0 = vld [vmem:[#allocation2 + $0x544] ss:$16 sps:$4 sm:$0xff]  }
  0x62   :  { %v3965_v1 = vld [vmem:[#allocation2 + $0x744] ss:$16 sps:$4 sm:$0xff]  }
  0x63   :  { %1689 = vmatpush2.bf16.msra.mxu0 %v3876_v2  ;;  %v3960_v2 = vld [vmem:[#allocation2 + $0x540] ss:$16 sps:$4 sm:$0xff]  }
  0x64   :  { %1730 = vmatpush2.bf16.msra.mxu1 %v3877_v3  ;;  %1740 = vmatprep.subr.bf16.mxu0 %v3884_v4  ;;  %v3963_v3 = vld [vmem:[#allocation2 + $0x740] ss:$16 sps:$4 sm:$0xff]   ;;  %v3968_v4 = vld [vmem:[#allocation2 + $0x524] ss:$16 sps:$4 sm:$0xff]  }
  0x65   :  { %1781 = vmatprep.subr.bf16.mxu1 %v3887_v5  ;;  %v3971_v5 = vld [vmem:[#allocation2 + $0x724] ss:$16 sps:$4 sm:$0xff]  }
  0x66   :  { %1691 = vmatmul.mubr.bf16.vlgmr.msra.gmra.mxu0 %v4530_v6 }
  0x67   :  { %1732 = vmatmul.mubr.bf16.vlgmr.msra.gmra.mxu1 %v4532_v7  ;;  %1741 = vmatpush1.bf16.msra.mxu0 %v3882_v8  ;;  %v3966_v8 = vld [vmem:[#allocation2 + $0x520] ss:$16 sps:$4 sm:$0xff]  }
  0x68   :  { %1782 = vmatpush1.bf16.msra.mxu1 %v3885_v9  ;;  %1742 = vmatprep.subr.bf16.mxu0 %v3890_v10  ;;  %v3969_v9 = vld [vmem:[#allocation2 + $0x720] ss:$16 sps:$4 sm:$0xff]   ;;  %v3974_v10 = vld [vmem:[#allocation2 + $0x504] ss:$16 sps:$4 sm:$0xff]  }
  0x69   :  { %1783 = vmatprep.subr.bf16.mxu1 %v3893_v11  ;;  %1772 = vmatprep.mubr.bf16.mxu0 %v4548_v36  ;;  %v3977_v11 = vld [vmem:[#allocation2 + $0x704] ss:$16 sps:$4 sm:$0xff]  }
  0x6a   :  { %1813 = vmatprep.mubr.bf16.mxu1 %v4552_v37 }
  0x6b   :  { %1743 = vmatpush1.bf16.msra.mxu0 %v3888_v12  ;;  %v3972_v12 = vld [vmem:[#allocation2 + $0x500] ss:$16 sps:$4 sm:$0xff]  }
  0x6c   :  { %1784 = vmatpush1.bf16.msra.mxu1 %v3891_v13  ;;  %1744 = vmatprep.subr.bf16.mxu0 %v3896_v14  ;;  %v3975_v13 = vld [vmem:[#allocation2 + $0x700] ss:$16 sps:$4 sm:$0xff]   ;;  %v3984_v14 = vld [vmem:[#allocation2 + $0xec] ss:$16 sps:$4 sm:$0xff]  }
  0x6d   :  { %1785 = vmatprep.subr.bf16.mxu1 %v3899_v15  ;;  %v3987_v15 = vld [vmem:[#allocation2 + $0x2ec] ss:$16 sps:$4 sm:$0xff]  }
  0x6f   :  { %1745 = vmatpush1.bf16.msra.mxu0 %v3894_v16  ;;  %v4558_v16 = vcombine.low %v4539_v32, %v4539_v32  ;;  %v4008_v32 = vld [vmem:[#allocation2 + $0x6c] ss:$16 sps:$4 sm:$0xff]  }
  0x70   :  { %1786 = vmatpush1.bf16.msra.mxu1 %v3897_v17  ;;  %1746 = vmatprep.subr.bf16.mxu0 %v3902_v18  ;;  %v4562_v17 = vcombine.low %v4544_v33, %v4544_v33  ;;  %v3982_v18 = vld [vmem:[#allocation2 + $0xe8] ss:$16 sps:$4 sm:$0xff]   ;;  %v4011_v33 = vld [vmem:[#allocation2 + $0x26c] ss:$16 sps:$4 sm:$0xff]  }
  0x71   :  { %1787 = vmatprep.subr.bf16.mxu1 %v3905_v19  ;;  %v3985_v19 = vld [vmem:[#allocation2 + $0x2e8] ss:$16 sps:$4 sm:$0xff]  }
  0x73   :  { %1747 = vmatpush1.bf16.msra.mxu0 %v3900_v20  ;;  %v3990_v20 = vld [vmem:[#allocation2 + $0xcc] ss:$16 sps:$4 sm:$0xff]  }
  0x74   :  { %1788 = vmatpush1.bf16.msra.mxu1 %v3903_v21  ;;  %1748 = vmatprep.subr.bf16.mxu0 %v3908_v22  ;;  %v3993_v21 = vld [vmem:[#allocation2 + $0x2cc] ss:$16 sps:$4 sm:$0xff]   ;;  %v3988_v22 = vld [vmem:[#allocation2 + $0xc8] ss:$16 sps:$4 sm:$0xff]  }
  0x75   :  { %1789 = vmatprep.subr.bf16.mxu1 %v3911_v23  ;;  %v3991_v23 = vld [vmem:[#allocation2 + $0x2c8] ss:$16 sps:$4 sm:$0xff]  }
  0x77   :  { %1749 = vmatpush1.bf16.msra.mxu0 %v3906_v24  ;;  %v3996_v24 = vld [vmem:[#allocation2 + $0xac] ss:$16 sps:$4 sm:$0xff]  }
  0x78   :  { %1790 = vmatpush1.bf16.msra.mxu1 %v3909_v25  ;;  %1750 = vmatprep.subr.bf16.mxu0 %v3914_v26  ;;  %v3999_v25 = vld [vmem:[#allocation2 + $0x2ac] ss:$16 sps:$4 sm:$0xff]   ;;  %v3994_v26 = vld [vmem:[#allocation2 + $0xa8] ss:$16 sps:$4 sm:$0xff]  }
  0x79   :  { %1791 = vmatprep.subr.bf16.mxu1 %v3917_v27  ;;  %v3997_v27 = vld [vmem:[#allocation2 + $0x2a8] ss:$16 sps:$4 sm:$0xff]  }
  0x7b   :  { %1751 = vmatpush1.bf16.msra.mxu0 %v3912_v28  ;;  %v4002_v28 = vld [vmem:[#allocation2 + $0x8c] ss:$16 sps:$4 sm:$0xff]  }
  0x7c   :  { %1792 = vmatpush1.bf16.msra.mxu1 %v3915_v29  ;;  %1752 = vmatprep.subr.bf16.mxu0 %v3920_v30  ;;  %v4005_v29 = vld [vmem:[#allocation2 + $0x28c] ss:$16 sps:$4 sm:$0xff]   ;;  %v4000_v30 = vld [vmem:[#allocation2 + $0x88] ss:$16 sps:$4 sm:$0xff]  }
  0x7d   :  { %1793 = vmatprep.subr.bf16.mxu1 %v3923_v31  ;;  %v4003_v31 = vld [vmem:[#allocation2 + $0x288] ss:$16 sps:$4 sm:$0xff]  }
  0x7f   :  { %1753 = vmatpush1.bf16.msra.mxu0 %v3918_v34  ;;  %v4006_v34 = vld [vmem:[#allocation2 + $0x68] ss:$16 sps:$4 sm:$0xff]  }
  0x80   :  { %1794 = vmatpush1.bf16.msra.mxu1 %v3921_v35  ;;  %1754 = vmatprep.subr.bf16.mxu0 %v3926_v38  ;;  %v4017_v35 = vld [vmem:[#allocation2 + $0x24c] ss:$16 sps:$4 sm:$0xff]   ;;  %v4012_v38 = vld [vmem:[#allocation2 + $0x48] ss:$16 sps:$4 sm:$0xff]  }
  0x81   :  { %1795 = vmatprep.subr.bf16.mxu1 %v3929_v39  ;;  %v4015_v39 = vld [vmem:[#allocation2 + $0x248] ss:$16 sps:$4 sm:$0xff]  }
  0x83   :  { %1755 = vmatpush1.bf16.msra.mxu0 %v3924_v40  ;;  %v4020_v40 = vld [vmem:[#allocation2 + $0x2c] ss:$16 sps:$4 sm:$0xff]  }
  0x84   :  { %1796 = vmatpush1.bf16.msra.mxu1 %v3927_v41  ;;  %1756 = vmatprep.subr.bf16.mxu0 %v3932_v42  ;;  %v4023_v41 = vld [vmem:[#allocation2 + $0x22c] ss:$16 sps:$4 sm:$0xff]   ;;  %v4018_v42 = vld [vmem:[#allocation2 + $0x28] ss:$16 sps:$4 sm:$0xff]  }
  0x85   :  { %1797 = vmatprep.subr.bf16.mxu1 %v3935_v43  ;;  %v4021_v43 = vld [vmem:[#allocation2 + $0x228] ss:$16 sps:$4 sm:$0xff]  }
  0x87   :  { %1757 = vmatpush2.bf16.msra.mxu0 %v3930_v44  ;;  %v4026_v44 = vld [vmem:[#allocation2 + $0xc] ss:$16 sps:$4 sm:$0xff]  }
  0x88   :  { %1798 = vmatpush2.bf16.msra.mxu1 %v3933_v45  ;;  %1758 = vmatprep.subr.bf16.mxu0 %v3938_v46  ;;  %v4029_v45 = vld [vmem:[#allocation2 + $0x20c] ss:$16 sps:$4 sm:$0xff]   ;;  %v4024_v46 = vld [vmem:[#allocation2 + $0x8] ss:$16 sps:$4 sm:$0xff]  }
  0x89   :  { %1799 = vmatprep.subr.bf16.mxu1 %v3941_v48  ;;  %v4027_v48 = vld [vmem:[#allocation2 + $0x208] ss:$16 sps:$4 sm:$0xff]  }
  0x8b   :  { %1759 = vmatpush2.bf16.msra.mxu0 %v3936_v49  ;;  %v4032_v49 = vld [vmem:[#allocation2 + $0x1ec] ss:$16 sps:$4 sm:$0xff]  }
  0x8c   :  { %1800 = vmatpush2.bf16.msra.mxu1 %v3939_v50  ;;  %1760 = vmatprep.subr.bf16.mxu0 %v3944_v52  ;;  %v4035_v50 = vld [vmem:[#allocation2 + $0x3ec] ss:$16 sps:$4 sm:$0xff]   ;;  %v4030_v52 = vld [vmem:[#allocation2 + $0x1e8] ss:$16 sps:$4 sm:$0xff]  }
  0x8d   :  { %1801 = vmatprep.subr.bf16.mxu1 %v3947_v53  ;;  %v4033_v53 = vld [vmem:[#allocation2 + $0x3e8] ss:$16 sps:$4 sm:$0xff]  }
  0x8f   :  { %1761 = vmatpush2.bf16.msra.mxu0 %v3942_v54  ;;  %v4038_v54 = vld [vmem:[#allocation2 + $0x1cc] ss:$16 sps:$4 sm:$0xff]  }
  0x90   :  { %1802 = vmatpush2.bf16.msra.mxu1 %v3945_v55  ;;  %1762 = vmatprep.subr.bf16.mxu0 %v3950_v56  ;;  %v4041_v55 = vld [vmem:[#allocation2 + $0x3cc] ss:$16 sps:$4 sm:$0xff]   ;;  %v4036_v56 = vld [vmem:[#allocation2 + $0x1c8] ss:$16 sps:$4 sm:$0xff]  }
  0x91   :  { %1803 = vmatprep.subr.bf16.mxu1 %v3953_v57  ;;  %v4039_v57 = vld [vmem:[#allocation2 + $0x3c8] ss:$16 sps:$4 sm:$0xff]  }
  0x93   :  { %1763 = vmatpush2.bf16.msra.mxu0 %v3948_v58  ;;  %v4044_v58 = vld [vmem:[#allocation2 + $0x1ac] ss:$16 sps:$4 sm:$0xff]  }
  0x94   :  { %1804 = vmatpush2.bf16.msra.mxu1 %v3951_v59  ;;  %1764 = vmatprep.subr.bf16.mxu0 %v3956_v60  ;;  %v4047_v59 = vld [vmem:[#allocation2 + $0x3ac] ss:$16 sps:$4 sm:$0xff]   ;;  %v4042_v60 = vld [vmem:[#allocation2 + $0x1a8] ss:$16 sps:$4 sm:$0xff]  }
  0x95   :  { %1805 = vmatprep.subr.bf16.mxu1 %v3959_v61  ;;  %v4045_v61 = vld [vmem:[#allocation2 + $0x3a8] ss:$16 sps:$4 sm:$0xff]  }
  0x97   :  { %1765 = vmatpush2.bf16.msra.mxu0 %v3954_v62  ;;  %v4050_v62 = vld [vmem:[#allocation2 + $0x18c] ss:$16 sps:$4 sm:$0xff]  }
  0x98   :  { %1806 = vmatpush2.bf16.msra.mxu1 %v3957_v63  ;;  %1766 = vmatprep.subr.bf16.mxu0 %v3962_v0  ;;  %v4053_v63 = vld [vmem:[#allocation2 + $0x38c] ss:$16 sps:$4 sm:$0xff]   ;;  %v4048_v0 = vld [vmem:[#allocation2 + $0x188] ss:$16 sps:$4 sm:$0xff]  }
  0x99   :  { %1807 = vmatprep.subr.bf16.mxu1 %v3965_v1  ;;  %v4051_v1 = vld [vmem:[#allocation2 + $0x388] ss:$16 sps:$4 sm:$0xff]  }
  0x9b   :  { %1767 = vmatpush2.bf16.msra.mxu0 %v3960_v2  ;;  %v4056_v2 = vld [vmem:[#allocation2 + $0x16c] ss:$16 sps:$4 sm:$0xff]  }
  0x9c   :  { %1808 = vmatpush2.bf16.msra.mxu1 %v3963_v3  ;;  %1768 = vmatprep.subr.bf16.mxu0 %v3968_v4  ;;  %v4059_v3 = vld [vmem:[#allocation2 + $0x36c] ss:$16 sps:$4 sm:$0xff]   ;;  %v4054_v4 = vld [vmem:[#allocation2 + $0x168] ss:$16 sps:$4 sm:$0xff]  }
  0x9d   :  { %1809 = vmatprep.subr.bf16.mxu1 %v3971_v5  ;;  %v4057_v5 = vld [vmem:[#allocation2 + $0x368] ss:$16 sps:$4 sm:$0xff]  }
  0x9f   :  { %1769 = vmatpush2.bf16.msra.mxu0 %v3966_v8  ;;  %v4062_v8 = vld [vmem:[#allocation2 + $0x14c] ss:$16 sps:$4 sm:$0xff]  }
  0xa0   :  { %1810 = vmatpush2.bf16.msra.mxu1 %v3969_v9  ;;  %1770 = vmatprep.subr.bf16.mxu0 %v3974_v10  ;;  %v4065_v9 = vld [vmem:[#allocation2 + $0x34c] ss:$16 sps:$4 sm:$0xff]   ;;  %v4060_v10 = vld [vmem:[#allocation2 + $0x148] ss:$16 sps:$4 sm:$0xff]  }
  0xa1   :  { %1811 = vmatprep.subr.bf16.mxu1 %v3977_v11  ;;  %v4063_v11 = vld [vmem:[#allocation2 + $0x348] ss:$16 sps:$4 sm:$0xff]  }
  0xa3   :  { %1771 = vmatpush2.bf16.msra.mxu0 %v3972_v12  ;;  %v4068_v12 = vld [vmem:[#allocation2 + $0x12c] ss:$16 sps:$4 sm:$0xff]  }
  0xa4   :  { %1812 = vmatpush2.bf16.msra.mxu1 %v3975_v13  ;;  %1822 = vmatprep.subr.bf16.mxu0 %v3984_v14  ;;  %v4071_v13 = vld [vmem:[#allocation2 + $0x32c] ss:$16 sps:$4 sm:$0xff]   ;;  %v4066_v14 = vld [vmem:[#allocation2 + $0x128] ss:$16 sps:$4 sm:$0xff]  }
  0xa5   :  { %1863 = vmatprep.subr.bf16.mxu1 %v3987_v15  ;;  %v4069_v15 = vld [vmem:[#allocation2 + $0x328] ss:$16 sps:$4 sm:$0xff]  }
  0xa6   :  { %1773 = vmatmul.mubr.bf16.vlgmr.msra.gmra.mxu0 %v4558_v16 }
  0xa7   :  { %1814 = vmatmul.mubr.bf16.vlgmr.msra.gmra.mxu1 %v4562_v17  ;;  %1823 = vmatpush1.bf16.msra.mxu0 %v3982_v18  ;;  %v4074_v18 = vld [vmem:[#allocation2 + $0x10c] ss:$16 sps:$4 sm:$0xff]  }
  0xa8   :  { %1864 = vmatpush1.bf16.msra.mxu1 %v3985_v19  ;;  %1824 = vmatprep.subr.bf16.mxu0 %v3990_v20  ;;  %v4077_v19 = vld [vmem:[#allocation2 + $0x30c] ss:$16 sps:$4 sm:$0xff]   ;;  %v4072_v20 = vld [vmem:[#allocation2 + $0x108] ss:$16 sps:$4 sm:$0xff]  }
  0xa9   :  { %1865 = vmatprep.subr.bf16.mxu1 %v3993_v21  ;;  %1854 = vmatprep.mubr.bf16.mxu0 %v4521_v47  ;;  %v4009_v47 = vld [vmem:[#allocation2 + $0x268] ss:$16 sps:$4 sm:$0xff]  }
  0xaa   :  { %1895 = vmatprep.mubr.bf16.mxu1 %v4526_v51  ;;  %v4014_v51 = vld [vmem:[#allocation2 + $0x4c] ss:$16 sps:$4 sm:$0xff]   ;;  %v4075_v21 = vld [vmem:[#allocation2 + $0x308] ss:$16 sps:$4 sm:$0xff]  }
  0xab   :  { %1825 = vmatpush1.bf16.msra.mxu0 %v3988_v22  ;;  %v4080_v22 = vld [vmem:[#allocation2 + $0x4ec] ss:$16 sps:$4 sm:$0xff]  }
  0xac   :  { %1866 = vmatpush1.bf16.msra.mxu1 %v3991_v23  ;;  %1826 = vmatprep.subr.bf16.mxu0 %v3996_v24  ;;  %v4083_v23 = vld [vmem:[#allocation2 + $0x6ec] ss:$16 sps:$4 sm:$0xff]   ;;  %v4078_v24 = vld [vmem:[#allocation2 + $0x4e8] ss:$16 sps:$4 sm:$0xff]  }
  0xad   :  { %1867 = vmatprep.subr.bf16.mxu1 %v3999_v25  ;;  %v4081_v25 = vld [vmem:[#allocation2 + $0x6e8] ss:$16 sps:$4 sm:$0xff]  }
  0xaf   :  { %1827 = vmatpush1.bf16.msra.mxu0 %v3994_v26  ;;  %v4086_v26 = vld [vmem:[#allocation2 + $0x4cc] ss:$16 sps:$4 sm:$0xff]  }
  0xb0   :  { %1868 = vmatpush1.bf16.msra.mxu1 %v3997_v27  ;;  %1828 = vmatprep.subr.bf16.mxu0 %v4002_v28  ;;  %v4089_v27 = vld [vmem:[#allocation2 + $0x6cc] ss:$16 sps:$4 sm:$0xff]   ;;  %v4084_v28 = vld [vmem:[#allocation2 + $0x4c8] ss:$16 sps:$4 sm:$0xff]  }
  0xb1   :  { %1869 = vmatprep.subr.bf16.mxu1 %v4005_v29  ;;  %v4087_v29 = vld [vmem:[#allocation2 + $0x6c8] ss:$16 sps:$4 sm:$0xff]  }
  0xb3   :  { %1829 = vmatpush1.bf16.msra.mxu0 %v4000_v30  ;;  %v4092_v30 = vld [vmem:[#allocation2 + $0x4ac] ss:$16 sps:$4 sm:$0xff]  }
  0xb4   :  { %1870 = vmatpush1.bf16.msra.mxu1 %v4003_v31  ;;  %1830 = vmatprep.subr.bf16.mxu0 %v4008_v32  ;;  %v4095_v31 = vld [vmem:[#allocation2 + $0x6ac] ss:$16 sps:$4 sm:$0xff]   ;;  %v4090_v32 = vld [vmem:[#allocation2 + $0x4a8] ss:$16 sps:$4 sm:$0xff]  }
  0xb5   :  { %1871 = vmatprep.subr.bf16.mxu1 %v4011_v33  ;;  %v4093_v33 = vld [vmem:[#allocation2 + $0x6a8] ss:$16 sps:$4 sm:$0xff]  }
  0xb7   :  { %1831 = vmatpush1.bf16.msra.mxu0 %v4006_v34  ;;  %v4098_v34 = vld [vmem:[#allocation2 + $0x48c] ss:$16 sps:$4 sm:$0xff]  }
  0xb8   :  { %1872 = vmatpush1.bf16.msra.mxu1 %v4009_v47  ;;  %1832 = vmatprep.subr.bf16.mxu0 %v4014_v51  ;;  %v4096_v47 = vld [vmem:[#allocation2 + $0x488] ss:$16 sps:$4 sm:$0xff]   ;;  %v4104_v51 = vld [vmem:[#allocation2 + $0x46c] ss:$16 sps:$4 sm:$0xff]  }
  0xb9   :  { %1873 = vmatprep.subr.bf16.mxu1 %v4017_v35  ;;  %v4107_v35 = vld [vmem:[#allocation2 + $0x66c] ss:$16 sps:$4 sm:$0xff]  }
  0xbb   :  { %1833 = vmatpush1.bf16.msra.mxu0 %v4012_v38  ;;  %v4102_v38 = vld [vmem:[#allocation2 + $0x468] ss:$16 sps:$4 sm:$0xff]  }
  0xbc   :  { %1874 = vmatpush1.bf16.msra.mxu1 %v4015_v39  ;;  %1834 = vmatprep.subr.bf16.mxu0 %v4020_v40  ;;  %v4105_v39 = vld [vmem:[#allocation2 + $0x668] ss:$16 sps:$4 sm:$0xff]  }
  0xbd   :  { %1875 = vmatprep.subr.bf16.mxu1 %v4023_v41  ;;  %v4108_v40 = vld [vmem:[#allocation2 + $0x448] ss:$16 sps:$4 sm:$0xff]  }
  0xbe   :  { %v4111_v41 = vld [vmem:[#allocation2 + $0x648] ss:$16 sps:$4 sm:$0xff]  }
  0xbf   :  { %1835 = vmatpush1.bf16.msra.mxu0 %v4018_v42  ;;  %v4116_v42 = vld [vmem:[#allocation2 + $0x42c] ss:$16 sps:$4 sm:$0xff]  }
  0xc0   :  { %1876 = vmatpush1.bf16.msra.mxu1 %v4021_v43  ;;  %1836 = vmatprep.subr.bf16.mxu0 %v4026_v44  ;;  %v4119_v43 = vld [vmem:[#allocation2 + $0x62c] ss:$16 sps:$4 sm:$0xff]   ;;  %v4114_v44 = vld [vmem:[#allocation2 + $0x428] ss:$16 sps:$4 sm:$0xff]  }
  0xc1   :  { %1877 = vmatprep.subr.bf16.mxu1 %v4029_v45  ;;  %v4117_v45 = vld [vmem:[#allocation2 + $0x628] ss:$16 sps:$4 sm:$0xff]  }
  0xc3   :  { %1837 = vmatpush1.bf16.msra.mxu0 %v4024_v46  ;;  %v4122_v46 = vld [vmem:[#allocation2 + $0x40c] ss:$16 sps:$4 sm:$0xff]  }
  0xc4   :  { %1878 = vmatpush1.bf16.msra.mxu1 %v4027_v48  ;;  %1838 = vmatprep.subr.bf16.mxu0 %v4032_v49  ;;  %v4125_v48 = vld [vmem:[#allocation2 + $0x60c] ss:$16 sps:$4 sm:$0xff]   ;;  %v4120_v49 = vld [vmem:[#allocation2 + $0x408] ss:$16 sps:$4 sm:$0xff]  }
  0xc5   :  { %1879 = vmatprep.subr.bf16.mxu1 %v4035_v50  ;;  %v4123_v50 = vld [vmem:[#allocation2 + $0x608] ss:$16 sps:$4 sm:$0xff]  }
  0xc7   :  { %1839 = vmatpush2.bf16.msra.mxu0 %v4030_v52  ;;  %v4128_v52 = vld [vmem:[#allocation2 + $0x5ec] ss:$16 sps:$4 sm:$0xff]  }
  0xc8   :  { %1880 = vmatpush2.bf16.msra.mxu1 %v4033_v53  ;;  %1840 = vmatprep.subr.bf16.mxu0 %v4038_v54  ;;  %v4131_v53 = vld [vmem:[#allocation2 + $0x7ec] ss:$16 sps:$4 sm:$0xff]   ;;  %v4126_v54 = vld [vmem:[#allocation2 + $0x5e8] ss:$16 sps:$4 sm:$0xff]  }
  0xc9   :  { %1881 = vmatprep.subr.bf16.mxu1 %v4041_v55  ;;  %v4129_v55 = vld [vmem:[#allocation2 + $0x7e8] ss:$16 sps:$4 sm:$0xff]  }
  0xcb   :  { %1841 = vmatpush2.bf16.msra.mxu0 %v4036_v56  ;;  %v4134_v56 = vld [vmem:[#allocation2 + $0x5cc] ss:$16 sps:$4 sm:$0xff]  }
  0xcc   :  { %1882 = vmatpush2.bf16.msra.mxu1 %v4039_v57  ;;  %1842 = vmatprep.subr.bf16.mxu0 %v4044_v58  ;;  %v4137_v57 = vld [vmem:[#allocation2 + $0x7cc] ss:$16 sps:$4 sm:$0xff]   ;;  %v4132_v58 = vld [vmem:[#allocation2 + $0x5c8] ss:$16 sps:$4 sm:$0xff]  }
  0xcd   :  { %1883 = vmatprep.subr.bf16.mxu1 %v4047_v59  ;;  %v4135_v59 = vld [vmem:[#allocation2 + $0x7c8] ss:$16 sps:$4 sm:$0xff]  }
  0xcf   :  { %1843 = vmatpush2.bf16.msra.mxu0 %v4042_v60  ;;  %v4140_v60 = vld [vmem:[#allocation2 + $0x5ac] ss:$16 sps:$4 sm:$0xff]  }
  0xd0   :  { %1884 = vmatpush2.bf16.msra.mxu1 %v4045_v61  ;;  %1844 = vmatprep.subr.bf16.mxu0 %v4050_v62  ;;  %v4143_v61 = vld [vmem:[#allocation2 + $0x7ac] ss:$16 sps:$4 sm:$0xff]   ;;  %v4138_v62 = vld [vmem:[#allocation2 + $0x5a8] ss:$16 sps:$4 sm:$0xff]  }
  0xd1   :  { %1885 = vmatprep.subr.bf16.mxu1 %v4053_v63  ;;  %v4141_v63 = vld [vmem:[#allocation2 + $0x7a8] ss:$16 sps:$4 sm:$0xff]  }
  0xd3   :  { %1845 = vmatpush2.bf16.msra.mxu0 %v4048_v0  ;;  %v4146_v0 = vld [vmem:[#allocation2 + $0x58c] ss:$16 sps:$4 sm:$0xff]  }
  0xd4   :  { %1886 = vmatpush2.bf16.msra.mxu1 %v4051_v1  ;;  %1846 = vmatprep.subr.bf16.mxu0 %v4056_v2  ;;  %v4149_v1 = vld [vmem:[#allocation2 + $0x78c] ss:$16 sps:$4 sm:$0xff]   ;;  %v4144_v2 = vld [vmem:[#allocation2 + $0x588] ss:$16 sps:$4 sm:$0xff]  }
  0xd5   :  { %1887 = vmatprep.subr.bf16.mxu1 %v4059_v3  ;;  %v4147_v3 = vld [vmem:[#allocation2 + $0x788] ss:$16 sps:$4 sm:$0xff]  }
  0xd7   :  { %1847 = vmatpush2.bf16.msra.mxu0 %v4054_v4  ;;  %v4152_v4 = vld [vmem:[#allocation2 + $0x56c] ss:$16 sps:$4 sm:$0xff]  }
  0xd8   :  { %1888 = vmatpush2.bf16.msra.mxu1 %v4057_v5  ;;  %1848 = vmatprep.subr.bf16.mxu0 %v4062_v8  ;;  %v4155_v5 = vld [vmem:[#allocation2 + $0x76c] ss:$16 sps:$4 sm:$0xff]   ;;  %v4150_v8 = vld [vmem:[#allocation2 + $0x568] ss:$16 sps:$4 sm:$0xff]  }
  0xd9   :  { %1889 = vmatprep.subr.bf16.mxu1 %v4065_v9  ;;  %v4153_v9 = vld [vmem:[#allocation2 + $0x768] ss:$16 sps:$4 sm:$0xff]  }
  0xdb   :  { %1849 = vmatpush2.bf16.msra.mxu0 %v4060_v10  ;;  %v4158_v10 = vld [vmem:[#allocation2 + $0x54c] ss:$16 sps:$4 sm:$0xff]  }
  0xdc   :  { %1890 = vmatpush2.bf16.msra.mxu1 %v4063_v11  ;;  %1850 = vmatprep.subr.bf16.mxu0 %v4068_v12  ;;  %v4161_v11 = vld [vmem:[#allocation2 + $0x74c] ss:$16 sps:$4 sm:$0xff]   ;;  %v4156_v12 = vld [vmem:[#allocation2 + $0x548] ss:$16 sps:$4 sm:$0xff]  }
  0xdd   :  { %1891 = vmatprep.subr.bf16.mxu1 %v4071_v13  ;;  %v4159_v13 = vld [vmem:[#allocation2 + $0x748] ss:$16 sps:$4 sm:$0xff]  }
  0xdf   :  { %1851 = vmatpush2.bf16.msra.mxu0 %v4066_v14  ;;  %v4164_v14 = vld [vmem:[#allocation2 + $0x52c] ss:$16 sps:$4 sm:$0xff]  }
  0xe0   :  { %1892 = vmatpush2.bf16.msra.mxu1 %v4069_v15  ;;  %1852 = vmatprep.subr.bf16.mxu0 %v4074_v18  ;;  %v4167_v15 = vld [vmem:[#allocation2 + $0x72c] ss:$16 sps:$4 sm:$0xff]   ;;  %v4162_v18 = vld [vmem:[#allocation2 + $0x528] ss:$16 sps:$4 sm:$0xff]  }
  0xe1   :  { %1893 = vmatprep.subr.bf16.mxu1 %v4077_v19  ;;  %v4165_v19 = vld [vmem:[#allocation2 + $0x728] ss:$16 sps:$4 sm:$0xff]  }
  0xe3   :  { %1853 = vmatpush2.bf16.msra.mxu0 %v4072_v20  ;;  %v4170_v20 = vld [vmem:[#allocation2 + $0x50c] ss:$16 sps:$4 sm:$0xff]  }
  0xe4   :  { %1894 = vmatpush2.bf16.msra.mxu1 %v4075_v21  ;;  %1904 = vmatprep.subr.bf16.mxu0 %v4080_v22  ;;  %v4173_v21 = vld [vmem:[#allocation2 + $0x70c] ss:$16 sps:$4 sm:$0xff]   ;;  %v4168_v22 = vld [vmem:[#allocation2 + $0x508] ss:$16 sps:$4 sm:$0xff]  }
  0xe5   :  { %1945 = vmatprep.subr.bf16.mxu1 %v4083_v23  ;;  %v4171_v23 = vld [vmem:[#allocation2 + $0x708] ss:$16 sps:$4 sm:$0xff]  }
  0xe6   :  { %1855 = vmatmul.mubr.bf16.vlgmr.msra.gmra.mxu0 %v4530_v6  ;;  %v4101_v6 = vld [vmem:[#allocation2 + $0x68c] ss:$16 sps:$4 sm:$0xff]  }
  0xe7   :  { %1896 = vmatmul.mubr.bf16.vlgmr.msra.gmra.mxu1 %v4532_v7  ;;  %1905 = vmatpush1.bf16.msra.mxu0 %v4078_v24  ;;  %v4099_v7 = vld [vmem:[#allocation2 + $0x688] ss:$16 sps:$4 sm:$0xff]   ;;  %v4176_v24 = vld [vmem:[#allocation4 + $0xe4] ss:$16 sps:$4 sm:$0xff]  }
  0xe8   :  { %1946 = vmatpush1.bf16.msra.mxu1 %v4081_v25  ;;  %1906 = vmatprep.subr.bf16.mxu0 %v4086_v26  ;;  %v4174_v25 = vld [vmem:[#allocation4 + $0xe0] ss:$16 sps:$4 sm:$0xff]   ;;  %v4179_v26 = vld [vmem:[#allocation4 + $0xc4] ss:$16 sps:$4 sm:$0xff]  }
  0xe9   :  { %1947 = vmatprep.subr.bf16.mxu1 %v4089_v27  ;;  %1936 = vmatprep.mubr.bf16.mxu0 %v4548_v36  ;;  %v4110_v36 = vld [vmem:[#allocation2 + $0x44c] ss:$16 sps:$4 sm:$0xff]  }
  0xea   :  { %1977 = vmatprep.mubr.bf16.mxu1 %v4552_v37  ;;  %v4113_v37 = vld [vmem:[#allocation2 + $0x64c] ss:$16 sps:$4 sm:$0xff]  }
  0xeb   :  { %1907 = vmatpush1.bf16.msra.mxu0 %v4084_v28 }
  0xec   :  { %1948 = vmatpush1.bf16.msra.mxu1 %v4087_v29  ;;  %1908 = vmatprep.subr.bf16.mxu0 %v4092_v30  ;;  %v4177_v29 = vld [vmem:[#allocation4 + $0xc0] ss:$16 sps:$4 sm:$0xff]  }
  0xed   :  { %1949 = vmatprep.subr.bf16.mxu1 %v4095_v31 }
  0xef   :  { %1909 = vmatpush1.bf16.msra.mxu0 %v4090_v32  ;;  %v4182_v32 = vld [vmem:[#allocation4 + $0xa4] ss:$16 sps:$4 sm:$0xff]  }
  0xf0   :  { %1950 = vmatpush1.bf16.msra.mxu1 %v4093_v33  ;;  %1910 = vmatprep.subr.bf16.mxu0 %v4098_v34 }
  0xf1   :  { %1951 = vmatprep.subr.bf16.mxu1 %v4101_v6  ;;  %v4180_v6 = vld [vmem:[#allocation4 + $0xa0] ss:$16 sps:$4 sm:$0xff]  }
  0xf3   :  { %1911 = vmatpush1.bf16.msra.mxu0 %v4096_v47 }
  0xf4   :  { %1952 = vmatpush1.bf16.msra.mxu1 %v4099_v7  ;;  %1912 = vmatprep.subr.bf16.mxu0 %v4104_v51  ;;  %v4185_v51 = vld [vmem:[#allocation4 + $0x84] ss:$16 sps:$4 sm:$0xff]  }
  0xf5   :  { %1953 = vmatprep.subr.bf16.mxu1 %v4107_v35  ;;  %v4270_v35 = vld [vmem:[#allocation4 + $0x2e0] ss:$16 sps:$4 sm:$0xff]  }
  0xf7   :  { %1913 = vmatpush1.bf16.msra.mxu0 %v4102_v38  ;;  %v4188_v38 = vld [vmem:[#allocation4 + $0x64] ss:$16 sps:$4 sm:$0xff]  }
  0xf8   :  { %1954 = vmatpush1.bf16.msra.mxu1 %v4105_v39  ;;  %1914 = vmatprep.subr.bf16.mxu0 %v4110_v36  ;;  %v4273_v39 = vld [vmem:[#allocation4 + $0x2c0] ss:$16 sps:$4 sm:$0xff]   ;;  %v4275_v36 = vld [vmem:[#allocation4 + $0x2c4] ss:$16 sps:$4 sm:$0xff]  }
  0xf9   :  { %1955 = vmatprep.subr.bf16.mxu1 %v4113_v37  ;;  %v4186_v37 = vld [vmem:[#allocation4 + $0x60] ss:$16 sps:$4 sm:$0xff]  }
  0xfb   :  { %1915 = vmatpush1.bf16.msra.mxu0 %v4108_v40  ;;  %v4278_v40 = vld [vmem:[#allocation4 + $0x2a4] ss:$16 sps:$4 sm:$0xff]  }
  0xfc   :  { %1956 = vmatpush1.bf16.msra.mxu1 %v4111_v41  ;;  %1916 = vmatprep.subr.bf16.mxu0 %v4116_v42  ;;  %v4191_v41 = vld [vmem:[#allocation4 + $0x44] ss:$16 sps:$4 sm:$0xff]   ;;  %v4276_v42 = vld [vmem:[#allocation4 + $0x2a0] ss:$16 sps:$4 sm:$0xff]  }
  0xfd   :  { %1957 = vmatprep.subr.bf16.mxu1 %v4119_v43  ;;  %v4189_v43 = vld [vmem:[#allocation4 + $0x40] ss:$16 sps:$4 sm:$0xff]  }
  0xff   :  { %1917 = vmatpush1.bf16.msra.mxu0 %v4114_v44  ;;  %v4281_v44 = vld [vmem:[#allocation4 + $0x284] ss:$16 sps:$4 sm:$0xff]  }
 0x100   :  { %1958 = vmatpush1.bf16.msra.mxu1 %v4117_v45  ;;  %1918 = vmatprep.subr.bf16.mxu0 %v4122_v46  ;;  %v4194_v45 = vld [vmem:[#allocation4 + $0x24] ss:$16 sps:$4 sm:$0xff]   ;;  %v4279_v46 = vld [vmem:[#allocation4 + $0x280] ss:$16 sps:$4 sm:$0xff]  }
 0x101   :  { %1959 = vmatprep.subr.bf16.mxu1 %v4125_v48  ;;  %v4192_v48 = vld [vmem:[#allocation4 + $0x20] ss:$16 sps:$4 sm:$0xff]  }
 0x103   :  { %1919 = vmatpush1.bf16.msra.mxu0 %v4120_v49  ;;  %v4284_v49 = vld [vmem:[#allocation4 + $0x264] ss:$16 sps:$4 sm:$0xff]  }
 0x104   :  { %1960 = vmatpush1.bf16.msra.mxu1 %v4123_v50  ;;  %1920 = vmatprep.subr.bf16.mxu0 %v4128_v52  ;;  %v4197_v50 = vld [vmem:[#allocation4 + $0x4] ss:$16 sps:$4 sm:$0xff]   ;;  %v4282_v52 = vld [vmem:[#allocation4 + $0x260] ss:$16 sps:$4 sm:$0xff]  }
 0x105   :  { %1961 = vmatprep.subr.bf16.mxu1 %v4131_v53  ;;  %v4195_v53 = vld [vmem:[#allocation4] ss:$16 sps:$4 sm:$0xff]  }
 0x107   :  { %1921 = vmatpush2.bf16.msra.mxu0 %v4126_v54  ;;  %v4287_v54 = vld [vmem:[#allocation4 + $0x244] ss:$16 sps:$4 sm:$0xff]  }
 0x108   :  { %1962 = vmatpush2.bf16.msra.mxu1 %v4129_v55  ;;  %1922 = vmatprep.subr.bf16.mxu0 %v4134_v56  ;;  %v4200_v55 = vld [vmem:[#allocation4 + $0x1e4] ss:$16 sps:$4 sm:$0xff]   ;;  %v4285_v56 = vld [vmem:[#allocation4 + $0x240] ss:$16 sps:$4 sm:$0xff]  }
 0x109   :  { %1963 = vmatprep.subr.bf16.mxu1 %v4137_v57  ;;  %v4198_v57 = vld [vmem:[#allocation4 + $0x1e0] ss:$16 sps:$4 sm:$0xff]  }
 0x10b   :  { %1923 = vmatpush2.bf16.msra.mxu0 %v4132_v58  ;;  %v4290_v58 = vld [vmem:[#allocation4 + $0x224] ss:$16 sps:$4 sm:$0xff]  }
 0x10c   :  { %1964 = vmatpush2.bf16.msra.mxu1 %v4135_v59  ;;  %1924 = vmatprep.subr.bf16.mxu0 %v4140_v60  ;;  %v4203_v59 = vld [vmem:[#allocation4 + $0x1c4] ss:$16 sps:$4 sm:$0xff]   ;;  %v4288_v60 = vld [vmem:[#allocation4 + $0x220] ss:$16 sps:$4 sm:$0xff]  }
 0x10d   :  { %1965 = vmatprep.subr.bf16.mxu1 %v4143_v61  ;;  %v4201_v61 = vld [vmem:[#allocation4 + $0x1c0] ss:$16 sps:$4 sm:$0xff]  }
 0x10f   :  { %1925 = vmatpush2.bf16.msra.mxu0 %v4138_v62  ;;  %v4293_v62 = vld [vmem:[#allocation4 + $0x204] ss:$16 sps:$4 sm:$0xff]  }
 0x110   :  { %1966 = vmatpush2.bf16.msra.mxu1 %v4141_v63  ;;  %1926 = vmatprep.subr.bf16.mxu0 %v4146_v0  ;;  %v4206_v63 = vld [vmem:[#allocation4 + $0x1a4] ss:$16 sps:$4 sm:$0xff]   ;;  %v4291_v0 = vld [vmem:[#allocation4 + $0x200] ss:$16 sps:$4 sm:$0xff]  }
 0x111   :  { %1967 = vmatprep.subr.bf16.mxu1 %v4149_v1  ;;  %v4204_v1 = vld [vmem:[#allocation4 + $0x1a0] ss:$16 sps:$4 sm:$0xff]  }
 0x113   :  { %1927 = vmatpush2.bf16.msra.mxu0 %v4144_v2  ;;  %v4296_v2 = vld [vmem:[#allocation4 + $0x3e4] ss:$16 sps:$4 sm:$0xff]  }
 0x114   :  { %1968 = vmatpush2.bf16.msra.mxu1 %v4147_v3  ;;  %1928 = vmatprep.subr.bf16.mxu0 %v4152_v4  ;;  %v4209_v3 = vld [vmem:[#allocation4 + $0x184] ss:$16 sps:$4 sm:$0xff]   ;;  %v4294_v4 = vld [vmem:[#allocation4 + $0x3e0] ss:$16 sps:$4 sm:$0xff]  }
 0x115   :  { %1969 = vmatprep.subr.bf16.mxu1 %v4155_v5  ;;  %v4207_v5 = vld [vmem:[#allocation4 + $0x180] ss:$16 sps:$4 sm:$0xff]  }
 0x117   :  { %1929 = vmatpush2.bf16.msra.mxu0 %v4150_v8  ;;  %v4299_v8 = vld [vmem:[#allocation4 + $0x3c4] ss:$16 sps:$4 sm:$0xff]  }
 0x118   :  { %1970 = vmatpush2.bf16.msra.mxu1 %v4153_v9  ;;  %1930 = vmatprep.subr.bf16.mxu0 %v4158_v10  ;;  %v4212_v9 = vld [vmem:[#allocation4 + $0x164] ss:$16 sps:$4 sm:$0xff]   ;;  %v330_v10 = vlaneseq }
 0x119   :  { %1971 = vmatprep.subr.bf16.mxu1 %v4161_v11  ;;  %v4297_v11 = vld [vmem:[#allocation4 + $0x3c0] ss:$16 sps:$4 sm:$0xff]  }
 0x11b   :  { %1931 = vmatpush2.bf16.msra.mxu0 %v4156_v12  ;;  %v4210_v12 = vld [vmem:[#allocation4 + $0x160] ss:$16 sps:$4 sm:$0xff]  }
 0x11c   :  { %1972 = vmatpush2.bf16.msra.mxu1 %v4159_v13  ;;  %1932 = vmatprep.subr.bf16.mxu0 %v4164_v14  ;;  %v4302_v13 = vld [vmem:[#allocation4 + $0x3a4] ss:$16 sps:$4 sm:$0xff]  }
 0x11d   :  { %1973 = vmatprep.subr.bf16.mxu1 %v4167_v15  ;;  %v4215_v14 = vld [vmem:[#allocation4 + $0x144] ss:$16 sps:$4 sm:$0xff]   ;;  %v4582_v15 = vshrl.u32 %v330_v10, 7  ;;  %v4248_v10 = vld [vmem:[#allocation4 + $0x1ec] ss:$16 sps:$4 sm:$0xff]  }
 0x11f   :  { %1933 = vmatpush2.bf16.msra.mxu0 %v4162_v18  ;;  %v4300_v18 = vld [vmem:[#allocation4 + $0x3a0] ss:$16 sps:$4 sm:$0xff]  }
 0x120   :  { %1974 = vmatpush2.bf16.msra.mxu1 %v4165_v19  ;;  %1934 = vmatprep.subr.bf16.mxu0 %v4170_v20  ;;  %v4213_v19 = vld [vmem:[#allocation4 + $0x140] ss:$16 sps:$4 sm:$0xff]   ;;  %v4305_v20 = vld [vmem:[#allocation4 + $0x384] ss:$16 sps:$4 sm:$0xff]  }
 0x121   :  { %1975 = vmatprep.subr.bf16.mxu1 %v4173_v21  ;;  %v4218_v21 = vld [vmem:[#allocation4 + $0x124] ss:$16 sps:$4 sm:$0xff]  }
 0x123   :  { %1935 = vmatpush2.bf16.msra.mxu0 %v4168_v22  ;;  %v332_v22 = vsub.s32 0, %v4582_v15 }
 0x124   :  { %1976 = vmatpush2.bf16.msra.mxu1 %v4171_v23  ;;  %2784 = vmatprep.subr.bf16.mxu0 %v4176_v24  ;;  %v4588_v23 = vld [vmem:[%s4636_s2] sm:$0xf] }
 0x125   :  { %v4303_v24 = vld [vmem:[#allocation4 + $0x380] ss:$16 sps:$4 sm:$0xff]  }
 0x126   :  { %v4572_v27 = vpop.f32.mrf.mxu0  ;;  %1937 = vmatmul.mubr.bf16.vlgmr.msra.gmra.mxu0 %v4558_v16  ;;  %v4183_v16 = vld [vmem:[#allocation4 + $0x80] ss:$16 sps:$4 sm:$0xff]  }
 0x127   :  { %v4574_v28 = vpop.f32.mrf.mxu1  ;;  %1978 = vmatmul.mubr.bf16.vlgmr.msra.gmra.mxu1 %v4562_v17  ;;  %2785 = vmatpush1.bf16.msra.mxu0 %v4174_v25  ;;  %v4272_v17 = vld [vmem:[#allocation4 + $0x2e4] ss:$16 sps:$4 sm:$0xff]   ;;  %v336_v25 = vsub.s32 1, %v4582_v15 }
 0x128   :  { %v4578_v30 = vpop.f32.mrf.mxu0  ;;  %2786 = vmatprep.subr.bf16.mxu0 %v4179_v26  ;;  %2825 = vmatprep.subr.bf16.mxu1 %v4272_v17  ;;  %v4216_v26 = vld [vmem:[#allocation4 + $0x120] ss:$16 sps:$4 sm:$0xff]  }
 0x129   :  { %v4580_v31 = vpop.f32.mrf.mxu1  ;;  %2826 = vmatpush1.bf16.msra.mxu1 %v4270_v35  ;;  %v4309_v35 = vld [vmem:[#allocation4 + $0x340] ss:$16 sps:$4 sm:$0xff]  }
 0x12a   :  { %v1696_v33 = vpop.f32.mrf.mxu0  ;;  %2827 = vmatprep.subr.bf16.mxu1 %v4275_v36 }
 0x12b   :  { %v1737_v34 = vpop.f32.mrf.mxu1  ;;  %2787 = vmatpush1.bf16.msra.mxu0 %v4177_v29  ;;  %v4308_v29 = vld [vmem:[#allocation4 + $0x364] ss:$16 sps:$4 sm:$0xff]   ;;  %v333_v33 = vrot.slane %v4588_v23, %v332_v22 }
 0x12c   :  { %v1697_v47 = vpop.f32.mrf.mxu0  ;;  %2788 = vmatprep.subr.bf16.mxu0 %v4182_v32  ;;  %v4221_v32 = vld [vmem:[#allocation4 + $0x104] ss:$16 sps:$4 sm:$0xff]   ;;  %v4306_v34 = vld [vmem:[#allocation4 + $0x360] ss:$16 sps:$4 sm:$0xff]  }
 0x12d   :  { %v1738_v7 = vpop.f32.mrf.mxu1  ;;  %2828 = vmatpush1.bf16.msra.mxu1 %v4273_v39  ;;  %v4219_v47 = vld [vmem:[#allocation4 + $0x100] ss:$16 sps:$4 sm:$0xff]  }
 0x12e   :  { %2829 = vmatprep.subr.bf16.mxu1 %v4278_v40  ;;  %v4311_v7 = vld [vmem:[#allocation4 + $0x344] ss:$16 sps:$4 sm:$0xff]  }
 0x12f   :  { %2789 = vmatpush1.bf16.msra.mxu0 %v4180_v6  ;;  %v337_v6 = vrot.slane %v4588_v23, %v336_v25 }
 0x130   :  { %2790 = vmatprep.subr.bf16.mxu0 %v4185_v51  ;;  %v4224_v51 = vld [vmem:[#allocation4 + $0xec] ss:$16 sps:$4 sm:$0xff]  }
 0x131   :  { %2830 = vmatpush1.bf16.msra.mxu1 %v4276_v42  ;;  %v1695_v17 = vadd.f32 %v4578_v30, %v337_v6  ;;  %v4264_v6 = vld [vmem:[#allocation4 + $0x128] ss:$16 sps:$4 sm:$0xff]  }
 0x132   :  { %2831 = vmatprep.subr.bf16.mxu1 %v4281_v44 }
 0x133   :  { %2791 = vmatpush1.bf16.msra.mxu0 %v4183_v16  ;;  %v1693_v16 = vadd.f32 %v4572_v27, %v333_v33 }
 0x134   :  { %2792 = vmatprep.subr.bf16.mxu0 %v4188_v38 }
 0x135   :  { %2832 = vmatpush1.bf16.msra.mxu1 %v4279_v46  ;;  %v1734_v38 = vadd.f32 %v4574_v28, %v1693_v16 }
 0x136   :  { %2833 = vmatprep.subr.bf16.mxu1 %v4284_v49 }
 0x137   :  { %2793 = vmatpush1.bf16.msra.mxu0 %v4186_v37  ;;  %v1736_v37 = vadd.f32 %v4580_v31, %v1695_v17  ;;  %v4267_v17 = vld [vmem:[#allocation4 + $0x108] ss:$16 sps:$4 sm:$0xff]  }
 0x138   :  { %2794 = vmatprep.subr.bf16.mxu0 %v4191_v41 }
 0x139   :  { %2834 = vmatpush1.bf16.msra.mxu1 %v4282_v52  ;;  %v4317_v52 = vld [vmem:[#allocation4 + $0x304] ss:$16 sps:$4 sm:$0xff]  }
 0x13a   :  { %2835 = vmatprep.subr.bf16.mxu1 %v4287_v54  ;;  %v4315_v54 = vld [vmem:[#allocation4 + $0x300] ss:$16 sps:$4 sm:$0xff]  }
 0x13b   :  { %2795 = vmatpush1.bf16.msra.mxu0 %v4189_v43  ;;  %v4314_v43 = vld [vmem:[#allocation4 + $0x324] ss:$16 sps:$4 sm:$0xff]  }
 0x13c   :  { %2796 = vmatprep.subr.bf16.mxu0 %v4194_v45  ;;  %v4312_v45 = vld [vmem:[#allocation4 + $0x320] ss:$16 sps:$4 sm:$0xff]  }
 0x13d   :  { %2836 = vmatpush1.bf16.msra.mxu1 %v4285_v56 }
 0x13e   :  { %2837 = vmatprep.subr.bf16.mxu1 %v4290_v58  ;;  %v4320_v58 = vld [vmem:[#allocation4 + $0x2ec] ss:$16 sps:$4 sm:$0xff]  }
 0x13f   :  { %2797 = vmatpush1.bf16.msra.mxu0 %v4192_v48 }
 0x140   :  { %2798 = vmatprep.subr.bf16.mxu0 %v4197_v50 }
 0x141   :  { %2838 = vmatpush1.bf16.msra.mxu1 %v4288_v60  ;;  %v4230_v60 = vld [vmem:[#allocation4 + $0xac] ss:$16 sps:$4 sm:$0xff]  }
 0x142   :  { %2839 = vmatprep.subr.bf16.mxu1 %v4293_v62  ;;  %v4233_v62 = vld [vmem:[#allocation4 + $0x8c] ss:$16 sps:$4 sm:$0xff]  }
 0x143   :  { %2799 = vmatpush1.bf16.msra.mxu0 %v4195_v53 }
 0x144   :  { %2800 = vmatprep.subr.bf16.mxu0 %v4200_v55  ;;  %v4222_v55 = vld [vmem:[#allocation4 + $0xe8] ss:$16 sps:$4 sm:$0xff]  }
 0x145   :  { %2840 = vmatpush1.bf16.msra.mxu1 %v4291_v0  ;;  %v4236_v0 = vld [vmem:[#allocation4 + $0x6c] ss:$16 sps:$4 sm:$0xff]  }
 0x146   :  { %2841 = vmatprep.subr.bf16.mxu1 %v4296_v2  ;;  %v4239_v2 = vld [vmem:[#allocation4 + $0x4c] ss:$16 sps:$4 sm:$0xff]  }
 0x147   :  { %2801 = vmatpush2.bf16.msra.mxu0 %v4198_v57  ;;  %v4227_v57 = vld [vmem:[#allocation4 + $0xcc] ss:$16 sps:$4 sm:$0xff]  }
 0x148   :  { %2802 = vmatprep.subr.bf16.mxu0 %v4203_v59  ;;  %v4225_v59 = vld [vmem:[#allocation4 + $0xc8] ss:$16 sps:$4 sm:$0xff]  }
 0x149   :  { %2842 = vmatpush2.bf16.msra.mxu1 %v4294_v4  ;;  %v4242_v4 = vld [vmem:[#allocation4 + $0x2c] ss:$16 sps:$4 sm:$0xff]  }
 0x14a   :  { %2843 = vmatprep.subr.bf16.mxu1 %v4299_v8  ;;  %v4245_v8 = vld [vmem:[#allocation4 + $0xc] ss:$16 sps:$4 sm:$0xff]  }
 0x14b   :  { %2803 = vmatpush2.bf16.msra.mxu0 %v4201_v61  ;;  %v4228_v61 = vld [vmem:[#allocation4 + $0xa8] ss:$16 sps:$4 sm:$0xff]  }
 0x14c   :  { %2804 = vmatprep.subr.bf16.mxu0 %v4206_v63  ;;  %v4231_v63 = vld [vmem:[#allocation4 + $0x88] ss:$16 sps:$4 sm:$0xff]  }
 0x14d   :  { %2844 = vmatpush2.bf16.msra.mxu1 %v4297_v11  ;;  %v4246_v11 = vld [vmem:[#allocation4 + $0x1e8] ss:$16 sps:$4 sm:$0xff]  }
 0x14e   :  { %2845 = vmatprep.subr.bf16.mxu1 %v4302_v13  ;;  %v4249_v13 = vld [vmem:[#allocation4 + $0x1c8] ss:$16 sps:$4 sm:$0xff]  }
 0x14f   :  { %2805 = vmatpush2.bf16.msra.mxu0 %v4204_v1  ;;  %v4234_v1 = vld [vmem:[#allocation4 + $0x68] ss:$16 sps:$4 sm:$0xff]  }
 0x150   :  { %2806 = vmatprep.subr.bf16.mxu0 %v4209_v3  ;;  %v4237_v3 = vld [vmem:[#allocation4 + $0x48] ss:$16 sps:$4 sm:$0xff]  }
 0x151   :  { %2846 = vmatpush2.bf16.msra.mxu1 %v4300_v18  ;;  %v4252_v18 = vld [vmem:[#allocation4 + $0x1a8] ss:$16 sps:$4 sm:$0xff]  }
 0x152   :  { %2847 = vmatprep.subr.bf16.mxu1 %v4305_v20  ;;  %v4255_v20 = vld [vmem:[#allocation4 + $0x188] ss:$16 sps:$4 sm:$0xff]  }
 0x153   :  { %2807 = vmatpush2.bf16.msra.mxu0 %v4207_v5  ;;  %v4240_v5 = vld [vmem:[#allocation4 + $0x28] ss:$16 sps:$4 sm:$0xff]  }
 0x154   :  { %2808 = vmatprep.subr.bf16.mxu0 %v4212_v9  ;;  %v4243_v9 = vld [vmem:[#allocation4 + $0x8] ss:$16 sps:$4 sm:$0xff]  }
 0x155   :  { %2848 = vmatpush2.bf16.msra.mxu1 %v4303_v24  ;;  %v4258_v24 = vld [vmem:[#allocation4 + $0x168] ss:$16 sps:$4 sm:$0xff]  }
 0x156   :  { %2849 = vmatprep.subr.bf16.mxu1 %v4308_v29  ;;  %v4261_v29 = vld [vmem:[#allocation4 + $0x148] ss:$16 sps:$4 sm:$0xff]  }
 0x157   :  { %2809 = vmatpush2.bf16.msra.mxu0 %v4210_v12  ;;  %v4251_v12 = vld [vmem:[#allocation4 + $0x1cc] ss:$16 sps:$4 sm:$0xff]  }
 0x158   :  { %2810 = vmatprep.subr.bf16.mxu0 %v4215_v14  ;;  %v4254_v14 = vld [vmem:[#allocation4 + $0x1ac] ss:$16 sps:$4 sm:$0xff]  }
 0x159   :  { %2850 = vmatpush2.bf16.msra.mxu1 %v4306_v34 }
 0x15a   :  { %2851 = vmatprep.subr.bf16.mxu1 %v4311_v7 }
 0x15b   :  { %2811 = vmatpush2.bf16.msra.mxu0 %v4213_v19  ;;  %v4257_v19 = vld [vmem:[#allocation4 + $0x18c] ss:$16 sps:$4 sm:$0xff]  }
 0x15c   :  { %2812 = vmatprep.subr.bf16.mxu0 %v4218_v21  ;;  %v4260_v21 = vld [vmem:[#allocation4 + $0x16c] ss:$16 sps:$4 sm:$0xff]  }
 0x15d   :  { %2852 = vmatpush2.bf16.msra.mxu1 %v4309_v35 }
 0x15e   :  { %2853 = vmatprep.subr.bf16.mxu1 %v4314_v43 }
 0x15f   :  { %2813 = vmatpush2.bf16.msra.mxu0 %v4216_v26  ;;  %v4263_v26 = vld [vmem:[#allocation4 + $0x14c] ss:$16 sps:$4 sm:$0xff]  }
 0x160   :  { %2814 = vmatprep.subr.bf16.mxu0 %v4221_v32  ;;  %v4266_v32 = vld [vmem:[#allocation4 + $0x12c] ss:$16 sps:$4 sm:$0xff]  }
 0x161   :  { %2854 = vmatpush2.bf16.msra.mxu1 %v4312_v45 }
 0x162   :  { %2855 = vmatprep.subr.bf16.mxu1 %v4317_v52 }
 0x163   :  { %2815 = vmatpush2.bf16.msra.mxu0 %v4219_v47 }
 0x164   :  { %2866 = vmatprep.subr.bf16.mxu0 %v4224_v51  ;;  %v4269_v51 = vld [vmem:[#allocation4 + $0x10c] ss:$16 sps:$4 sm:$0xff]  }
 0x165   :  { %2856 = vmatpush2.bf16.msra.mxu1 %v4315_v54 }
 0x166   :  { %v1774_v39 = vpop.f32.mrf.mxu0  ;;  %2907 = vmatprep.subr.bf16.mxu1 %v4320_v58 }
 0x167   :  { %v1815_v36 = vpop.f32.mrf.mxu1  ;;  %v1775_v40 = vadd.f32 %v1774_v39, %v1734_v38 }
 0x168   :  { %v1776_v41 = vpop.f32.mrf.mxu0 }
 0x169   :  { %v1817_v42 = vpop.f32.mrf.mxu1  ;;  %v1816_v44 = vadd.f32 %v1815_v36, %v1775_v40  ;;  %v1777_v27 = vadd.f32 %v1776_v41, %v1736_v37  ;;  %v340_v36 = vsub.s32 2, %v4582_v15  ;;  %v344_v37 = vsub.s32 3, %v4582_v15 }
 0x16a   :  { %v1778_v46 = vpop.f32.mrf.mxu0 }
 0x16b   :  { %v1819_v48 = vpop.f32.mrf.mxu1  ;;  %v1818_v30 = vadd.f32 %v1817_v42, %v1777_v27  ;;  %v1986_v49 = vmax.f32 %v1816_v44, 0.0  ;;  %v341_v40 = vrot.slane %v4588_v23, %v340_v36  ;;  %v345_v41 = vrot.slane %v4588_v23, %v344_v37  ;;  %v4318_v23 = vld [vmem:[#allocation4 + $0x2e8] ss:$16 sps:$4 sm:$0xff]  }
 0x16c   :  { %v1779_v50 = vpop.f32.mrf.mxu0 }
 0x16d   :  { %v1820_v28 = vpop.f32.mrf.mxu1  ;;  %v1987_v53 = vmax.f32 %v1818_v30, 0.0  ;;  %v4601_v56 = vpack.c.bf16 %v1986_v49, %v1986_v49 }
 0x16f   :  { %v1991_v31 = vpack.c.bf16 %v1987_v53, %v1987_v53 }
 0x171   :  { %2816 = vmatprep.mubr.bf16.mxu0 %v1991_v31 }
 0x172   :  { %2817 = vmatmul.mubr.bf16.vlgmr.msra.gmra.mxu0 %v4601_v56 }
 0x173   :  { %2867 = vmatpush1.bf16.msra.mxu0 %v4222_v55  ;;  %2898 = vmatprep.mubr.bf16.mxu0 %v1991_v31 }
 0x174   :  { %2868 = vmatprep.subr.bf16.mxu0 %v4227_v57 }
 0x177   :  { %2869 = vmatpush1.bf16.msra.mxu0 %v4225_v59 }
 0x178   :  { %2870 = vmatprep.subr.bf16.mxu0 %v4230_v60  ;;  %v4323_v60 = vld [vmem:[#allocation4 + $0x2cc] ss:$16 sps:$4 sm:$0xff]  }
 0x17b   :  { %2871 = vmatpush1.bf16.msra.mxu0 %v4228_v61  ;;  %v4321_v61 = vld [vmem:[#allocation4 + $0x2c8] ss:$16 sps:$4 sm:$0xff]  }
 0x17c   :  { %2872 = vmatprep.subr.bf16.mxu0 %v4233_v62  ;;  %v4326_v62 = vld [vmem:[#allocation4 + $0x2ac] ss:$16 sps:$4 sm:$0xff]  }
 0x17f   :  { %2873 = vmatpush1.bf16.msra.mxu0 %v4231_v63  ;;  %v4324_v63 = vld [vmem:[#allocation4 + $0x2a8] ss:$16 sps:$4 sm:$0xff]  }
 0x180   :  { %2874 = vmatprep.subr.bf16.mxu0 %v4236_v0  ;;  %v4329_v0 = vld [vmem:[#allocation4 + $0x28c] ss:$16 sps:$4 sm:$0xff]  }
 0x183   :  { %2875 = vmatpush1.bf16.msra.mxu0 %v4234_v1  ;;  %v4366_v1 = vld [vmem:[#allocation6 + $0x78] sm:$0xff]  }
 0x184   :  { %2876 = vmatprep.subr.bf16.mxu0 %v4239_v2  ;;  %v4367_v2 = vld [vmem:[#allocation6 + $0x38] sm:$0xff]  }
 0x187   :  { %2877 = vmatpush1.bf16.msra.mxu0 %v4237_v3  ;;  %v4368_v3 = vld [vmem:[#allocation6 + $0x70] sm:$0xff]  }
 0x188   :  { %2878 = vmatprep.subr.bf16.mxu0 %v4242_v4  ;;  %v4327_v4 = vld [vmem:[#allocation4 + $0x288] ss:$16 sps:$4 sm:$0xff]  }
 0x18b   :  { %2879 = vmatpush1.bf16.msra.mxu0 %v4240_v5  ;;  %v4369_v5 = vld [vmem:[#allocation6 + $0x30] sm:$0xff]  }
 0x18c   :  { %2880 = vmatprep.subr.bf16.mxu0 %v4245_v8  ;;  %v4332_v8 = vld [vmem:[#allocation4 + $0x26c] ss:$16 sps:$4 sm:$0xff]  }
 0x18f   :  { %2881 = vmatpush1.bf16.msra.mxu0 %v4243_v9  ;;  %v4370_v9 = vld [vmem:[#allocation6 + $0x68] sm:$0xff]  }
 0x190   :  { %2882 = vmatprep.subr.bf16.mxu0 %v4248_v10  ;;  %v4330_v10 = vld [vmem:[#allocation4 + $0x268] ss:$16 sps:$4 sm:$0xff]  }
 0x193   :  { %2883 = vmatpush2.bf16.msra.mxu0 %v4246_v11  ;;  %v4371_v11 = vld [vmem:[#allocation6 + $0x28] sm:$0xff]  }
 0x194   :  { %2884 = vmatprep.subr.bf16.mxu0 %v4251_v12  ;;  %v4335_v12 = vld [vmem:[#allocation4 + $0x24c] ss:$16 sps:$4 sm:$0xff]  }
 0x197   :  { %2885 = vmatpush2.bf16.msra.mxu0 %v4249_v13  ;;  %v4372_v13 = vld [vmem:[#allocation6 + $0x60] sm:$0xff]  }
 0x198   :  { %2886 = vmatprep.subr.bf16.mxu0 %v4254_v14  ;;  %v4333_v14 = vld [vmem:[#allocation4 + $0x248] ss:$16 sps:$4 sm:$0xff]  }
 0x19b   :  { %2887 = vmatpush2.bf16.msra.mxu0 %v4252_v18  ;;  %v4373_v18 = vld [vmem:[#allocation6 + $0x20] sm:$0xff]  }
 0x19c   :  { %2888 = vmatprep.subr.bf16.mxu0 %v4257_v19  ;;  %v4338_v19 = vld [vmem:[#allocation4 + $0x22c] ss:$16 sps:$4 sm:$0xff]  }
 0x19f   :  { %2889 = vmatpush2.bf16.msra.mxu0 %v4255_v20  ;;  %v4374_v20 = vld [vmem:[#allocation6 + $0x58] sm:$0xff]  }
 0x1a0   :  { %2890 = vmatprep.subr.bf16.mxu0 %v4260_v21  ;;  %v4336_v21 = vld [vmem:[#allocation4 + $0x228] ss:$16 sps:$4 sm:$0xff]  }
 0x1a3   :  { %2891 = vmatpush2.bf16.msra.mxu0 %v4258_v24  ;;  %v4375_v24 = vld [vmem:[#allocation6 + $0x18] sm:$0xff]  }
 0x1a4   :  { %2892 = vmatprep.subr.bf16.mxu0 %v4263_v26  ;;  %v4341_v26 = vld [vmem:[#allocation4 + $0x20c] ss:$16 sps:$4 sm:$0xff]  }
 0x1a6   :  { %v1856_v33 = vpop.f32.mrf.mxu0 }
 0x1a7   :  { %v1897_v34 = vpop.f32.mrf.mxu1  ;;  %2893 = vmatpush2.bf16.msra.mxu0 %v4261_v29  ;;  %v1857_v42 = vadd.f32 %v1856_v33, %v341_v40  ;;  %v4376_v29 = vld [vmem:[#allocation6 + $0x50] sm:$0xff]   ;;  %v4359_v40 = vld [vmem:[#allocation4 + $0x34c] ss:$16 sps:$4 sm:$0xff]  }
 0x1a8   :  { %v1858_v47 = vpop.f32.mrf.mxu0  ;;  %2894 = vmatprep.subr.bf16.mxu0 %v4266_v32  ;;  %v4339_v32 = vld [vmem:[#allocation4 + $0x208] ss:$16 sps:$4 sm:$0xff]   ;;  %v4377_v33 = vld [vmem:[#allocation6 + $0x10] sm:$0xff]  }
 0x1a9   :  { %v1899_v7 = vpop.f32.mrf.mxu1  ;;  %v1859_v43 = vadd.f32 %v1858_v47, %v345_v41  ;;  %v1898_v44 = vadd.f32 %v1897_v34, %v1857_v42  ;;  %v4344_v34 = vld [vmem:[#allocation4 + $0x3ec] ss:$16 sps:$4 sm:$0xff]   ;;  %v4357_v41 = vld [vmem:[#allocation4 + $0x348] ss:$16 sps:$4 sm:$0xff]  }
 0x1aa   :  { %v1860_v16 = vpop.f32.mrf.mxu0  ;;  %v4347_v47 = vld [vmem:[#allocation4 + $0x3cc] ss:$16 sps:$4 sm:$0xff]  }
 0x1ab   :  { %v1901_v35 = vpop.f32.mrf.mxu1  ;;  %2895 = vmatpush2.bf16.msra.mxu0 %v4264_v6  ;;  %v1900_v46 = vadd.f32 %v1899_v7, %v1859_v43  ;;  %v4342_v6 = vld [vmem:[#allocation4 + $0x3e8] ss:$16 sps:$4 sm:$0xff]   ;;  %v4362_v42 = vld [vmem:[#allocation4 + $0x32c] ss:$16 sps:$4 sm:$0xff]  }
 0x1ac   :  { %v1861_v38 = vpop.f32.mrf.mxu0  ;;  %2896 = vmatprep.subr.bf16.mxu0 %v4269_v51  ;;  %v4345_v7 = vld [vmem:[#allocation4 + $0x3c8] ss:$16 sps:$4 sm:$0xff]   ;;  %v4350_v51 = vld [vmem:[#allocation4 + $0x3ac] ss:$16 sps:$4 sm:$0xff]  }
 0x1ad   :  { %v1902_v39 = vpop.f32.mrf.mxu1  ;;  %v4348_v16 = vld [vmem:[#allocation4 + $0x3a8] ss:$16 sps:$4 sm:$0xff]   ;;  %v4353_v35 = vld [vmem:[#allocation4 + $0x38c] ss:$16 sps:$4 sm:$0xff]  }
 0x1ae   :  { %v4356_v38 = vld [vmem:[#allocation4 + $0x36c] ss:$16 sps:$4 sm:$0xff]   ;;  %v4354_v39 = vld [vmem:[#allocation4 + $0x368] ss:$16 sps:$4 sm:$0xff]  }
 0x1af   :  { %2897 = vmatpush2.bf16.msra.mxu0 %v4267_v17  ;;  %v4351_v17 = vld [vmem:[#allocation4 + $0x388] ss:$16 sps:$4 sm:$0xff]  }
 0x1b0   :  { %3731 = vmatprep.subr.bf16.mxu0 %v4366_v1  ;;  %v4360_v43 = vld [vmem:[#allocation4 + $0x328] ss:$16 sps:$4 sm:$0xff]  }
 0x1b1   :  { %v4395_v1 = vld [vmem:[#allocation6 + $0x88] sm:$0xff]  }
 0x1b2   :  { %2899 = vmatmul.mubr.bf16.vlgmr.msra.gmra.mxu0 %v4601_v56 }
 0x1b3   :  { %3732 = vmatpush3.bf16.msra.mxu0 %v4367_v2 }
 0x1b4   :  { %3733 = vmatprep.subr.bf16.mxu0 %v4368_v3 }
 0x1b7   :  { %3734 = vmatpush3.bf16.msra.mxu0 %v4369_v5  ;;  %v4397_v5 = vld [vmem:[#allocation6 + $0x80] sm:$0xff]  }
 0x1b8   :  { %3735 = vmatprep.subr.bf16.mxu0 %v4370_v9  ;;  %v2122_v9 = vld [vmem:[%s4638_s4] sm:$0xf] }
 0x1bb   :  { %3736 = vmatpush3.bf16.msra.mxu0 %v4371_v11  ;;  %v2131_v11 = vrot.slane %v2122_v9, %v336_v25  ;;  %v2139_v25 = vrot.slane %v2122_v9, %v344_v37  ;;  %v3698_v37 = vld [vmem:[%s4640_s6] ss:$0 sm:$0xff] }
 0x1bc   :  { %3737 = vmatprep.subr.bf16.mxu0 %v4372_v13 }
 0x1bf   :  { %3738 = vmatpush3.bf16.msra.mxu0 %v4373_v18 }
 0x1c0   :  { %3739 = vmatprep.subr.bf16.mxu0 %v4374_v20 }
 0x1c3   :  { %3740 = vmatpush3.bf16.msra.mxu0 %v4375_v24 }
 0x1c4   :  { %3741 = vmatprep.subr.bf16.mxu0 %v4376_v29 }
 0x1c7   :  { %3742 = vmatpush3.bf16.msra.mxu0 %v4377_v33 }
 0x1e6   :  { %v1938_v27 = vpop.f32.mrf.mxu0 }
 0x1e7   :  { %v1979_v45 = vpop.f32.mrf.mxu1  ;;  %v1939_v48 = vadd.f32 %v1938_v27, %v1898_v44  ;;  %v4365_v44 = vld [vmem:[#allocation4 + $0x30c] ss:$16 sps:$4 sm:$0xff]   ;;  %v4363_v27 = vld [vmem:[#allocation4 + $0x308] ss:$16 sps:$4 sm:$0xff]  }
 0x1e8   :  { %v1940_v30 = vpop.f32.mrf.mxu0 }
 0x1e9   :  { %v1981_v49 = vpop.f32.mrf.mxu1  ;;  %v1980_v50 = vadd.f32 %v1979_v45, %v1939_v48  ;;  %v1941_v28 = vadd.f32 %v1940_v30, %v1900_v46  ;;  %v4378_v46 = vld [vmem:[#allocation6 + $0x48] sm:$0xff]  }
 0x1ea   :  { %v1942_v52 = vpop.f32.mrf.mxu0  ;;  %v4379_v30 = vld [vmem:[#allocation6 + $0x8] sm:$0xff]   ;;  %3743 = vmatprep.subr.bf16.mxu0 %v4378_v46 }
 0x1eb   :  { %v1983_v53 = vpop.f32.mrf.mxu1  ;;  %v1982_v54 = vadd.f32 %v1981_v49, %v1941_v28  ;;  %v1988_v31 = vmax.f32 %v1980_v50, 0.0  ;;  %3744 = vmatpush3.bf16.msra.mxu0 %v4379_v30  ;;  %v4380_v50 = vld [vmem:[#allocation6 + $0x40] sm:$0xff]  }
 0x1ec   :  { %v1943_v55 = vpop.f32.mrf.mxu0  ;;  %v4381_v52 = vld [vmem:[#allocation6] sm:$0xff]   ;;  %3745 = vmatprep.subr.bf16.mxu0 %v4380_v50  ;;  %v4382_v53 = vld [vmem:[#allocation6 + $0xf8] sm:$0xff]  }
 0x1ed   :  { %v1984_v56 = vpop.f32.mrf.mxu1  ;;  %v1989_v57 = vmax.f32 %v1982_v54, 0.0  ;;  %v4613_v59 = vpack.c.bf16 %v1988_v31, %v1988_v31  ;;  %v4383_v54 = vld [vmem:[#allocation6 + $0xb8] sm:$0xff]   ;;  %v4384_v31 = vld [vmem:[#allocation6 + $0xf0] sm:$0xff]  }
 0x1ee   :  { %v4385_v55 = vld [vmem:[#allocation6 + $0xb0] sm:$0xff]   ;;  %v4386_v56 = vld [vmem:[#allocation6 + $0xe8] sm:$0xff]  }
 0x1ef   :  { %v1993_v58 = vpack.c.bf16 %v1989_v57, %v1989_v57  ;;  %3746 = vmatpush3.bf16.msra.mxu0 %v4381_v52  ;;  %v4387_v57 = vld [vmem:[#allocation6 + $0xa8] sm:$0xff]  }
 0x1f1   :  { %2857 = vmatprep.mubr.bf16.mxu1 %v1993_v58 }
 0x1f2   :  { %2858 = vmatmul.mubr.bf16.vlgmr.msra.gmra.mxu1 %v4613_v59 }
 0x1f3   :  { %2908 = vmatpush1.bf16.msra.mxu1 %v4318_v23  ;;  %2939 = vmatprep.mubr.bf16.mxu1 %v1993_v58  ;;  %v4388_v58 = vld [vmem:[#allocation6 + $0xe0] sm:$0xff]  }
 0x1f4   :  { %2909 = vmatprep.subr.bf16.mxu1 %v4323_v60  ;;  %v4389_v23 = vld [vmem:[#allocation6 + $0xa0] sm:$0xff]   ;;  %v4391_v60 = vld [vmem:[#allocation6 + $0x98] sm:$0xff]  }
 0x1f7   :  { %2910 = vmatpush1.bf16.msra.mxu1 %v4321_v61  ;;  %v4392_v61 = vld [vmem:[#allocation6 + $0xd0] sm:$0xff]  }
 0x1f8   :  { %2911 = vmatprep.subr.bf16.mxu1 %v4326_v62  ;;  %v4393_v62 = vld [vmem:[#allocation6 + $0x90] sm:$0xff]  }
 0x1fb   :  { %2912 = vmatpush1.bf16.msra.mxu1 %v4324_v63 }
 0x1fc   :  { %2913 = vmatprep.subr.bf16.mxu1 %v4329_v0  ;;  %v4394_v0 = vld [vmem:[#allocation6 + $0xc8] sm:$0xff]  }
 0x1ff   :  { %2914 = vmatpush1.bf16.msra.mxu1 %v4327_v4  ;;  %v4396_v4 = vld [vmem:[#allocation6 + $0xc0] sm:$0xff]  }
 0x200   :  { %2915 = vmatprep.subr.bf16.mxu1 %v4332_v8 }
 0x203   :  { %2916 = vmatpush1.bf16.msra.mxu1 %v4330_v10  ;;  %v2127_v10 = vrot.slane %v2122_v9, %v332_v22  ;;  %v2135_v22 = vrot.slane %v2122_v9, %v340_v36 }
 0x204   :  { %2917 = vmatprep.subr.bf16.mxu1 %v4335_v12 }
 0x207   :  { %2918 = vmatpush1.bf16.msra.mxu1 %v4333_v14 }
 0x208   :  { %2919 = vmatprep.subr.bf16.mxu1 %v4338_v19 }
 0x20b   :  { %2920 = vmatpush1.bf16.msra.mxu1 %v4336_v21 }
 0x20c   :  { %2921 = vmatprep.subr.bf16.mxu1 %v4341_v26 }
 0x20f   :  { %2922 = vmatpush1.bf16.msra.mxu1 %v4339_v32 }
 0x210   :  { %2923 = vmatprep.subr.bf16.mxu1 %v4344_v34 }
 0x213   :  { %2924 = vmatpush2.bf16.msra.mxu1 %v4342_v6 }
 0x214   :  { %2925 = vmatprep.subr.bf16.mxu1 %v4347_v47 }
 0x217   :  { %2926 = vmatpush2.bf16.msra.mxu1 %v4345_v7 }
 0x218   :  { %2927 = vmatprep.subr.bf16.mxu1 %v4350_v51 }
 0x21b   :  { %2928 = vmatpush2.bf16.msra.mxu1 %v4348_v16 }
 0x21c   :  { %2929 = vmatprep.subr.bf16.mxu1 %v4353_v35 }
 0x21f   :  { %2930 = vmatpush2.bf16.msra.mxu1 %v4351_v17 }
 0x220   :  { %2931 = vmatprep.subr.bf16.mxu1 %v4356_v38 }
 0x223   :  { %2932 = vmatpush2.bf16.msra.mxu1 %v4354_v39 }
 0x224   :  { %2933 = vmatprep.subr.bf16.mxu1 %v4359_v40 }
 0x227   :  { %2934 = vmatpush2.bf16.msra.mxu1 %v4357_v41 }
 0x228   :  { %2935 = vmatprep.subr.bf16.mxu1 %v4362_v42 }
 0x22b   :  { %2936 = vmatpush2.bf16.msra.mxu1 %v4360_v43 }
 0x22c   :  { %2937 = vmatprep.subr.bf16.mxu1 %v4365_v44 }
 0x22f   :  { %2938 = vmatpush2.bf16.msra.mxu1 %v4363_v27 }
 0x230   :  { %3753 = vmatprep.subr.bf16.mxu1 %v4382_v53 }
 0x232   :  { %2940 = vmatmul.mubr.bf16.vlgmr.msra.gmra.mxu1 %v4613_v59  ;;  %v2818_v45 = vpop.f32.mrf.mxu0  ;;  %v4390_v59 = vld [vmem:[#allocation6 + $0xd8] sm:$0xff]  }
 0x233   :  { %3754 = vmatpush3.bf16.msra.mxu1 %v4383_v54  ;;  %v2819_v12 = vadd.f32 %v2818_v45, %v2127_v10 }
 0x234   :  { %v2820_v48 = vpop.f32.mrf.mxu0  ;;  %3755 = vmatprep.subr.bf16.mxu1 %v4384_v31 }
 0x235   :  { %v2821_v14 = vadd.f32 %v2820_v48, %v2131_v11 }
 0x236   :  { %v2822_v49 = vpop.f32.mrf.mxu0 }
 0x237   :  { %3756 = vmatpush3.bf16.msra.mxu1 %v4385_v55 }
 0x238   :  { %v2823_v28 = vpop.f32.mrf.mxu0  ;;  %3757 = vmatprep.subr.bf16.mxu1 %v4386_v56 }
 0x23b   :  { %3758 = vmatpush3.bf16.msra.mxu1 %v4387_v57 }
 0x23c   :  { %3759 = vmatprep.subr.bf16.mxu1 %v4388_v58 }
 0x23f   :  { %3760 = vmatpush3.bf16.msra.mxu1 %v4389_v23 }
 0x240   :  { %3761 = vmatprep.subr.bf16.mxu1 %v4390_v59 }
 0x243   :  { %3762 = vmatpush3.bf16.msra.mxu1 %v4391_v60 }
 0x244   :  { %3763 = vmatprep.subr.bf16.mxu1 %v4392_v61 }
 0x247   :  { %3764 = vmatpush3.bf16.msra.mxu1 %v4393_v62 }
 0x248   :  { %3765 = vmatprep.subr.bf16.mxu1 %v4394_v0 }
 0x24b   :  { %3766 = vmatpush3.bf16.msra.mxu1 %v4395_v1 }
 0x24c   :  { %3767 = vmatprep.subr.bf16.mxu1 %v4396_v4 }
 0x24f   :  { %3768 = vmatpush3.bf16.msra.mxu1 %v4397_v5 }
 0x272   :  { %v2900_v63 = vpop.f32.mrf.mxu0 }
 0x273   :  { %v2901_v34 = vadd.f32 %v2900_v63, %v2135_v22 }
 0x274   :  { %v2902_v2 = vpop.f32.mrf.mxu0 }
 0x275   :  { %v2903_v47 = vadd.f32 %v2902_v2, %v2139_v25 }
 0x276   :  { %v2904_v3 = vpop.f32.mrf.mxu0 }
 0x278   :  { %v2905_v8 = vpop.f32.mrf.mxu0 }
 0x2b2   :  { %v2859_v13 = vpop.f32.mrf.mxu1 }
 0x2b3   :  { %v2860_v18 = vadd.f32 %v2859_v13, %v2819_v12 }
 0x2b4   :  { %v2861_v19 = vpop.f32.mrf.mxu1 }
 0x2b5   :  { %v2862_v20 = vadd.f32 %v2861_v19, %v2821_v14  ;;  %v2948_v21 = vmax.f32 %v2860_v18, 0.0 }
 0x2b6   :  { %v2863_v24 = vpop.f32.mrf.mxu1 }
 0x2b7   :  { %v2949_v26 = vmax.f32 %v2862_v20, 0.0  ;;  %v2952_v33 = vpack.c.bf16 %v2948_v21, %v2948_v21 }
 0x2b8   :  { %v2864_v29 = vpop.f32.mrf.mxu1 }
 0x2b9   :  { %v2953_v32 = vpack.c.bf16 %v2949_v26, %v2949_v26 }
 0x2bb   :  { %3251 = vmatprep.mubr.bf16.mxu0 %v2953_v32 }
 0x2bc   :  { %3252 = vmatmul.mubr.bf16.vlgmr.msra.gmra.mxu0 %v2952_v33 }
 0x2f2   :  { %v2941_v6 = vpop.f32.mrf.mxu1 }
 0x2f3   :  { %v2942_v7 = vadd.f32 %v2941_v6, %v2901_v34 }
 0x2f4   :  { %v2943_v51 = vpop.f32.mrf.mxu1 }
 0x2f5   :  { %v2944_v16 = vadd.f32 %v2943_v51, %v2903_v47  ;;  %v2950_v35 = vmax.f32 %v2942_v7, 0.0 }
 0x2f6   :  { %v2945_v17 = vpop.f32.mrf.mxu1 }
 0x2f7   :  { %v2951_v38 = vmax.f32 %v2944_v16, 0.0  ;;  %v2954_v41 = vpack.c.bf16 %v2950_v35, %v2950_v35 }
 0x2f8   :  { %v2946_v39 = vpop.f32.mrf.mxu1 }
 0x2f9   :  { %v2955_v40 = vpack.c.bf16 %v2951_v38, %v2951_v38 }
 0x2fb   :  { %3291 = vmatprep.mubr.bf16.mxu1 %v2955_v40 }
 0x2fc   :  { %3292 = vmatmul.mubr.bf16.vlgmr.msra.gmra.mxu1 %v2954_v41 }
 0x37c   :  { %v3747_v42 = vpop.f32.mrf.mxu0 }
 0x37e   :  { %v3748_v43 = vpop.f32.mrf.mxu0 }
 0x37f   :  { %v3749_v15 = vadd.f32 %v3748_v43, %v3747_v42 }
 0x380   :  { %v3750_v36 = vpop.f32.mrf.mxu0 }
 0x381   :  { %v3254_v46 = vadd.f32 %v3749_v15, %v3698_v37 }
 0x382   :  { %v3751_v44 = vpop.f32.mrf.mxu0 }
 0x3bc   :  { %v3769_v27 = vpop.f32.mrf.mxu1 }
 0x3be   :  { %v3770_v45 = vpop.f32.mrf.mxu1 }
 0x3bf   :  { %v3771_v48 = vadd.f32 %v3770_v45, %v3769_v27 }
 0x3c0   :  { %v3772_v30 = vpop.f32.mrf.mxu1 }
 0x3c1   :  { %v3294_v49 = vadd.f32 %v3771_v48, %v3254_v46 }
 0x3c2   :  { %v3773_v50 = vpop.f32.mrf.mxu1 }
 0x3c3   :  { %3299 = vst [vmem:[%s4641_s7] sm:$0xff] %v3294_v49 }
 0x3c4   :  { %3304 = vsyncpa [#allocation3], 1 }
 0x3c5   :  { %3305 = vsyncpa [#allocation5], 1 }

// kernel: _forward.1
= control target key start
LH: loop header
LB: loop body
LE: loop exit
PB: predicated region body
PF: predicated region fallthrough
CT: control target
= control target key end

     0   :  { %12 = vsyncpa [#allocation3], 0  ;;  %s4634_s0 = inlined_call_operand.vmem [shape: bf16[8,1024], index: 0, kind: input, shape index: {}]   ;;  %s4635_s1 = inlined_call_operand.hbm [shape: bf16[1024,512], index: 1, kind: input, shape index: {}]   ;;  %s4636_s2 = inlined_call_operand.vmem [shape: f32[1,512], index: 2, kind: input, shape index: {}]   ;;  %s4637_s3 = inlined_call_operand.hbm [shape: bf16[512,512], index: 3, kind: input, shape index: {}]   ;;  %s4638_s4 = inlined_call_operand.vmem [shape: f32[1,512], index: 4, kind: input, shape index: {}]   ;;  %s4639_s5 = inlined_call_operand.hbm [shape: bf16[512,128], index: 5, kind: input, shape index: {}]   ;;  %s4640_s6 = inlined_call_operand.vmem [shape: f32[1,128], index: 6, kind: input, shape index: {}]   ;;  %s4641_s7 = inlined_call_operand.vmem [shape: f32[8,128], index: 7, kind: output, shape index: {}]  }
   0x1   :  { %13 = vsyncpa [#allocation5], 0  ;;  %s4462_s24 = smov [#allocation4]   ;;  %s4463_s26 = smov [#allocation2]  }
   0x2   :  { %s35_s25 = sshll.u32 %s4462_s24, 4  ;;  %s21_s27 = sshll.u32 %s4463_s26, 4  ;;  %s36_s25 = int_to_ptr.vmem [resolvable:$true] %s35_s25  ;;  %s22_s27 = int_to_ptr.vmem [resolvable:$true] %s21_s27 }
   0x3   :  { %s4406_s28 = scalar_lea.vmem %s36_s25, 16384  ;;  %p4411_p1 = scmp.lt.s32.totalorder %s36_s25, %s36_s25 }
   0x4   :  { %p4407_p0 = scmp.ne.s32.totalorder %s36_s25, %s4406_s28  ;;  %p4412_p2 = scmp.lt.s32.totalorder %s4406_s28, %s4406_s28 }
   0x6   :  { %p4413_p3 = por %p4412_p2, %p4411_p1 }
   0x8   :  { %p4414_p4 = pnand %p4413_p3, %p4407_p0 }
   0xa   :  { %4417 = shalt.err (!%p4414_p4)
}
   0xb   :  { %s4464_s29 = smov 256   ;;  %s4465_s30 = smov 16  }
   0xc   :  { %41 = dma.hbm_to_vmem [thread:$0]  %s4637_s3, 16384, %s36_s25, [#allocation5], %s4464_s29, %s4464_s29, %s4465_s30  }
   0xd   :  { %s4426_s10 = scalar_lea.vmem %s22_s27, 32768  ;;  %p4431_p6 = scmp.lt.s32.totalorder %s22_s27, %s22_s27 }
   0xe   :  { %p4427_p5 = scmp.ne.s32.totalorder %s22_s27, %s4426_s10  ;;  %p4432_p7 = scmp.lt.s32.totalorder %s4426_s10, %s4426_s10 }
  0x10   :  { %p4433_p8 = por %p4432_p7, %p4431_p6 }
  0x12   :  { %p4434_p9 = pnand %p4433_p8, %p4427_p5 }
  0x14   :  { %4437 = shalt.err (!%p4434_p9)
}
  0x15   :  { %27 = dma.hbm_to_vmem [thread:$0]  %s4635_s1, 32768, %s22_s27, [#allocation3], %s4464_s29, %s4464_s29, %s4465_s30  }
  0x16   :  { %s4466_s13 = smov [#allocation6]  }
  0x17   :  { %s49_s14 = sshll.u32 %s4466_s13, 4  ;;  %s50_s14 = int_to_ptr.vmem [resolvable:$true] %s49_s14 }
  0x18   :  { %s4446_s15 = scalar_lea.vmem %s50_s14, 4096  ;;  %p4451_p11 = scmp.lt.s32.totalorder %s50_s14, %s50_s14 }
  0x19   :  { %p4447_p10 = scmp.ne.s32.totalorder %s50_s14, %s4446_s15  ;;  %p4452_p12 = scmp.lt.s32.totalorder %s4446_s15, %s4446_s15 }
  0x1b   :  { %p4453_p13 = por %p4452_p12, %p4451_p11 }
  0x1d   :  { %p4454_p0 = pnand %p4453_p13, %p4447_p10 }
  0x1f   :  { %4457 = shalt.err (!%p4454_p0)
}
  0x20   :  { %s4467_s3 = smov 64   ;;  %s4468_s16 = smov 4  }
  0x21   :  { %55 = dma.hbm_to_vmem [thread:$0]  %s4639_s5, 4096, %s50_s14, [#allocation5], %s4467_s3, %s4467_s3, %s4468_s16  }
  0x22   :  { %4458 = dma.done.wait [#allocation3], 32768  }
  0x23   :  { %4459 = vsyncadd [#allocation3], 4294934528 }
  0x24   :  { %4460 = dma.done.wait [#allocation5], 20480  }
  0x25   :  { %4461 = vsyncadd [#allocation5], 4294946816  ;;  %v3782_v0 = vld [vmem:[#allocation2 + $0xe4] ss:$16 sps:$4 sm:$0xff]   ;;  %v3786_v2 = vld [vmem:[#allocation2 + $0xe0] ss:$16 sps:$4 sm:$0xff]  }
  0x26   :  { %v3784_v1 = vld [vmem:[#allocation2 + $0x2e4] ss:$16 sps:$4 sm:$0xff]   ;;  %1658 = vmatprep.subr.bf16.mxu0 %v3782_v0  ;;  %v3787_v3 = vld [vmem:[#allocation2 + $0x2e0] ss:$16 sps:$4 sm:$0xff]   ;;  %v69_v48 = vld [vmem:[%s4634_s0 + $0x8] sm:$0xff] }
  0x27   :  { %1699 = vmatprep.subr.bf16.mxu1 %v3784_v1  ;;  %v3788_v4 = vld [vmem:[#allocation2 + $0xc4] ss:$16 sps:$4 sm:$0xff]   ;;  %1659 = vmatpush1.bf16.msra.mxu0 %v3786_v2  ;;  %v3792_v6 = vld [vmem:[#allocation2 + $0xc0] ss:$16 sps:$4 sm:$0xff]   ;;  %v4526_v51 = vcombine.high %v69_v48, %v69_v48 }
  0x28   :  { %1700 = vmatpush1.bf16.msra.mxu1 %v3787_v3  ;;  %v3790_v5 = vld [vmem:[#allocation2 + $0x2c4] ss:$16 sps:$4 sm:$0xff]   ;;  %1660 = vmatprep.subr.bf16.mxu0 %v3788_v4  ;;  %v3793_v7 = vld [vmem:[#allocation2 + $0x2c0] ss:$16 sps:$4 sm:$0xff]  }
  0x29   :  { %1701 = vmatprep.subr.bf16.mxu1 %v3790_v5  ;;  %v3794_v8 = vld [vmem:[#allocation2 + $0xa4] ss:$16 sps:$4 sm:$0xff]   ;;  %v3798_v10 = vld [vmem:[#allocation2 + $0xa0] ss:$16 sps:$4 sm:$0xff]   ;;  %1731 = vmatprep.mubr.bf16.mxu1 %v4526_v51 }
  0x2a   :  { %v3796_v9 = vld [vmem:[#allocation2 + $0x2a4] ss:$16 sps:$4 sm:$0xff]   ;;  %v3799_v11 = vld [vmem:[#allocation2 + $0x2a0] ss:$16 sps:$4 sm:$0xff]  }
  0x2b   :  { %1661 = vmatpush1.bf16.msra.mxu0 %v3792_v6  ;;  %v3800_v12 = vld [vmem:[#allocation2 + $0x84] ss:$16 sps:$4 sm:$0xff]   ;;  %v3804_v14 = vld [vmem:[#allocation2 + $0x80] ss:$16 sps:$4 sm:$0xff]  }
  0x2c   :  { %1702 = vmatpush1.bf16.msra.mxu1 %v3793_v7  ;;  %1662 = vmatprep.subr.bf16.mxu0 %v3794_v8  ;;  %v3802_v13 = vld [vmem:[#allocation2 + $0x284] ss:$16 sps:$4 sm:$0xff]   ;;  %v3805_v15 = vld [vmem:[#allocation2 + $0x280] ss:$16 sps:$4 sm:$0xff]   ;;  %v4532_v7 = vcombine.low %v69_v48, %v69_v48 }
  0x2d   :  { %1703 = vmatprep.subr.bf16.mxu1 %v3796_v9  ;;  %v3806_v16 = vld [vmem:[#allocation2 + $0x64] ss:$16 sps:$4 sm:$0xff]   ;;  %v3810_v18 = vld [vmem:[#allocation2 + $0x60] ss:$16 sps:$4 sm:$0xff]  }
  0x2e   :  { %v3808_v17 = vld [vmem:[#allocation2 + $0x264] ss:$16 sps:$4 sm:$0xff]   ;;  %v3811_v19 = vld [vmem:[#allocation2 + $0x260] ss:$16 sps:$4 sm:$0xff]  }
  0x2f   :  { %1663 = vmatpush1.bf16.msra.mxu0 %v3798_v10  ;;  %v3812_v20 = vld [vmem:[#allocation2 + $0x44] ss:$16 sps:$4 sm:$0xff]   ;;  %v3816_v22 = vld [vmem:[#allocation2 + $0x40] ss:$16 sps:$4 sm:$0xff]  }
  0x30   :  { %1704 = vmatpush1.bf16.msra.mxu1 %v3799_v11  ;;  %1664 = vmatprep.subr.bf16.mxu0 %v3800_v12  ;;  %v3814_v21 = vld [vmem:[#allocation2 + $0x244] ss:$16 sps:$4 sm:$0xff]   ;;  %v3817_v23 = vld [vmem:[#allocation2 + $0x240] ss:$16 sps:$4 sm:$0xff]  }
  0x31   :  { %1705 = vmatprep.subr.bf16.mxu1 %v3802_v13  ;;  %v3818_v24 = vld [vmem:[#allocation2 + $0x24] ss:$16 sps:$4 sm:$0xff]   ;;  %v3822_v26 = vld [vmem:[#allocation2 + $0x20] ss:$16 sps:$4 sm:$0xff]  }
  0x32   :  { %v3820_v25 = vld [vmem:[#allocation2 + $0x224] ss:$16 sps:$4 sm:$0xff]   ;;  %v3823_v27 = vld [vmem:[#allocation2 + $0x220] ss:$16 sps:$4 sm:$0xff]  }
  0x33   :  { %1665 = vmatpush1.bf16.msra.mxu0 %v3804_v14  ;;  %v3824_v28 = vld [vmem:[#allocation2 + $0x4] ss:$16 sps:$4 sm:$0xff]   ;;  %v3828_v30 = vld [vmem:[#allocation2] ss:$16 sps:$4 sm:$0xff]  }
  0x34   :  { %1706 = vmatpush1.bf16.msra.mxu1 %v3805_v15  ;;  %1666 = vmatprep.subr.bf16.mxu0 %v3806_v16  ;;  %v3826_v29 = vld [vmem:[#allocation2 + $0x204] ss:$16 sps:$4 sm:$0xff]   ;;  %v3829_v31 = vld [vmem:[#allocation2 + $0x200] ss:$16 sps:$4 sm:$0xff]  }
  0x35   :  { %1707 = vmatprep.subr.bf16.mxu1 %v3808_v17  ;;  %v3830_v32 = vld [vmem:[#allocation2 + $0x1e4] ss:$16 sps:$4 sm:$0xff]   ;;  %v3834_v34 = vld [vmem:[#allocation2 + $0x1e0] ss:$16 sps:$4 sm:$0xff]  }
  0x36   :  { %v3832_v33 = vld [vmem:[#allocation2 + $0x3e4] ss:$16 sps:$4 sm:$0xff]   ;;  %v3835_v35 = vld [vmem:[#allocation2 + $0x3e0] ss:$16 sps:$4 sm:$0xff]  }
  0x37   :  { %1667 = vmatpush1.bf16.msra.mxu0 %v3810_v18  ;;  %v3836_v36 = vld [vmem:[#allocation2 + $0x1c4] ss:$16 sps:$4 sm:$0xff]   ;;  %v3840_v38 = vld [vmem:[#allocation2 + $0x1c0] ss:$16 sps:$4 sm:$0xff]  }
  0x38   :  { %1708 = vmatpush1.bf16.msra.mxu1 %v3811_v19  ;;  %1668 = vmatprep.subr.bf16.mxu0 %v3812_v20  ;;  %v3838_v37 = vld [vmem:[#allocation2 + $0x3c4] ss:$16 sps:$4 sm:$0xff]   ;;  %v3841_v39 = vld [vmem:[#allocation2 + $0x3c0] ss:$16 sps:$4 sm:$0xff]  }
  0x39   :  { %1709 = vmatprep.subr.bf16.mxu1 %v3814_v21  ;;  %v3842_v40 = vld [vmem:[#allocation2 + $0x1a4] ss:$16 sps:$4 sm:$0xff]   ;;  %v3846_v42 = vld [vmem:[#allocation2 + $0x1a0] ss:$16 sps:$4 sm:$0xff]  }
  0x3a   :  { %v3844_v41 = vld [vmem:[#allocation2 + $0x3a4] ss:$16 sps:$4 sm:$0xff]   ;;  %v3847_v43 = vld [vmem:[#allocation2 + $0x3a0] ss:$16 sps:$4 sm:$0xff]  }
  0x3b   :  { %1669 = vmatpush1.bf16.msra.mxu0 %v3816_v22  ;;  %v3848_v44 = vld [vmem:[#allocation2 + $0x184] ss:$16 sps:$4 sm:$0xff]   ;;  %v3852_v49 = vld [vmem:[#allocation2 + $0x180] ss:$16 sps:$4 sm:$0xff]  }
  0x3c   :  { %1710 = vmatpush1.bf16.msra.mxu1 %v3817_v23  ;;  %1670 = vmatprep.subr.bf16.mxu0 %v3818_v24  ;;  %v3850_v45 = vld [vmem:[#allocation2 + $0x384] ss:$16 sps:$4 sm:$0xff]   ;;  %v3853_v50 = vld [vmem:[#allocation2 + $0x380] ss:$16 sps:$4 sm:$0xff]  }
  0x3d   :  { %1711 = vmatprep.subr.bf16.mxu1 %v3820_v25  ;;  %v68_v46 = vld [vmem:[%s4634_s0] sm:$0xff] }
  0x3e   :  { %v4521_v47 = vcombine.high %v68_v46, %v68_v46  ;;  %v3854_v52 = vld [vmem:[#allocation2 + $0x164] ss:$16 sps:$4 sm:$0xff]   ;;  %v3858_v54 = vld [vmem:[#allocation2 + $0x160] ss:$16 sps:$4 sm:$0xff]   ;;  %v4530_v6 = vcombine.low %v68_v46, %v68_v46 }
  0x3f   :  { %1671 = vmatpush1.bf16.msra.mxu0 %v3822_v26  ;;  %v3856_v53 = vld [vmem:[#allocation2 + $0x364] ss:$16 sps:$4 sm:$0xff]   ;;  %v3859_v55 = vld [vmem:[#allocation2 + $0x360] ss:$16 sps:$4 sm:$0xff]  }
  0x40   :  { %1712 = vmatpush1.bf16.msra.mxu1 %v3823_v27  ;;  %1672 = vmatprep.subr.bf16.mxu0 %v3824_v28  ;;  %v3860_v56 = vld [vmem:[#allocation2 + $0x144] ss:$16 sps:$4 sm:$0xff]   ;;  %v3864_v58 = vld [vmem:[#allocation2 + $0x140] ss:$16 sps:$4 sm:$0xff]  }
  0x41   :  { %1713 = vmatprep.subr.bf16.mxu1 %v3826_v29  ;;  %1690 = vmatprep.mubr.bf16.mxu0 %v4521_v47  ;;  %v3862_v57 = vld [vmem:[#allocation2 + $0x344] ss:$16 sps:$4 sm:$0xff]   ;;  %v3865_v59 = vld [vmem:[#allocation2 + $0x340] ss:$16 sps:$4 sm:$0xff]  }
  0x42   :  { %v3866_v60 = vld [vmem:[#allocation2 + $0x124] ss:$16 sps:$4 sm:$0xff]   ;;  %v3870_v62 = vld [vmem:[#allocation2 + $0x120] ss:$16 sps:$4 sm:$0xff]  }
  0x43   :  { %1673 = vmatpush1.bf16.msra.mxu0 %v3828_v30  ;;  %v3868_v61 = vld [vmem:[#allocation2 + $0x324] ss:$16 sps:$4 sm:$0xff]   ;;  %v3871_v63 = vld [vmem:[#allocation2 + $0x320] ss:$16 sps:$4 sm:$0xff]  }
  0x44   :  { %1714 = vmatpush1.bf16.msra.mxu1 %v3829_v31  ;;  %1674 = vmatprep.subr.bf16.mxu0 %v3830_v32  ;;  %v3872_v0 = vld [vmem:[#allocation2 + $0x104] ss:$16 sps:$4 sm:$0xff]   ;;  %v3876_v2 = vld [vmem:[#allocation2 + $0x100] ss:$16 sps:$4 sm:$0xff]  }
  0x45   :  { %1715 = vmatprep.subr.bf16.mxu1 %v3832_v33  ;;  %v3874_v1 = vld [vmem:[#allocation2 + $0x304] ss:$16 sps:$4 sm:$0xff]   ;;  %v3877_v3 = vld [vmem:[#allocation2 + $0x300] ss:$16 sps:$4 sm:$0xff]   ;;  %v4544_v33 = vld [vmem:[%s4634_s0 + $0x18] sm:$0xff] }
  0x46   :  { %v3884_v4 = vld [vmem:[#allocation2 + $0x4e4] ss:$16 sps:$4 sm:$0xff]   ;;  %v3882_v8 = vld [vmem:[#allocation2 + $0x4e0] ss:$16 sps:$4 sm:$0xff]  }
  0x47   :  { %1675 = vmatpush2.bf16.msra.mxu0 %v3834_v34  ;;  %v3887_v5 = vld [vmem:[#allocation2 + $0x6e4] ss:$16 sps:$4 sm:$0xff]   ;;  %v3885_v9 = vld [vmem:[#allocation2 + $0x6e0] ss:$16 sps:$4 sm:$0xff]  }
  0x48   :  { %1716 = vmatpush2.bf16.msra.mxu1 %v3835_v35  ;;  %1676 = vmatprep.subr.bf16.mxu0 %v3836_v36  ;;  %v3890_v10 = vld [vmem:[#allocation2 + $0x4c4] ss:$16 sps:$4 sm:$0xff]   ;;  %v3888_v12 = vld [vmem:[#allocation2 + $0x4c0] ss:$16 sps:$4 sm:$0xff]  }
  0x49   :  { %1717 = vmatprep.subr.bf16.mxu1 %v3838_v37  ;;  %v3893_v11 = vld [vmem:[#allocation2 + $0x6c4] ss:$16 sps:$4 sm:$0xff]   ;;  %v3891_v13 = vld [vmem:[#allocation2 + $0x6c0] ss:$16 sps:$4 sm:$0xff]   ;;  %v4552_v37 = vcombine.high %v4544_v33, %v4544_v33 }
  0x4a   :  { %v3896_v14 = vld [vmem:[#allocation2 + $0x4a4] ss:$16 sps:$4 sm:$0xff]   ;;  %v3894_v16 = vld [vmem:[#allocation2 + $0x4a0] ss:$16 sps:$4 sm:$0xff]  }
  0x4b   :  { %1677 = vmatpush2.bf16.msra.mxu0 %v3840_v38  ;;  %v3899_v15 = vld [vmem:[#allocation2 + $0x6a4] ss:$16 sps:$4 sm:$0xff]   ;;  %v3897_v17 = vld [vmem:[#allocation2 + $0x6a0] ss:$16 sps:$4 sm:$0xff]  }
  0x4c   :  { %1718 = vmatpush2.bf16.msra.mxu1 %v3841_v39  ;;  %1678 = vmatprep.subr.bf16.mxu0 %v3842_v40  ;;  %v3902_v18 = vld [vmem:[#allocation2 + $0x484] ss:$16 sps:$4 sm:$0xff]   ;;  %v3900_v20 = vld [vmem:[#allocation2 + $0x480] ss:$16 sps:$4 sm:$0xff]  }
  0x4d   :  { %1719 = vmatprep.subr.bf16.mxu1 %v3844_v41  ;;  %v3905_v19 = vld [vmem:[#allocation2 + $0x684] ss:$16 sps:$4 sm:$0xff]   ;;  %v3903_v21 = vld [vmem:[#allocation2 + $0x680] ss:$16 sps:$4 sm:$0xff]  }
  0x4e   :  { %v3908_v22 = vld [vmem:[#allocation2 + $0x464] ss:$16 sps:$4 sm:$0xff]   ;;  %v3906_v24 = vld [vmem:[#allocation2 + $0x460] ss:$16 sps:$4 sm:$0xff]  }
  0x4f   :  { %1679 = vmatpush2.bf16.msra.mxu0 %v3846_v42  ;;  %v3911_v23 = vld [vmem:[#allocation2 + $0x664] ss:$16 sps:$4 sm:$0xff]   ;;  %v3909_v25 = vld [vmem:[#allocation2 + $0x660] ss:$16 sps:$4 sm:$0xff]  }
  0x50   :  { %1720 = vmatpush2.bf16.msra.mxu1 %v3847_v43  ;;  %1680 = vmatprep.subr.bf16.mxu0 %v3848_v44  ;;  %v3914_v26 = vld [vmem:[#allocation2 + $0x444] ss:$16 sps:$4 sm:$0xff]   ;;  %v3912_v28 = vld [vmem:[#allocation2 + $0x440] ss:$16 sps:$4 sm:$0xff]  }
  0x51   :  { %1721 = vmatprep.subr.bf16.mxu1 %v3850_v45  ;;  %v3917_v27 = vld [vmem:[#allocation2 + $0x644] ss:$16 sps:$4 sm:$0xff]   ;;  %v3915_v29 = vld [vmem:[#allocation2 + $0x640] ss:$16 sps:$4 sm:$0xff]  }
  0x52   :  { %v3920_v30 = vld [vmem:[#allocation2 + $0x424] ss:$16 sps:$4 sm:$0xff]   ;;  %v3918_v34 = vld [vmem:[#allocation2 + $0x420] ss:$16 sps:$4 sm:$0xff]  }
  0x53   :  { %1681 = vmatpush2.bf16.msra.mxu0 %v3852_v49  ;;  %v3923_v31 = vld [vmem:[#allocation2 + $0x624] ss:$16 sps:$4 sm:$0xff]   ;;  %v3921_v35 = vld [vmem:[#allocation2 + $0x620] ss:$16 sps:$4 sm:$0xff]  }
  0x54   :  { %1722 = vmatpush2.bf16.msra.mxu1 %v3853_v50  ;;  %1682 = vmatprep.subr.bf16.mxu0 %v3854_v52  ;;  %v4539_v32 = vld [vmem:[%s4634_s0 + $0x10] sm:$0xff] }
  0x55   :  { %1723 = vmatprep.subr.bf16.mxu1 %v3856_v53  ;;  %v4548_v36 = vcombine.high %v4539_v32, %v4539_v32  ;;  %v3926_v38 = vld [vmem:[#allocation2 + $0x404] ss:$16 sps:$4 sm:$0xff]   ;;  %v3924_v40 = vld [vmem:[#allocation2 + $0x400] ss:$16 sps:$4 sm:$0xff]  }
  0x56   :  { %v3929_v39 = vld [vmem:[#allocation2 + $0x604] ss:$16 sps:$4 sm:$0xff]   ;;  %v3927_v41 = vld [vmem:[#allocation2 + $0x600] ss:$16 sps:$4 sm:$0xff]  }
  0x57   :  { %1683 = vmatpush2.bf16.msra.mxu0 %v3858_v54  ;;  %v3932_v42 = vld [vmem:[#allocation2 + $0x5e4] ss:$16 sps:$4 sm:$0xff]   ;;  %v3930_v44 = vld [vmem:[#allocation2 + $0x5e0] ss:$16 sps:$4 sm:$0xff]  }
  0x58   :  { %1724 = vmatpush2.bf16.msra.mxu1 %v3859_v55  ;;  %1684 = vmatprep.subr.bf16.mxu0 %v3860_v56  ;;  %v3935_v43 = vld [vmem:[#allocation2 + $0x7e4] ss:$16 sps:$4 sm:$0xff]   ;;  %v3933_v45 = vld [vmem:[#allocation2 + $0x7e0] ss:$16 sps:$4 sm:$0xff]  }
  0x59   :  { %1725 = vmatprep.subr.bf16.mxu1 %v3862_v57  ;;  %v3938_v46 = vld [vmem:[#allocation2 + $0x5c4] ss:$16 sps:$4 sm:$0xff]   ;;  %v3936_v49 = vld [vmem:[#allocation2 + $0x5c0] ss:$16 sps:$4 sm:$0xff]  }
  0x5a   :  { %v3941_v48 = vld [vmem:[#allocation2 + $0x7c4] ss:$16 sps:$4 sm:$0xff]   ;;  %v3939_v50 = vld [vmem:[#allocation2 + $0x7c0] ss:$16 sps:$4 sm:$0xff]  }
  0x5b   :  { %1685 = vmatpush2.bf16.msra.mxu0 %v3864_v58  ;;  %v3944_v52 = vld [vmem:[#allocation2 + $0x5a4] ss:$16 sps:$4 sm:$0xff]   ;;  %v3942_v54 = vld [vmem:[#allocation2 + $0x5a0] ss:$16 sps:$4 sm:$0xff]  }
  0x5c   :  { %1726 = vmatpush2.bf16.msra.mxu1 %v3865_v59  ;;  %1686 = vmatprep.subr.bf16.mxu0 %v3866_v60  ;;  %v3947_v53 = vld [vmem:[#allocation2 + $0x7a4] ss:$16 sps:$4 sm:$0xff]   ;;  %v3945_v55 = vld [vmem:[#allocation2 + $0x7a0] ss:$16 sps:$4 sm:$0xff]  }
  0x5d   :  { %1727 = vmatprep.subr.bf16.mxu1 %v3868_v61  ;;  %v3950_v56 = vld [vmem:[#allocation2 + $0x584] ss:$16 sps:$4 sm:$0xff]   ;;  %v3948_v58 = vld [vmem:[#allocation2 + $0x580] ss:$16 sps:$4 sm:$0xff]  }
  0x5e   :  { %v3953_v57 = vld [vmem:[#allocation2 + $0x784] ss:$16 sps:$4 sm:$0xff]   ;;  %v3951_v59 = vld [vmem:[#allocation2 + $0x780] ss:$16 sps:$4 sm:$0xff]  }
  0x5f   :  { %1687 = vmatpush2.bf16.msra.mxu0 %v3870_v62  ;;  %v3956_v60 = vld [vmem:[#allocation2 + $0x564] ss:$16 sps:$4 sm:$0xff]   ;;  %v3954_v62 = vld [vmem:[#allocation2 + $0x560] ss:$16 sps:$4 sm:$0xff]  }
  0x60   :  { %1728 = vmatpush2.bf16.msra.mxu1 %v3871_v63  ;;  %1688 = vmatprep.subr.bf16.mxu0 %v3872_v0  ;;  %v3959_v61 = vld [vmem:[#allocation2 + $0x764] ss:$16 sps:$4 sm:$0xff]   ;;  %v3957_v63 = vld [vmem:[#allocation2 + $0x760] ss:$16 sps:$4 sm:$0xff]  }
  0x61   :  { %1729 = vmatprep.subr.bf16.mxu1 %v3874_v1  ;;  %v3962_v0 = vld [vmem:[#allocation2 + $0x544] ss:$16 sps:$4 sm:$0xff]  }
  0x62   :  { %v3965_v1 = vld [vmem:[#allocation2 + $0x744] ss:$16 sps:$4 sm:$0xff]  }
  0x63   :  { %1689 = vmatpush2.bf16.msra.mxu0 %v3876_v2  ;;  %v3960_v2 = vld [vmem:[#allocation2 + $0x540] ss:$16 sps:$4 sm:$0xff]  }
  0x64   :  { %1730 = vmatpush2.bf16.msra.mxu1 %v3877_v3  ;;  %1740 = vmatprep.subr.bf16.mxu0 %v3884_v4  ;;  %v3963_v3 = vld [vmem:[#allocation2 + $0x740] ss:$16 sps:$4 sm:$0xff]   ;;  %v3968_v4 = vld [vmem:[#allocation2 + $0x524] ss:$16 sps:$4 sm:$0xff]  }
  0x65   :  { %1781 = vmatprep.subr.bf16.mxu1 %v3887_v5  ;;  %v3971_v5 = vld [vmem:[#allocation2 + $0x724] ss:$16 sps:$4 sm:$0xff]  }
  0x66   :  { %1691 = vmatmul.mubr.bf16.vlgmr.msra.gmra.mxu0 %v4530_v6 }
  0x67   :  { %1732 = vmatmul.mubr.bf16.vlgmr.msra.gmra.mxu1 %v4532_v7  ;;  %1741 = vmatpush1.bf16.msra.mxu0 %v3882_v8  ;;  %v3966_v8 = vld [vmem:[#allocation2 + $0x520] ss:$16 sps:$4 sm:$0xff]  }
  0x68   :  { %1782 = vmatpush1.bf16.msra.mxu1 %v3885_v9  ;;  %1742 = vmatprep.subr.bf16.mxu0 %v3890_v10  ;;  %v3969_v9 = vld [vmem:[#allocation2 + $0x720] ss:$16 sps:$4 sm:$0xff]   ;;  %v3974_v10 = vld [vmem:[#allocation2 + $0x504] ss:$16 sps:$4 sm:$0xff]  }
  0x69   :  { %1783 = vmatprep.subr.bf16.mxu1 %v3893_v11  ;;  %1772 = vmatprep.mubr.bf16.mxu0 %v4548_v36  ;;  %v3977_v11 = vld [vmem:[#allocation2 + $0x704] ss:$16 sps:$4 sm:$0xff]  }
  0x6a   :  { %1813 = vmatprep.mubr.bf16.mxu1 %v4552_v37 }
  0x6b   :  { %1743 = vmatpush1.bf16.msra.mxu0 %v3888_v12  ;;  %v3972_v12 = vld [vmem:[#allocation2 + $0x500] ss:$16 sps:$4 sm:$0xff]  }
  0x6c   :  { %1784 = vmatpush1.bf16.msra.mxu1 %v3891_v13  ;;  %1744 = vmatprep.subr.bf16.mxu0 %v3896_v14  ;;  %v3975_v13 = vld [vmem:[#allocation2 + $0x700] ss:$16 sps:$4 sm:$0xff]   ;;  %v3984_v14 = vld [vmem:[#allocation2 + $0xec] ss:$16 sps:$4 sm:$0xff]  }
  0x6d   :  { %1785 = vmatprep.subr.bf16.mxu1 %v3899_v15  ;;  %v3987_v15 = vld [vmem:[#allocation2 + $0x2ec] ss:$16 sps:$4 sm:$0xff]  }
  0x6f   :  { %1745 = vmatpush1.bf16.msra.mxu0 %v3894_v16  ;;  %v4558_v16 = vcombine.low %v4539_v32, %v4539_v32  ;;  %v4008_v32 = vld [vmem:[#allocation2 + $0x6c] ss:$16 sps:$4 sm:$0xff]  }
  0x70   :  { %1786 = vmatpush1.bf16.msra.mxu1 %v3897_v17  ;;  %1746 = vmatprep.subr.bf16.mxu0 %v3902_v18  ;;  %v4562_v17 = vcombine.low %v4544_v33, %v4544_v33  ;;  %v3982_v18 = vld [vmem:[#allocation2 + $0xe8] ss:$16 sps:$4 sm:$0xff]   ;;  %v4011_v33 = vld [vmem:[#allocation2 + $0x26c] ss:$16 sps:$4 sm:$0xff]  }
  0x71   :  { %1787 = vmatprep.subr.bf16.mxu1 %v3905_v19  ;;  %v3985_v19 = vld [vmem:[#allocation2 + $0x2e8] ss:$16 sps:$4 sm:$0xff]  }
  0x73   :  { %1747 = vmatpush1.bf16.msra.mxu0 %v3900_v20  ;;  %v3990_v20 = vld [vmem:[#allocation2 + $0xcc] ss:$16 sps:$4 sm:$0xff]  }
  0x74   :  { %1788 = vmatpush1.bf16.msra.mxu1 %v3903_v21  ;;  %1748 = vmatprep.subr.bf16.mxu0 %v3908_v22  ;;  %v3993_v21 = vld [vmem:[#allocation2 + $0x2cc] ss:$16 sps:$4 sm:$0xff]   ;;  %v3988_v22 = vld [vmem:[#allocation2 + $0xc8] ss:$16 sps:$4 sm:$0xff]  }
  0x75   :  { %1789 = vmatprep.subr.bf16.mxu1 %v3911_v23  ;;  %v3991_v23 = vld [vmem:[#allocation2 + $0x2c8] ss:$16 sps:$4 sm:$0xff]  }
  0x77   :  { %1749 = vmatpush1.bf16.msra.mxu0 %v3906_v24  ;;  %v3996_v24 = vld [vmem:[#allocation2 + $0xac] ss:$16 sps:$4 sm:$0xff]  }
  0x78   :  { %1790 = vmatpush1.bf16.msra.mxu1 %v3909_v25  ;;  %1750 = vmatprep.subr.bf16.mxu0 %v3914_v26  ;;  %v3999_v25 = vld [vmem:[#allocation2 + $0x2ac] ss:$16 sps:$4 sm:$0xff]   ;;  %v3994_v26 = vld [vmem:[#allocation2 + $0xa8] ss:$16 sps:$4 sm:$0xff]  }
  0x79   :  { %1791 = vmatprep.subr.bf16.mxu1 %v3917_v27  ;;  %v3997_v27 = vld [vmem:[#allocation2 + $0x2a8] ss:$16 sps:$4 sm:$0xff]  }
  0x7b   :  { %1751 = vmatpush1.bf16.msra.mxu0 %v3912_v28  ;;  %v4002_v28 = vld [vmem:[#allocation2 + $0x8c] ss:$16 sps:$4 sm:$0xff]  }
  0x7c   :  { %1792 = vmatpush1.bf16.msra.mxu1 %v3915_v29  ;;  %1752 = vmatprep.subr.bf16.mxu0 %v3920_v30  ;;  %v4005_v29 = vld [vmem:[#allocation2 + $0x28c] ss:$16 sps:$4 sm:$0xff]   ;;  %v4000_v30 = vld [vmem:[#allocation2 + $0x88] ss:$16 sps:$4 sm:$0xff]  }
  0x7d   :  { %1793 = vmatprep.subr.bf16.mxu1 %v3923_v31  ;;  %v4003_v31 = vld [vmem:[#allocation2 + $0x288] ss:$16 sps:$4 sm:$0xff]  }
  0x7f   :  { %1753 = vmatpush1.bf16.msra.mxu0 %v3918_v34  ;;  %v4006_v34 = vld [vmem:[#allocation2 + $0x68] ss:$16 sps:$4 sm:$0xff]  }
  0x80   :  { %1794 = vmatpush1.bf16.msra.mxu1 %v3921_v35  ;;  %1754 = vmatprep.subr.bf16.mxu0 %v3926_v38  ;;  %v4017_v35 = vld [vmem:[#allocation2 + $0x24c] ss:$16 sps:$4 sm:$0xff]   ;;  %v4012_v38 = vld [vmem:[#allocation2 + $0x48] ss:$16 sps:$4 sm:$0xff]  }
  0x81   :  { %1795 = vmatprep.subr.bf16.mxu1 %v3929_v39  ;;  %v4015_v39 = vld [vmem:[#allocation2 + $0x248] ss:$16 sps:$4 sm:$0xff]  }
  0x83   :  { %1755 = vmatpush1.bf16.msra.mxu0 %v3924_v40  ;;  %v4020_v40 = vld [vmem:[#allocation2 + $0x2c] ss:$16 sps:$4 sm:$0xff]  }
  0x84   :  { %1796 = vmatpush1.bf16.msra.mxu1 %v3927_v41  ;;  %1756 = vmatprep.subr.bf16.mxu0 %v3932_v42  ;;  %v4023_v41 = vld [vmem:[#allocation2 + $0x22c] ss:$16 sps:$4 sm:$0xff]   ;;  %v4018_v42 = vld [vmem:[#allocation2 + $0x28] ss:$16 sps:$4 sm:$0xff]  }
  0x85   :  { %1797 = vmatprep.subr.bf16.mxu1 %v3935_v43  ;;  %v4021_v43 = vld [vmem:[#allocation2 + $0x228] ss:$16 sps:$4 sm:$0xff]  }
  0x87   :  { %1757 = vmatpush2.bf16.msra.mxu0 %v3930_v44  ;;  %v4026_v44 = vld [vmem:[#allocation2 + $0xc] ss:$16 sps:$4 sm:$0xff]  }
  0x88   :  { %1798 = vmatpush2.bf16.msra.mxu1 %v3933_v45  ;;  %1758 = vmatprep.subr.bf16.mxu0 %v3938_v46  ;;  %v4029_v45 = vld [vmem:[#allocation2 + $0x20c] ss:$16 sps:$4 sm:$0xff]   ;;  %v4024_v46 = vld [vmem:[#allocation2 + $0x8] ss:$16 sps:$4 sm:$0xff]  }
  0x89   :  { %1799 = vmatprep.subr.bf16.mxu1 %v3941_v48  ;;  %v4027_v48 = vld [vmem:[#allocation2 + $0x208] ss:$16 sps:$4 sm:$0xff]  }
  0x8b   :  { %1759 = vmatpush2.bf16.msra.mxu0 %v3936_v49  ;;  %v4032_v49 = vld [vmem:[#allocation2 + $0x1ec] ss:$16 sps:$4 sm:$0xff]  }
  0x8c   :  { %1800 = vmatpush2.bf16.msra.mxu1 %v3939_v50  ;;  %1760 = vmatprep.subr.bf16.mxu0 %v3944_v52  ;;  %v4035_v50 = vld [vmem:[#allocation2 + $0x3ec] ss:$16 sps:$4 sm:$0xff]   ;;  %v4030_v52 = vld [vmem:[#allocation2 + $0x1e8] ss:$16 sps:$4 sm:$0xff]  }
  0x8d   :  { %1801 = vmatprep.subr.bf16.mxu1 %v3947_v53  ;;  %v4033_v53 = vld [vmem:[#allocation2 + $0x3e8] ss:$16 sps:$4 sm:$0xff]  }
  0x8f   :  { %1761 = vmatpush2.bf16.msra.mxu0 %v3942_v54  ;;  %v4038_v54 = vld [vmem:[#allocation2 + $0x1cc] ss:$16 sps:$4 sm:$0xff]  }
  0x90   :  { %1802 = vmatpush2.bf16.msra.mxu1 %v3945_v55  ;;  %1762 = vmatprep.subr.bf16.mxu0 %v3950_v56  ;;  %v4041_v55 = vld [vmem:[#allocation2 + $0x3cc] ss:$16 sps:$4 sm:$0xff]   ;;  %v4036_v56 = vld [vmem:[#allocation2 + $0x1c8] ss:$16 sps:$4 sm:$0xff]  }
  0x91   :  { %1803 = vmatprep.subr.bf16.mxu1 %v3953_v57  ;;  %v4039_v57 = vld [vmem:[#allocation2 + $0x3c8] ss:$16 sps:$4 sm:$0xff]  }
  0x93   :  { %1763 = vmatpush2.bf16.msra.mxu0 %v3948_v58  ;;  %v4044_v58 = vld [vmem:[#allocation2 + $0x1ac] ss:$16 sps:$4 sm:$0xff]  }
  0x94   :  { %1804 = vmatpush2.bf16.msra.mxu1 %v3951_v59  ;;  %1764 = vmatprep.subr.bf16.mxu0 %v3956_v60  ;;  %v4047_v59 = vld [vmem:[#allocation2 + $0x3ac] ss:$16 sps:$4 sm:$0xff]   ;;  %v4042_v60 = vld [vmem:[#allocation2 + $0x1a8] ss:$16 sps:$4 sm:$0xff]  }
  0x95   :  { %1805 = vmatprep.subr.bf16.mxu1 %v3959_v61  ;;  %v4045_v61 = vld [vmem:[#allocation2 + $0x3a8] ss:$16 sps:$4 sm:$0xff]  }
  0x97   :  { %1765 = vmatpush2.bf16.msra.mxu0 %v3954_v62  ;;  %v4050_v62 = vld [vmem:[#allocation2 + $0x18c] ss:$16 sps:$4 sm:$0xff]  }
  0x98   :  { %1806 = vmatpush2.bf16.msra.mxu1 %v3957_v63  ;;  %1766 = vmatprep.subr.bf16.mxu0 %v3962_v0  ;;  %v4053_v63 = vld [vmem:[#allocation2 + $0x38c] ss:$16 sps:$4 sm:$0xff]   ;;  %v4048_v0 = vld [vmem:[#allocation2 + $0x188] ss:$16 sps:$4 sm:$0xff]  }
  0x99   :  { %1807 = vmatprep.subr.bf16.mxu1 %v3965_v1  ;;  %v4051_v1 = vld [vmem:[#allocation2 + $0x388] ss:$16 sps:$4 sm:$0xff]  }
  0x9b   :  { %1767 = vmatpush2.bf16.msra.mxu0 %v3960_v2  ;;  %v4056_v2 = vld [vmem:[#allocation2 + $0x16c] ss:$16 sps:$4 sm:$0xff]  }
  0x9c   :  { %1808 = vmatpush2.bf16.msra.mxu1 %v3963_v3  ;;  %1768 = vmatprep.subr.bf16.mxu0 %v3968_v4  ;;  %v4059_v3 = vld [vmem:[#allocation2 + $0x36c] ss:$16 sps:$4 sm:$0xff]   ;;  %v4054_v4 = vld [vmem:[#allocation2 + $0x168] ss:$16 sps:$4 sm:$0xff]  }
  0x9d   :  { %1809 = vmatprep.subr.bf16.mxu1 %v3971_v5  ;;  %v4057_v5 = vld [vmem:[#allocation2 + $0x368] ss:$16 sps:$4 sm:$0xff]  }
  0x9f   :  { %1769 = vmatpush2.bf16.msra.mxu0 %v3966_v8  ;;  %v4062_v8 = vld [vmem:[#allocation2 + $0x14c] ss:$16 sps:$4 sm:$0xff]  }
  0xa0   :  { %1810 = vmatpush2.bf16.msra.mxu1 %v3969_v9  ;;  %1770 = vmatprep.subr.bf16.mxu0 %v3974_v10  ;;  %v4065_v9 = vld [vmem:[#allocation2 + $0x34c] ss:$16 sps:$4 sm:$0xff]   ;;  %v4060_v10 = vld [vmem:[#allocation2 + $0x148] ss:$16 sps:$4 sm:$0xff]  }
  0xa1   :  { %1811 = vmatprep.subr.bf16.mxu1 %v3977_v11  ;;  %v4063_v11 = vld [vmem:[#allocation2 + $0x348] ss:$16 sps:$4 sm:$0xff]  }
  0xa3   :  { %1771 = vmatpush2.bf16.msra.mxu0 %v3972_v12  ;;  %v4068_v12 = vld [vmem:[#allocation2 + $0x12c] ss:$16 sps:$4 sm:$0xff]  }
  0xa4   :  { %1812 = vmatpush2.bf16.msra.mxu1 %v3975_v13  ;;  %1822 = vmatprep.subr.bf16.mxu0 %v3984_v14  ;;  %v4071_v13 = vld [vmem:[#allocation2 + $0x32c] ss:$16 sps:$4 sm:$0xff]   ;;  %v4066_v14 = vld [vmem:[#allocation2 + $0x128] ss:$16 sps:$4 sm:$0xff]  }
  0xa5   :  { %1863 = vmatprep.subr.bf16.mxu1 %v3987_v15  ;;  %v4069_v15 = vld [vmem:[#allocation2 + $0x328] ss:$16 sps:$4 sm:$0xff]  }
  0xa6   :  { %1773 = vmatmul.mubr.bf16.vlgmr.msra.gmra.mxu0 %v4558_v16 }
  0xa7   :  { %1814 = vmatmul.mubr.bf16.vlgmr.msra.gmra.mxu1 %v4562_v17  ;;  %1823 = vmatpush1.bf16.msra.mxu0 %v3982_v18  ;;  %v4074_v18 = vld [vmem:[#allocation2 + $0x10c] ss:$16 sps:$4 sm:$0xff]  }
  0xa8   :  { %1864 = vmatpush1.bf16.msra.mxu1 %v3985_v19  ;;  %1824 = vmatprep.subr.bf16.mxu0 %v3990_v20  ;;  %v4077_v19 = vld [vmem:[#allocation2 + $0x30c] ss:$16 sps:$4 sm:$0xff]   ;;  %v4072_v20 = vld [vmem:[#allocation2 + $0x108] ss:$16 sps:$4 sm:$0xff]  }
  0xa9   :  { %1865 = vmatprep.subr.bf16.mxu1 %v3993_v21  ;;  %1854 = vmatprep.mubr.bf16.mxu0 %v4521_v47  ;;  %v4009_v47 = vld [vmem:[#allocation2 + $0x268] ss:$16 sps:$4 sm:$0xff]  }
  0xaa   :  { %1895 = vmatprep.mubr.bf16.mxu1 %v4526_v51  ;;  %v4014_v51 = vld [vmem:[#allocation2 + $0x4c] ss:$16 sps:$4 sm:$0xff]   ;;  %v4075_v21 = vld [vmem:[#allocation2 + $0x308] ss:$16 sps:$4 sm:$0xff]  }
  0xab   :  { %1825 = vmatpush1.bf16.msra.mxu0 %v3988_v22  ;;  %v4080_v22 = vld [vmem:[#allocation2 + $0x4ec] ss:$16 sps:$4 sm:$0xff]  }
  0xac   :  { %1866 = vmatpush1.bf16.msra.mxu1 %v3991_v23  ;;  %1826 = vmatprep.subr.bf16.mxu0 %v3996_v24  ;;  %v4083_v23 = vld [vmem:[#allocation2 + $0x6ec] ss:$16 sps:$4 sm:$0xff]   ;;  %v4078_v24 = vld [vmem:[#allocation2 + $0x4e8] ss:$16 sps:$4 sm:$0xff]  }
  0xad   :  { %1867 = vmatprep.subr.bf16.mxu1 %v3999_v25  ;;  %v4081_v25 = vld [vmem:[#allocation2 + $0x6e8] ss:$16 sps:$4 sm:$0xff]  }
  0xaf   :  { %1827 = vmatpush1.bf16.msra.mxu0 %v3994_v26  ;;  %v4086_v26 = vld [vmem:[#allocation2 + $0x4cc] ss:$16 sps:$4 sm:$0xff]  }
  0xb0   :  { %1868 = vmatpush1.bf16.msra.mxu1 %v3997_v27  ;;  %1828 = vmatprep.subr.bf16.mxu0 %v4002_v28  ;;  %v4089_v27 = vld [vmem:[#allocation2 + $0x6cc] ss:$16 sps:$4 sm:$0xff]   ;;  %v4084_v28 = vld [vmem:[#allocation2 + $0x4c8] ss:$16 sps:$4 sm:$0xff]  }
  0xb1   :  { %1869 = vmatprep.subr.bf16.mxu1 %v4005_v29  ;;  %v4087_v29 = vld [vmem:[#allocation2 + $0x6c8] ss:$16 sps:$4 sm:$0xff]  }
  0xb3   :  { %1829 = vmatpush1.bf16.msra.mxu0 %v4000_v30  ;;  %v4092_v30 = vld [vmem:[#allocation2 + $0x4ac] ss:$16 sps:$4 sm:$0xff]  }
  0xb4   :  { %1870 = vmatpush1.bf16.msra.mxu1 %v4003_v31  ;;  %1830 = vmatprep.subr.bf16.mxu0 %v4008_v32  ;;  %v4095_v31 = vld [vmem:[#allocation2 + $0x6ac] ss:$16 sps:$4 sm:$0xff]   ;;  %v4090_v32 = vld [vmem:[#allocation2 + $0x4a8] ss:$16 sps:$4 sm:$0xff]  }
  0xb5   :  { %1871 = vmatprep.subr.bf16.mxu1 %v4011_v33  ;;  %v4093_v33 = vld [vmem:[#allocation2 + $0x6a8] ss:$16 sps:$4 sm:$0xff]  }
  0xb7   :  { %1831 = vmatpush1.bf16.msra.mxu0 %v4006_v34  ;;  %v4098_v34 = vld [vmem:[#allocation2 + $0x48c] ss:$16 sps:$4 sm:$0xff]  }
  0xb8   :  { %1872 = vmatpush1.bf16.msra.mxu1 %v4009_v47  ;;  %1832 = vmatprep.subr.bf16.mxu0 %v4014_v51  ;;  %v4096_v47 = vld [vmem:[#allocation2 + $0x488] ss:$16 sps:$4 sm:$0xff]   ;;  %v4104_v51 = vld [vmem:[#allocation2 + $0x46c] ss:$16 sps:$4 sm:$0xff]  }
  0xb9   :  { %1873 = vmatprep.subr.bf16.mxu1 %v4017_v35  ;;  %v4107_v35 = vld [vmem:[#allocation2 + $0x66c] ss:$16 sps:$4 sm:$0xff]  }
  0xbb   :  { %1833 = vmatpush1.bf16.msra.mxu0 %v4012_v38  ;;  %v4102_v38 = vld [vmem:[#allocation2 + $0x468] ss:$16 sps:$4 sm:$0xff]  }
  0xbc   :  { %1874 = vmatpush1.bf16.msra.mxu1 %v4015_v39  ;;  %1834 = vmatprep.subr.bf16.mxu0 %v4020_v40  ;;  %v4105_v39 = vld [vmem:[#allocation2 + $0x668] ss:$16 sps:$4 sm:$0xff]  }
  0xbd   :  { %1875 = vmatprep.subr.bf16.mxu1 %v4023_v41  ;;  %v4108_v40 = vld [vmem:[#allocation2 + $0x448] ss:$16 sps:$4 sm:$0xff]  }
  0xbe   :  { %v4111_v41 = vld [vmem:[#allocation2 + $0x648] ss:$16 sps:$4 sm:$0xff]  }
  0xbf   :  { %1835 = vmatpush1.bf16.msra.mxu0 %v4018_v42  ;;  %v4116_v42 = vld [vmem:[#allocation2 + $0x42c] ss:$16 sps:$4 sm:$0xff]  }
  0xc0   :  { %1876 = vmatpush1.bf16.msra.mxu1 %v4021_v43  ;;  %1836 = vmatprep.subr.bf16.mxu0 %v4026_v44  ;;  %v4119_v43 = vld [vmem:[#allocation2 + $0x62c] ss:$16 sps:$4 sm:$0xff]   ;;  %v4114_v44 = vld [vmem:[#allocation2 + $0x428] ss:$16 sps:$4 sm:$0xff]  }
  0xc1   :  { %1877 = vmatprep.subr.bf16.mxu1 %v4029_v45  ;;  %v4117_v45 = vld [vmem:[#allocation2 + $0x628] ss:$16 sps:$4 sm:$0xff]  }
  0xc3   :  { %1837 = vmatpush1.bf16.msra.mxu0 %v4024_v46  ;;  %v4122_v46 = vld [vmem:[#allocation2 + $0x40c] ss:$16 sps:$4 sm:$0xff]  }
  0xc4   :  { %1878 = vmatpush1.bf16.msra.mxu1 %v4027_v48  ;;  %1838 = vmatprep.subr.bf16.mxu0 %v4032_v49  ;;  %v4125_v48 = vld [vmem:[#allocation2 + $0x60c] ss:$16 sps:$4 sm:$0xff]   ;;  %v4120_v49 = vld [vmem:[#allocation2 + $0x408] ss:$16 sps:$4 sm:$0xff]  }
  0xc5   :  { %1879 = vmatprep.subr.bf16.mxu1 %v4035_v50  ;;  %v4123_v50 = vld [vmem:[#allocation2 + $0x608] ss:$16 sps:$4 sm:$0xff]  }
  0xc7   :  { %1839 = vmatpush2.bf16.msra.mxu0 %v4030_v52  ;;  %v4128_v52 = vld [vmem:[#allocation2 + $0x5ec] ss:$16 sps:$4 sm:$0xff]  }
  0xc8   :  { %1880 = vmatpush2.bf16.msra.mxu1 %v4033_v53  ;;  %1840 = vmatprep.subr.bf16.mxu0 %v4038_v54  ;;  %v4131_v53 = vld [vmem:[#allocation2 + $0x7ec] ss:$16 sps:$4 sm:$0xff]   ;;  %v4126_v54 = vld [vmem:[#allocation2 + $0x5e8] ss:$16 sps:$4 sm:$0xff]  }
  0xc9   :  { %1881 = vmatprep.subr.bf16.mxu1 %v4041_v55  ;;  %v4129_v55 = vld [vmem:[#allocation2 + $0x7e8] ss:$16 sps:$4 sm:$0xff]  }
  0xcb   :  { %1841 = vmatpush2.bf16.msra.mxu0 %v4036_v56  ;;  %v4134_v56 = vld [vmem:[#allocation2 + $0x5cc] ss:$16 sps:$4 sm:$0xff]  }
  0xcc   :  { %1882 = vmatpush2.bf16.msra.mxu1 %v4039_v57  ;;  %1842 = vmatprep.subr.bf16.mxu0 %v4044_v58  ;;  %v4137_v57 = vld [vmem:[#allocation2 + $0x7cc] ss:$16 sps:$4 sm:$0xff]   ;;  %v4132_v58 = vld [vmem:[#allocation2 + $0x5c8] ss:$16 sps:$4 sm:$0xff]  }
  0xcd   :  { %1883 = vmatprep.subr.bf16.mxu1 %v4047_v59  ;;  %v4135_v59 = vld [vmem:[#allocation2 + $0x7c8] ss:$16 sps:$4 sm:$0xff]  }
  0xcf   :  { %1843 = vmatpush2.bf16.msra.mxu0 %v4042_v60  ;;  %v4140_v60 = vld [vmem:[#allocation2 + $0x5ac] ss:$16 sps:$4 sm:$0xff]  }
  0xd0   :  { %1884 = vmatpush2.bf16.msra.mxu1 %v4045_v61  ;;  %1844 = vmatprep.subr.bf16.mxu0 %v4050_v62  ;;  %v4143_v61 = vld [vmem:[#allocation2 + $0x7ac] ss:$16 sps:$4 sm:$0xff]   ;;  %v4138_v62 = vld [vmem:[#allocation2 + $0x5a8] ss:$16 sps:$4 sm:$0xff]  }
  0xd1   :  { %1885 = vmatprep.subr.bf16.mxu1 %v4053_v63  ;;  %v4141_v63 = vld [vmem:[#allocation2 + $0x7a8] ss:$16 sps:$4 sm:$0xff]  }
  0xd3   :  { %1845 = vmatpush2.bf16.msra.mxu0 %v4048_v0  ;;  %v4146_v0 = vld [vmem:[#allocation2 + $0x58c] ss:$16 sps:$4 sm:$0xff]  }
  0xd4   :  { %1886 = vmatpush2.bf16.msra.mxu1 %v4051_v1  ;;  %1846 = vmatprep.subr.bf16.mxu0 %v4056_v2  ;;  %v4149_v1 = vld [vmem:[#allocation2 + $0x78c] ss:$16 sps:$4 sm:$0xff]   ;;  %v4144_v2 = vld [vmem:[#allocation2 + $0x588] ss:$16 sps:$4 sm:$0xff]  }
  0xd5   :  { %1887 = vmatprep.subr.bf16.mxu1 %v4059_v3  ;;  %v4147_v3 = vld [vmem:[#allocation2 + $0x788] ss:$16 sps:$4 sm:$0xff]  }
  0xd7   :  { %1847 = vmatpush2.bf16.msra.mxu0 %v4054_v4  ;;  %v4152_v4 = vld [vmem:[#allocation2 + $0x56c] ss:$16 sps:$4 sm:$0xff]  }
  0xd8   :  { %1888 = vmatpush2.bf16.msra.mxu1 %v4057_v5  ;;  %1848 = vmatprep.subr.bf16.mxu0 %v4062_v8  ;;  %v4155_v5 = vld [vmem:[#allocation2 + $0x76c] ss:$16 sps:$4 sm:$0xff]   ;;  %v4150_v8 = vld [vmem:[#allocation2 + $0x568] ss:$16 sps:$4 sm:$0xff]  }
  0xd9   :  { %1889 = vmatprep.subr.bf16.mxu1 %v4065_v9  ;;  %v4153_v9 = vld [vmem:[#allocation2 + $0x768] ss:$16 sps:$4 sm:$0xff]  }
  0xdb   :  { %1849 = vmatpush2.bf16.msra.mxu0 %v4060_v10  ;;  %v4158_v10 = vld [vmem:[#allocation2 + $0x54c] ss:$16 sps:$4 sm:$0xff]  }
  0xdc   :  { %1890 = vmatpush2.bf16.msra.mxu1 %v4063_v11  ;;  %1850 = vmatprep.subr.bf16.mxu0 %v4068_v12  ;;  %v4161_v11 = vld [vmem:[#allocation2 + $0x74c] ss:$16 sps:$4 sm:$0xff]   ;;  %v4156_v12 = vld [vmem:[#allocation2 + $0x548] ss:$16 sps:$4 sm:$0xff]  }
  0xdd   :  { %1891 = vmatprep.subr.bf16.mxu1 %v4071_v13  ;;  %v4159_v13 = vld [vmem:[#allocation2 + $0x748] ss:$16 sps:$4 sm:$0xff]  }
  0xdf   :  { %1851 = vmatpush2.bf16.msra.mxu0 %v4066_v14  ;;  %v4164_v14 = vld [vmem:[#allocation2 + $0x52c] ss:$16 sps:$4 sm:$0xff]  }
  0xe0   :  { %1892 = vmatpush2.bf16.msra.mxu1 %v4069_v15  ;;  %1852 = vmatprep.subr.bf16.mxu0 %v4074_v18  ;;  %v4167_v15 = vld [vmem:[#allocation2 + $0x72c] ss:$16 sps:$4 sm:$0xff]   ;;  %v4162_v18 = vld [vmem:[#allocation2 + $0x528] ss:$16 sps:$4 sm:$0xff]  }
  0xe1   :  { %1893 = vmatprep.subr.bf16.mxu1 %v4077_v19  ;;  %v4165_v19 = vld [vmem:[#allocation2 + $0x728] ss:$16 sps:$4 sm:$0xff]  }
  0xe3   :  { %1853 = vmatpush2.bf16.msra.mxu0 %v4072_v20  ;;  %v4170_v20 = vld [vmem:[#allocation2 + $0x50c] ss:$16 sps:$4 sm:$0xff]  }
  0xe4   :  { %1894 = vmatpush2.bf16.msra.mxu1 %v4075_v21  ;;  %1904 = vmatprep.subr.bf16.mxu0 %v4080_v22  ;;  %v4173_v21 = vld [vmem:[#allocation2 + $0x70c] ss:$16 sps:$4 sm:$0xff]   ;;  %v4168_v22 = vld [vmem:[#allocation2 + $0x508] ss:$16 sps:$4 sm:$0xff]  }
  0xe5   :  { %1945 = vmatprep.subr.bf16.mxu1 %v4083_v23  ;;  %v4171_v23 = vld [vmem:[#allocation2 + $0x708] ss:$16 sps:$4 sm:$0xff]  }
  0xe6   :  { %1855 = vmatmul.mubr.bf16.vlgmr.msra.gmra.mxu0 %v4530_v6  ;;  %v4101_v6 = vld [vmem:[#allocation2 + $0x68c] ss:$16 sps:$4 sm:$0xff]  }
  0xe7   :  { %1896 = vmatmul.mubr.bf16.vlgmr.msra.gmra.mxu1 %v4532_v7  ;;  %1905 = vmatpush1.bf16.msra.mxu0 %v4078_v24  ;;  %v4099_v7 = vld [vmem:[#allocation2 + $0x688] ss:$16 sps:$4 sm:$0xff]   ;;  %v4176_v24 = vld [vmem:[#allocation4 + $0xe4] ss:$16 sps:$4 sm:$0xff]  }
  0xe8   :  { %1946 = vmatpush1.bf16.msra.mxu1 %v4081_v25  ;;  %1906 = vmatprep.subr.bf16.mxu0 %v4086_v26  ;;  %v4174_v25 = vld [vmem:[#allocation4 + $0xe0] ss:$16 sps:$4 sm:$0xff]   ;;  %v4179_v26 = vld [vmem:[#allocation4 + $0xc4] ss:$16 sps:$4 sm:$0xff]  }
  0xe9   :  { %1947 = vmatprep.subr.bf16.mxu1 %v4089_v27  ;;  %1936 = vmatprep.mubr.bf16.mxu0 %v4548_v36  ;;  %v4110_v36 = vld [vmem:[#allocation2 + $0x44c] ss:$16 sps:$4 sm:$0xff]  }
  0xea   :  { %1977 = vmatprep.mubr.bf16.mxu1 %v4552_v37  ;;  %v4113_v37 = vld [vmem:[#allocation2 + $0x64c] ss:$16 sps:$4 sm:$0xff]  }
  0xeb   :  { %1907 = vmatpush1.bf16.msra.mxu0 %v4084_v28 }
  0xec   :  { %1948 = vmatpush1.bf16.msra.mxu1 %v4087_v29  ;;  %1908 = vmatprep.subr.bf16.mxu0 %v4092_v30  ;;  %v4177_v29 = vld [vmem:[#allocation4 + $0xc0] ss:$16 sps:$4 sm:$0xff]  }
  0xed   :  { %1949 = vmatprep.subr.bf16.mxu1 %v4095_v31 }
  0xef   :  { %1909 = vmatpush1.bf16.msra.mxu0 %v4090_v32  ;;  %v4182_v32 = vld [vmem:[#allocation4 + $0xa4] ss:$16 sps:$4 sm:$0xff]  }
  0xf0   :  { %1950 = vmatpush1.bf16.msra.mxu1 %v4093_v33  ;;  %1910 = vmatprep.subr.bf16.mxu0 %v4098_v34 }
  0xf1   :  { %1951 = vmatprep.subr.bf16.mxu1 %v4101_v6  ;;  %v4180_v6 = vld [vmem:[#allocation4 + $0xa0] ss:$16 sps:$4 sm:$0xff]  }
  0xf3   :  { %1911 = vmatpush1.bf16.msra.mxu0 %v4096_v47 }
  0xf4   :  { %1952 = vmatpush1.bf16.msra.mxu1 %v4099_v7  ;;  %1912 = vmatprep.subr.bf16.mxu0 %v4104_v51  ;;  %v4185_v51 = vld [vmem:[#allocation4 + $0x84] ss:$16 sps:$4 sm:$0xff]  }
  0xf5   :  { %1953 = vmatprep.subr.bf16.mxu1 %v4107_v35  ;;  %v4270_v35 = vld [vmem:[#allocation4 + $0x2e0] ss:$16 sps:$4 sm:$0xff]  }
  0xf7   :  { %1913 = vmatpush1.bf16.msra.mxu0 %v4102_v38  ;;  %v4188_v38 = vld [vmem:[#allocation4 + $0x64] ss:$16 sps:$4 sm:$0xff]  }
  0xf8   :  { %1954 = vmatpush1.bf16.msra.mxu1 %v4105_v39  ;;  %1914 = vmatprep.subr.bf16.mxu0 %v4110_v36  ;;  %v4273_v39 = vld [vmem:[#allocation4 + $0x2c0] ss:$16 sps:$4 sm:$0xff]   ;;  %v4275_v36 = vld [vmem:[#allocation4 + $0x2c4] ss:$16 sps:$4 sm:$0xff]  }
  0xf9   :  { %1955 = vmatprep.subr.bf16.mxu1 %v4113_v37  ;;  %v4186_v37 = vld [vmem:[#allocation4 + $0x60] ss:$16 sps:$4 sm:$0xff]  }
  0xfb   :  { %1915 = vmatpush1.bf16.msra.mxu0 %v4108_v40  ;;  %v4278_v40 = vld [vmem:[#allocation4 + $0x2a4] ss:$16 sps:$4 sm:$0xff]  }
  0xfc   :  { %1956 = vmatpush1.bf16.msra.mxu1 %v4111_v41  ;;  %1916 = vmatprep.subr.bf16.mxu0 %v4116_v42  ;;  %v4191_v41 = vld [vmem:[#allocation4 + $0x44] ss:$16 sps:$4 sm:$0xff]   ;;  %v4276_v42 = vld [vmem:[#allocation4 + $0x2a0] ss:$16 sps:$4 sm:$0xff]  }
  0xfd   :  { %1957 = vmatprep.subr.bf16.mxu1 %v4119_v43  ;;  %v4189_v43 = vld [vmem:[#allocation4 + $0x40] ss:$16 sps:$4 sm:$0xff]  }
  0xff   :  { %1917 = vmatpush1.bf16.msra.mxu0 %v4114_v44  ;;  %v4281_v44 = vld [vmem:[#allocation4 + $0x284] ss:$16 sps:$4 sm:$0xff]  }
 0x100   :  { %1958 = vmatpush1.bf16.msra.mxu1 %v4117_v45  ;;  %1918 = vmatprep.subr.bf16.mxu0 %v4122_v46  ;;  %v4194_v45 = vld [vmem:[#allocation4 + $0x24] ss:$16 sps:$4 sm:$0xff]   ;;  %v4279_v46 = vld [vmem:[#allocation4 + $0x280] ss:$16 sps:$4 sm:$0xff]  }
 0x101   :  { %1959 = vmatprep.subr.bf16.mxu1 %v4125_v48  ;;  %v4192_v48 = vld [vmem:[#allocation4 + $0x20] ss:$16 sps:$4 sm:$0xff]  }
 0x103   :  { %1919 = vmatpush1.bf16.msra.mxu0 %v4120_v49  ;;  %v4284_v49 = vld [vmem:[#allocation4 + $0x264] ss:$16 sps:$4 sm:$0xff]  }
 0x104   :  { %1960 = vmatpush1.bf16.msra.mxu1 %v4123_v50  ;;  %1920 = vmatprep.subr.bf16.mxu0 %v4128_v52  ;;  %v4197_v50 = vld [vmem:[#allocation4 + $0x4] ss:$16 sps:$4 sm:$0xff]   ;;  %v4282_v52 = vld [vmem:[#allocation4 + $0x260] ss:$16 sps:$4 sm:$0xff]  }
 0x105   :  { %1961 = vmatprep.subr.bf16.mxu1 %v4131_v53  ;;  %v4195_v53 = vld [vmem:[#allocation4] ss:$16 sps:$4 sm:$0xff]  }
 0x107   :  { %1921 = vmatpush2.bf16.msra.mxu0 %v4126_v54  ;;  %v4287_v54 = vld [vmem:[#allocation4 + $0x244] ss:$16 sps:$4 sm:$0xff]  }
 0x108   :  { %1962 = vmatpush2.bf16.msra.mxu1 %v4129_v55  ;;  %1922 = vmatprep.subr.bf16.mxu0 %v4134_v56  ;;  %v4200_v55 = vld [vmem:[#allocation4 + $0x1e4] ss:$16 sps:$4 sm:$0xff]   ;;  %v4285_v56 = vld [vmem:[#allocation4 + $0x240] ss:$16 sps:$4 sm:$0xff]  }
 0x109   :  { %1963 = vmatprep.subr.bf16.mxu1 %v4137_v57  ;;  %v4198_v57 = vld [vmem:[#allocation4 + $0x1e0] ss:$16 sps:$4 sm:$0xff]  }
 0x10b   :  { %1923 = vmatpush2.bf16.msra.mxu0 %v4132_v58  ;;  %v4290_v58 = vld [vmem:[#allocation4 + $0x224] ss:$16 sps:$4 sm:$0xff]  }
 0x10c   :  { %1964 = vmatpush2.bf16.msra.mxu1 %v4135_v59  ;;  %1924 = vmatprep.subr.bf16.mxu0 %v4140_v60  ;;  %v4203_v59 = vld [vmem:[#allocation4 + $0x1c4] ss:$16 sps:$4 sm:$0xff]   ;;  %v4288_v60 = vld [vmem:[#allocation4 + $0x220] ss:$16 sps:$4 sm:$0xff]  }
 0x10d   :  { %1965 = vmatprep.subr.bf16.mxu1 %v4143_v61  ;;  %v4201_v61 = vld [vmem:[#allocation4 + $0x1c0] ss:$16 sps:$4 sm:$0xff]  }
 0x10f   :  { %1925 = vmatpush2.bf16.msra.mxu0 %v4138_v62  ;;  %v4293_v62 = vld [vmem:[#allocation4 + $0x204] ss:$16 sps:$4 sm:$0xff]  }
 0x110   :  { %1966 = vmatpush2.bf16.msra.mxu1 %v4141_v63  ;;  %1926 = vmatprep.subr.bf16.mxu0 %v4146_v0  ;;  %v4206_v63 = vld [vmem:[#allocation4 + $0x1a4] ss:$16 sps:$4 sm:$0xff]   ;;  %v4291_v0 = vld [vmem:[#allocation4 + $0x200] ss:$16 sps:$4 sm:$0xff]  }
 0x111   :  { %1967 = vmatprep.subr.bf16.mxu1 %v4149_v1  ;;  %v4204_v1 = vld [vmem:[#allocation4 + $0x1a0] ss:$16 sps:$4 sm:$0xff]  }
 0x113   :  { %1927 = vmatpush2.bf16.msra.mxu0 %v4144_v2  ;;  %v4296_v2 = vld [vmem:[#allocation4 + $0x3e4] ss:$16 sps:$4 sm:$0xff]  }
 0x114   :  { %1968 = vmatpush2.bf16.msra.mxu1 %v4147_v3  ;;  %1928 = vmatprep.subr.bf16.mxu0 %v4152_v4  ;;  %v4209_v3 = vld [vmem:[#allocation4 + $0x184] ss:$16 sps:$4 sm:$0xff]   ;;  %v4294_v4 = vld [vmem:[#allocation4 + $0x3e0] ss:$16 sps:$4 sm:$0xff]  }
 0x115   :  { %1969 = vmatprep.subr.bf16.mxu1 %v4155_v5  ;;  %v4207_v5 = vld [vmem:[#allocation4 + $0x180] ss:$16 sps:$4 sm:$0xff]  }
 0x117   :  { %1929 = vmatpush2.bf16.msra.mxu0 %v4150_v8  ;;  %v4299_v8 = vld [vmem:[#allocation4 + $0x3c4] ss:$16 sps:$4 sm:$0xff]  }
 0x118   :  { %1970 = vmatpush2.bf16.msra.mxu1 %v4153_v9  ;;  %1930 = vmatprep.subr.bf16.mxu0 %v4158_v10  ;;  %v4212_v9 = vld [vmem:[#allocation4 + $0x164] ss:$16 sps:$4 sm:$0xff]   ;;  %v330_v10 = vlaneseq }
 0x119   :  { %1971 = vmatprep.subr.bf16.mxu1 %v4161_v11  ;;  %v4297_v11 = vld [vmem:[#allocation4 + $0x3c0] ss:$16 sps:$4 sm:$0xff]  }
 0x11b   :  { %1931 = vmatpush2.bf16.msra.mxu0 %v4156_v12  ;;  %v4210_v12 = vld [vmem:[#allocation4 + $0x160] ss:$16 sps:$4 sm:$0xff]  }
 0x11c   :  { %1972 = vmatpush2.bf16.msra.mxu1 %v4159_v13  ;;  %1932 = vmatprep.subr.bf16.mxu0 %v4164_v14  ;;  %v4302_v13 = vld [vmem:[#allocation4 + $0x3a4] ss:$16 sps:$4 sm:$0xff]  }
 0x11d   :  { %1973 = vmatprep.subr.bf16.mxu1 %v4167_v15  ;;  %v4215_v14 = vld [vmem:[#allocation4 + $0x144] ss:$16 sps:$4 sm:$0xff]   ;;  %v4582_v15 = vshrl.u32 %v330_v10, 7  ;;  %v4248_v10 = vld [vmem:[#allocation4 + $0x1ec] ss:$16 sps:$4 sm:$0xff]  }
 0x11f   :  { %1933 = vmatpush2.bf16.msra.mxu0 %v4162_v18  ;;  %v4300_v18 = vld [vmem:[#allocation4 + $0x3a0] ss:$16 sps:$4 sm:$0xff]  }
 0x120   :  { %1974 = vmatpush2.bf16.msra.mxu1 %v4165_v19  ;;  %1934 = vmatprep.subr.bf16.mxu0 %v4170_v20  ;;  %v4213_v19 = vld [vmem:[#allocation4 + $0x140] ss:$16 sps:$4 sm:$0xff]   ;;  %v4305_v20 = vld [vmem:[#allocation4 + $0x384] ss:$16 sps:$4 sm:$0xff]  }
 0x121   :  { %1975 = vmatprep.subr.bf16.mxu1 %v4173_v21  ;;  %v4218_v21 = vld [vmem:[#allocation4 + $0x124] ss:$16 sps:$4 sm:$0xff]  }
 0x123   :  { %1935 = vmatpush2.bf16.msra.mxu0 %v4168_v22  ;;  %v332_v22 = vsub.s32 0, %v4582_v15 }
 0x124   :  { %1976 = vmatpush2.bf16.msra.mxu1 %v4171_v23  ;;  %2784 = vmatprep.subr.bf16.mxu0 %v4176_v24  ;;  %v4588_v23 = vld [vmem:[%s4636_s2] sm:$0xf] }
 0x125   :  { %v4303_v24 = vld [vmem:[#allocation4 + $0x380] ss:$16 sps:$4 sm:$0xff]  }
 0x126   :  { %v4572_v27 = vpop.f32.mrf.mxu0  ;;  %1937 = vmatmul.mubr.bf16.vlgmr.msra.gmra.mxu0 %v4558_v16  ;;  %v4183_v16 = vld [vmem:[#allocation4 + $0x80] ss:$16 sps:$4 sm:$0xff]  }
 0x127   :  { %v4574_v28 = vpop.f32.mrf.mxu1  ;;  %1978 = vmatmul.mubr.bf16.vlgmr.msra.gmra.mxu1 %v4562_v17  ;;  %2785 = vmatpush1.bf16.msra.mxu0 %v4174_v25  ;;  %v4272_v17 = vld [vmem:[#allocation4 + $0x2e4] ss:$16 sps:$4 sm:$0xff]   ;;  %v336_v25 = vsub.s32 1, %v4582_v15 }
 0x128   :  { %v4578_v30 = vpop.f32.mrf.mxu0  ;;  %2786 = vmatprep.subr.bf16.mxu0 %v4179_v26  ;;  %2825 = vmatprep.subr.bf16.mxu1 %v4272_v17  ;;  %v4216_v26 = vld [vmem:[#allocation4 + $0x120] ss:$16 sps:$4 sm:$0xff]  }
 0x129   :  { %v4580_v31 = vpop.f32.mrf.mxu1  ;;  %2826 = vmatpush1.bf16.msra.mxu1 %v4270_v35  ;;  %v4309_v35 = vld [vmem:[#allocation4 + $0x340] ss:$16 sps:$4 sm:$0xff]  }
 0x12a   :  { %v1696_v33 = vpop.f32.mrf.mxu0  ;;  %2827 = vmatprep.subr.bf16.mxu1 %v4275_v36 }
 0x12b   :  { %v1737_v34 = vpop.f32.mrf.mxu1  ;;  %2787 = vmatpush1.bf16.msra.mxu0 %v4177_v29  ;;  %v4308_v29 = vld [vmem:[#allocation4 + $0x364] ss:$16 sps:$4 sm:$0xff]   ;;  %v333_v33 = vrot.slane %v4588_v23, %v332_v22 }
 0x12c   :  { %v1697_v47 = vpop.f32.mrf.mxu0  ;;  %2788 = vmatprep.subr.bf16.mxu0 %v4182_v32  ;;  %v4221_v32 = vld [vmem:[#allocation4 + $0x104] ss:$16 sps:$4 sm:$0xff]   ;;  %v4306_v34 = vld [vmem:[#allocation4 + $0x360] ss:$16 sps:$4 sm:$0xff]  }
 0x12d   :  { %v1738_v7 = vpop.f32.mrf.mxu1  ;;  %2828 = vmatpush1.bf16.msra.mxu1 %v4273_v39  ;;  %v4219_v47 = vld [vmem:[#allocation4 + $0x100] ss:$16 sps:$4 sm:$0xff]  }
 0x12e   :  { %2829 = vmatprep.subr.bf16.mxu1 %v4278_v40  ;;  %v4311_v7 = vld [vmem:[#allocation4 + $0x344] ss:$16 sps:$4 sm:$0xff]  }
 0x12f   :  { %2789 = vmatpush1.bf16.msra.mxu0 %v4180_v6  ;;  %v337_v6 = vrot.slane %v4588_v23, %v336_v25 }
 0x130   :  { %2790 = vmatprep.subr.bf16.mxu0 %v4185_v51  ;;  %v4224_v51 = vld [vmem:[#allocation4 + $0xec] ss:$16 sps:$4 sm:$0xff]  }
 0x131   :  { %2830 = vmatpush1.bf16.msra.mxu1 %v4276_v42  ;;  %v1695_v17 = vadd.f32 %v4578_v30, %v337_v6  ;;  %v4264_v6 = vld [vmem:[#allocation4 + $0x128] ss:$16 sps:$4 sm:$0xff]  }
 0x132   :  { %2831 = vmatprep.subr.bf16.mxu1 %v4281_v44 }
 0x133   :  { %2791 = vmatpush1.bf16.msra.mxu0 %v4183_v16  ;;  %v1693_v16 = vadd.f32 %v4572_v27, %v333_v33 }
 0x134   :  { %2792 = vmatprep.subr.bf16.mxu0 %v4188_v38 }
 0x135   :  { %2832 = vmatpush1.bf16.msra.mxu1 %v4279_v46  ;;  %v1734_v38 = vadd.f32 %v4574_v28, %v1693_v16 }
 0x136   :  { %2833 = vmatprep.subr.bf16.mxu1 %v4284_v49 }
 0x137   :  { %2793 = vmatpush1.bf16.msra.mxu0 %v4186_v37  ;;  %v1736_v37 = vadd.f32 %v4580_v31, %v1695_v17  ;;  %v4267_v17 = vld [vmem:[#allocation4 + $0x108] ss:$16 sps:$4 sm:$0xff]  }
 0x138   :  { %2794 = vmatprep.subr.bf16.mxu0 %v4191_v41 }
 0x139   :  { %2834 = vmatpush1.bf16.msra.mxu1 %v4282_v52  ;;  %v4317_v52 = vld [vmem:[#allocation4 + $0x304] ss:$16 sps:$4 sm:$0xff]  }
 0x13a   :  { %2835 = vmatprep.subr.bf16.mxu1 %v4287_v54  ;;  %v4315_v54 = vld [vmem:[#allocation4 + $0x300] ss:$16 sps:$4 sm:$0xff]  }
 0x13b   :  { %2795 = vmatpush1.bf16.msra.mxu0 %v4189_v43  ;;  %v4314_v43 = vld [vmem:[#allocation4 + $0x324] ss:$16 sps:$4 sm:$0xff]  }
 0x13c   :  { %2796 = vmatprep.subr.bf16.mxu0 %v4194_v45  ;;  %v4312_v45 = vld [vmem:[#allocation4 + $0x320] ss:$16 sps:$4 sm:$0xff]  }
 0x13d   :  { %2836 = vmatpush1.bf16.msra.mxu1 %v4285_v56 }
 0x13e   :  { %2837 = vmatprep.subr.bf16.mxu1 %v4290_v58  ;;  %v4320_v58 = vld [vmem:[#allocation4 + $0x2ec] ss:$16 sps:$4 sm:$0xff]  }
 0x13f   :  { %2797 = vmatpush1.bf16.msra.mxu0 %v4192_v48 }
 0x140   :  { %2798 = vmatprep.subr.bf16.mxu0 %v4197_v50 }
 0x141   :  { %2838 = vmatpush1.bf16.msra.mxu1 %v4288_v60  ;;  %v4230_v60 = vld [vmem:[#allocation4 + $0xac] ss:$16 sps:$4 sm:$0xff]  }
 0x142   :  { %2839 = vmatprep.subr.bf16.mxu1 %v4293_v62  ;;  %v4233_v62 = vld [vmem:[#allocation4 + $0x8c] ss:$16 sps:$4 sm:$0xff]  }
 0x143   :  { %2799 = vmatpush1.bf16.msra.mxu0 %v4195_v53 }
 0x144   :  { %2800 = vmatprep.subr.bf16.mxu0 %v4200_v55  ;;  %v4222_v55 = vld [vmem:[#allocation4 + $0xe8] ss:$16 sps:$4 sm:$0xff]  }
 0x145   :  { %2840 = vmatpush1.bf16.msra.mxu1 %v4291_v0  ;;  %v4236_v0 = vld [vmem:[#allocation4 + $0x6c] ss:$16 sps:$4 sm:$0xff]  }
 0x146   :  { %2841 = vmatprep.subr.bf16.mxu1 %v4296_v2  ;;  %v4239_v2 = vld [vmem:[#allocation4 + $0x4c] ss:$16 sps:$4 sm:$0xff]  }
 0x147   :  { %2801 = vmatpush2.bf16.msra.mxu0 %v4198_v57  ;;  %v4227_v57 = vld [vmem:[#allocation4 + $0xcc] ss:$16 sps:$4 sm:$0xff]  }
 0x148   :  { %2802 = vmatprep.subr.bf16.mxu0 %v4203_v59  ;;  %v4225_v59 = vld [vmem:[#allocation4 + $0xc8] ss:$16 sps:$4 sm:$0xff]  }
 0x149   :  { %2842 = vmatpush2.bf16.msra.mxu1 %v4294_v4  ;;  %v4242_v4 = vld [vmem:[#allocation4 + $0x2c] ss:$16 sps:$4 sm:$0xff]  }
 0x14a   :  { %2843 = vmatprep.subr.bf16.mxu1 %v4299_v8  ;;  %v4245_v8 = vld [vmem:[#allocation4 + $0xc] ss:$16 sps:$4 sm:$0xff]  }
 0x14b   :  { %2803 = vmatpush2.bf16.msra.mxu0 %v4201_v61  ;;  %v4228_v61 = vld [vmem:[#allocation4 + $0xa8] ss:$16 sps:$4 sm:$0xff]  }
 0x14c   :  { %2804 = vmatprep.subr.bf16.mxu0 %v4206_v63  ;;  %v4231_v63 = vld [vmem:[#allocation4 + $0x88] ss:$16 sps:$4 sm:$0xff]  }
 0x14d   :  { %2844 = vmatpush2.bf16.msra.mxu1 %v4297_v11  ;;  %v4246_v11 = vld [vmem:[#allocation4 + $0x1e8] ss:$16 sps:$4 sm:$0xff]  }
 0x14e   :  { %2845 = vmatprep.subr.bf16.mxu1 %v4302_v13  ;;  %v4249_v13 = vld [vmem:[#allocation4 + $0x1c8] ss:$16 sps:$4 sm:$0xff]  }
 0x14f   :  { %2805 = vmatpush2.bf16.msra.mxu0 %v4204_v1  ;;  %v4234_v1 = vld [vmem:[#allocation4 + $0x68] ss:$16 sps:$4 sm:$0xff]  }
 0x150   :  { %2806 = vmatprep.subr.bf16.mxu0 %v4209_v3  ;;  %v4237_v3 = vld [vmem:[#allocation4 + $0x48] ss:$16 sps:$4 sm:$0xff]  }
 0x151   :  { %2846 = vmatpush2.bf16.msra.mxu1 %v4300_v18  ;;  %v4252_v18 = vld [vmem:[#allocation4 + $0x1a8] ss:$16 sps:$4 sm:$0xff]  }
 0x152   :  { %2847 = vmatprep.subr.bf16.mxu1 %v4305_v20  ;;  %v4255_v20 = vld [vmem:[#allocation4 + $0x188] ss:$16 sps:$4 sm:$0xff]  }
 0x153   :  { %2807 = vmatpush2.bf16.msra.mxu0 %v4207_v5  ;;  %v4240_v5 = vld [vmem:[#allocation4 + $0x28] ss:$16 sps:$4 sm:$0xff]  }
 0x154   :  { %2808 = vmatprep.subr.bf16.mxu0 %v4212_v9  ;;  %v4243_v9 = vld [vmem:[#allocation4 + $0x8] ss:$16 sps:$4 sm:$0xff]  }
 0x155   :  { %2848 = vmatpush2.bf16.msra.mxu1 %v4303_v24  ;;  %v4258_v24 = vld [vmem:[#allocation4 + $0x168] ss:$16 sps:$4 sm:$0xff]  }
 0x156   :  { %2849 = vmatprep.subr.bf16.mxu1 %v4308_v29  ;;  %v4261_v29 = vld [vmem:[#allocation4 + $0x148] ss:$16 sps:$4 sm:$0xff]  }
 0x157   :  { %2809 = vmatpush2.bf16.msra.mxu0 %v4210_v12  ;;  %v4251_v12 = vld [vmem:[#allocation4 + $0x1cc] ss:$16 sps:$4 sm:$0xff]  }
 0x158   :  { %2810 = vmatprep.subr.bf16.mxu0 %v4215_v14  ;;  %v4254_v14 = vld [vmem:[#allocation4 + $0x1ac] ss:$16 sps:$4 sm:$0xff]  }
 0x159   :  { %2850 = vmatpush2.bf16.msra.mxu1 %v4306_v34 }
 0x15a   :  { %2851 = vmatprep.subr.bf16.mxu1 %v4311_v7 }
 0x15b   :  { %2811 = vmatpush2.bf16.msra.mxu0 %v4213_v19  ;;  %v4257_v19 = vld [vmem:[#allocation4 + $0x18c] ss:$16 sps:$4 sm:$0xff]  }
 0x15c   :  { %2812 = vmatprep.subr.bf16.mxu0 %v4218_v21  ;;  %v4260_v21 = vld [vmem:[#allocation4 + $0x16c] ss:$16 sps:$4 sm:$0xff]  }
 0x15d   :  { %2852 = vmatpush2.bf16.msra.mxu1 %v4309_v35 }
 0x15e   :  { %2853 = vmatprep.subr.bf16.mxu1 %v4314_v43 }
 0x15f   :  { %2813 = vmatpush2.bf16.msra.mxu0 %v4216_v26  ;;  %v4263_v26 = vld [vmem:[#allocation4 + $0x14c] ss:$16 sps:$4 sm:$0xff]  }
 0x160   :  { %2814 = vmatprep.subr.bf16.mxu0 %v4221_v32  ;;  %v4266_v32 = vld [vmem:[#allocation4 + $0x12c] ss:$16 sps:$4 sm:$0xff]  }
 0x161   :  { %2854 = vmatpush2.bf16.msra.mxu1 %v4312_v45 }
 0x162   :  { %2855 = vmatprep.subr.bf16.mxu1 %v4317_v52 }
 0x163   :  { %2815 = vmatpush2.bf16.msra.mxu0 %v4219_v47 }
 0x164   :  { %2866 = vmatprep.subr.bf16.mxu0 %v4224_v51  ;;  %v4269_v51 = vld [vmem:[#allocation4 + $0x10c] ss:$16 sps:$4 sm:$0xff]  }
 0x165   :  { %2856 = vmatpush2.bf16.msra.mxu1 %v4315_v54 }
 0x166   :  { %v1774_v39 = vpop.f32.mrf.mxu0  ;;  %2907 = vmatprep.subr.bf16.mxu1 %v4320_v58 }
 0x167   :  { %v1815_v36 = vpop.f32.mrf.mxu1  ;;  %v1775_v40 = vadd.f32 %v1774_v39, %v1734_v38 }
 0x168   :  { %v1776_v41 = vpop.f32.mrf.mxu0 }
 0x169   :  { %v1817_v42 = vpop.f32.mrf.mxu1  ;;  %v1816_v44 = vadd.f32 %v1815_v36, %v1775_v40  ;;  %v1777_v27 = vadd.f32 %v1776_v41, %v1736_v37  ;;  %v340_v36 = vsub.s32 2, %v4582_v15  ;;  %v344_v37 = vsub.s32 3, %v4582_v15 }
 0x16a   :  { %v1778_v46 = vpop.f32.mrf.mxu0 }
 0x16b   :  { %v1819_v48 = vpop.f32.mrf.mxu1  ;;  %v1818_v30 = vadd.f32 %v1817_v42, %v1777_v27  ;;  %v1986_v49 = vmax.f32 %v1816_v44, 0.0  ;;  %v341_v40 = vrot.slane %v4588_v23, %v340_v36  ;;  %v345_v41 = vrot.slane %v4588_v23, %v344_v37  ;;  %v4318_v23 = vld [vmem:[#allocation4 + $0x2e8] ss:$16 sps:$4 sm:$0xff]  }
 0x16c   :  { %v1779_v50 = vpop.f32.mrf.mxu0 }
 0x16d   :  { %v1820_v28 = vpop.f32.mrf.mxu1  ;;  %v1987_v53 = vmax.f32 %v1818_v30, 0.0  ;;  %v4601_v56 = vpack.c.bf16 %v1986_v49, %v1986_v49 }
 0x16f   :  { %v1991_v31 = vpack.c.bf16 %v1987_v53, %v1987_v53 }
 0x171   :  { %2816 = vmatprep.mubr.bf16.mxu0 %v1991_v31 }
 0x172   :  { %2817 = vmatmul.mubr.bf16.vlgmr.msra.gmra.mxu0 %v4601_v56 }
 0x173   :  { %2867 = vmatpush1.bf16.msra.mxu0 %v4222_v55  ;;  %2898 = vmatprep.mubr.bf16.mxu0 %v1991_v31 }
 0x174   :  { %2868 = vmatprep.subr.bf16.mxu0 %v4227_v57 }
 0x177   :  { %2869 = vmatpush1.bf16.msra.mxu0 %v4225_v59 }
 0x178   :  { %2870 = vmatprep.subr.bf16.mxu0 %v4230_v60  ;;  %v4323_v60 = vld [vmem:[#allocation4 + $0x2cc] ss:$16 sps:$4 sm:$0xff]  }
 0x17b   :  { %2871 = vmatpush1.bf16.msra.mxu0 %v4228_v61  ;;  %v4321_v61 = vld [vmem:[#allocation4 + $0x2c8] ss:$16 sps:$4 sm:$0xff]  }
 0x17c   :  { %2872 = vmatprep.subr.bf16.mxu0 %v4233_v62  ;;  %v4326_v62 = vld [vmem:[#allocation4 + $0x2ac] ss:$16 sps:$4 sm:$0xff]  }
 0x17f   :  { %2873 = vmatpush1.bf16.msra.mxu0 %v4231_v63  ;;  %v4324_v63 = vld [vmem:[#allocation4 + $0x2a8] ss:$16 sps:$4 sm:$0xff]  }
 0x180   :  { %2874 = vmatprep.subr.bf16.mxu0 %v4236_v0  ;;  %v4329_v0 = vld [vmem:[#allocation4 + $0x28c] ss:$16 sps:$4 sm:$0xff]  }
 0x183   :  { %2875 = vmatpush1.bf16.msra.mxu0 %v4234_v1  ;;  %v4366_v1 = vld [vmem:[#allocation6 + $0x78] sm:$0xff]  }
 0x184   :  { %2876 = vmatprep.subr.bf16.mxu0 %v4239_v2  ;;  %v4367_v2 = vld [vmem:[#allocation6 + $0x38] sm:$0xff]  }
 0x187   :  { %2877 = vmatpush1.bf16.msra.mxu0 %v4237_v3  ;;  %v4368_v3 = vld [vmem:[#allocation6 + $0x70] sm:$0xff]  }
 0x188   :  { %2878 = vmatprep.subr.bf16.mxu0 %v4242_v4  ;;  %v4327_v4 = vld [vmem:[#allocation4 + $0x288] ss:$16 sps:$4 sm:$0xff]  }
 0x18b   :  { %2879 = vmatpush1.bf16.msra.mxu0 %v4240_v5  ;;  %v4369_v5 = vld [vmem:[#allocation6 + $0x30] sm:$0xff]  }
 0x18c   :  { %2880 = vmatprep.subr.bf16.mxu0 %v4245_v8  ;;  %v4332_v8 = vld [vmem:[#allocation4 + $0x26c] ss:$16 sps:$4 sm:$0xff]  }
 0x18f   :  { %2881 = vmatpush1.bf16.msra.mxu0 %v4243_v9  ;;  %v4370_v9 = vld [vmem:[#allocation6 + $0x68] sm:$0xff]  }
 0x190   :  { %2882 = vmatprep.subr.bf16.mxu0 %v4248_v10  ;;  %v4330_v10 = vld [vmem:[#allocation4 + $0x268] ss:$16 sps:$4 sm:$0xff]  }
 0x193   :  { %2883 = vmatpush2.bf16.msra.mxu0 %v4246_v11  ;;  %v4371_v11 = vld [vmem:[#allocation6 + $0x28] sm:$0xff]  }
 0x194   :  { %2884 = vmatprep.subr.bf16.mxu0 %v4251_v12  ;;  %v4335_v12 = vld [vmem:[#allocation4 + $0x24c] ss:$16 sps:$4 sm:$0xff]  }
 0x197   :  { %2885 = vmatpush2.bf16.msra.mxu0 %v4249_v13  ;;  %v4372_v13 = vld [vmem:[#allocation6 + $0x60] sm:$0xff]  }
 0x198   :  { %2886 = vmatprep.subr.bf16.mxu0 %v4254_v14  ;;  %v4333_v14 = vld [vmem:[#allocation4 + $0x248] ss:$16 sps:$4 sm:$0xff]  }
 0x19b   :  { %2887 = vmatpush2.bf16.msra.mxu0 %v4252_v18  ;;  %v4373_v18 = vld [vmem:[#allocation6 + $0x20] sm:$0xff]  }
 0x19c   :  { %2888 = vmatprep.subr.bf16.mxu0 %v4257_v19  ;;  %v4338_v19 = vld [vmem:[#allocation4 + $0x22c] ss:$16 sps:$4 sm:$0xff]  }
 0x19f   :  { %2889 = vmatpush2.bf16.msra.mxu0 %v4255_v20  ;;  %v4374_v20 = vld [vmem:[#allocation6 + $0x58] sm:$0xff]  }
 0x1a0   :  { %2890 = vmatprep.subr.bf16.mxu0 %v4260_v21  ;;  %v4336_v21 = vld [vmem:[#allocation4 + $0x228] ss:$16 sps:$4 sm:$0xff]  }
 0x1a3   :  { %2891 = vmatpush2.bf16.msra.mxu0 %v4258_v24  ;;  %v4375_v24 = vld [vmem:[#allocation6 + $0x18] sm:$0xff]  }
 0x1a4   :  { %2892 = vmatprep.subr.bf16.mxu0 %v4263_v26  ;;  %v4341_v26 = vld [vmem:[#allocation4 + $0x20c] ss:$16 sps:$4 sm:$0xff]  }
 0x1a6   :  { %v1856_v33 = vpop.f32.mrf.mxu0 }
 0x1a7   :  { %v1897_v34 = vpop.f32.mrf.mxu1  ;;  %2893 = vmatpush2.bf16.msra.mxu0 %v4261_v29  ;;  %v1857_v42 = vadd.f32 %v1856_v33, %v341_v40  ;;  %v4376_v29 = vld [vmem:[#allocation6 + $0x50] sm:$0xff]   ;;  %v4359_v40 = vld [vmem:[#allocation4 + $0x34c] ss:$16 sps:$4 sm:$0xff]  }
 0x1a8   :  { %v1858_v47 = vpop.f32.mrf.mxu0  ;;  %2894 = vmatprep.subr.bf16.mxu0 %v4266_v32  ;;  %v4339_v32 = vld [vmem:[#allocation4 + $0x208] ss:$16 sps:$4 sm:$0xff]   ;;  %v4377_v33 = vld [vmem:[#allocation6 + $0x10] sm:$0xff]  }
 0x1a9   :  { %v1899_v7 = vpop.f32.mrf.mxu1  ;;  %v1859_v43 = vadd.f32 %v1858_v47, %v345_v41  ;;  %v1898_v44 = vadd.f32 %v1897_v34, %v1857_v42  ;;  %v4344_v34 = vld [vmem:[#allocation4 + $0x3ec] ss:$16 sps:$4 sm:$0xff]   ;;  %v4357_v41 = vld [vmem:[#allocation4 + $0x348] ss:$16 sps:$4 sm:$0xff]  }
 0x1aa   :  { %v1860_v16 = vpop.f32.mrf.mxu0  ;;  %v4347_v47 = vld [vmem:[#allocation4 + $0x3cc] ss:$16 sps:$4 sm:$0xff]  }
 0x1ab   :  { %v1901_v35 = vpop.f32.mrf.mxu1  ;;  %2895 = vmatpush2.bf16.msra.mxu0 %v4264_v6  ;;  %v1900_v46 = vadd.f32 %v1899_v7, %v1859_v43  ;;  %v4342_v6 = vld [vmem:[#allocation4 + $0x3e8] ss:$16 sps:$4 sm:$0xff]   ;;  %v4362_v42 = vld [vmem:[#allocation4 + $0x32c] ss:$16 sps:$4 sm:$0xff]  }
 0x1ac   :  { %v1861_v38 = vpop.f32.mrf.mxu0  ;;  %2896 = vmatprep.subr.bf16.mxu0 %v4269_v51  ;;  %v4345_v7 = vld [vmem:[#allocation4 + $0x3c8] ss:$16 sps:$4 sm:$0xff]   ;;  %v4350_v51 = vld [vmem:[#allocation4 + $0x3ac] ss:$16 sps:$4 sm:$0xff]  }
 0x1ad   :  { %v1902_v39 = vpop.f32.mrf.mxu1  ;;  %v4348_v16 = vld [vmem:[#allocation4 + $0x3a8] ss:$16 sps:$4 sm:$0xff]   ;;  %v4353_v35 = vld [vmem:[#allocation4 + $0x38c] ss:$16 sps:$4 sm:$0xff]  }
 0x1ae   :  { %v4356_v38 = vld [vmem:[#allocation4 + $0x36c] ss:$16 sps:$4 sm:$0xff]   ;;  %v4354_v39 = vld [vmem:[#allocation4 + $0x368] ss:$16 sps:$4 sm:$0xff]  }
 0x1af   :  { %2897 = vmatpush2.bf16.msra.mxu0 %v4267_v17  ;;  %v4351_v17 = vld [vmem:[#allocation4 + $0x388] ss:$16 sps:$4 sm:$0xff]  }
 0x1b0   :  { %3731 = vmatprep.subr.bf16.mxu0 %v4366_v1  ;;  %v4360_v43 = vld [vmem:[#allocation4 + $0x328] ss:$16 sps:$4 sm:$0xff]  }
 0x1b1   :  { %v4395_v1 = vld [vmem:[#allocation6 + $0x88] sm:$0xff]  }
 0x1b2   :  { %2899 = vmatmul.mubr.bf16.vlgmr.msra.gmra.mxu0 %v4601_v56 }
 0x1b3   :  { %3732 = vmatpush3.bf16.msra.mxu0 %v4367_v2 }
 0x1b4   :  { %3733 = vmatprep.subr.bf16.mxu0 %v4368_v3 }
 0x1b7   :  { %3734 = vmatpush3.bf16.msra.mxu0 %v4369_v5  ;;  %v4397_v5 = vld [vmem:[#allocation6 + $0x80] sm:$0xff]  }
 0x1b8   :  { %3735 = vmatprep.subr.bf16.mxu0 %v4370_v9  ;;  %v2122_v9 = vld [vmem:[%s4638_s4] sm:$0xf] }
 0x1bb   :  { %3736 = vmatpush3.bf16.msra.mxu0 %v4371_v11  ;;  %v2131_v11 = vrot.slane %v2122_v9, %v336_v25  ;;  %v2139_v25 = vrot.slane %v2122_v9, %v344_v37  ;;  %v3698_v37 = vld [vmem:[%s4640_s6] ss:$0 sm:$0xff] }
 0x1bc   :  { %3737 = vmatprep.subr.bf16.mxu0 %v4372_v13 }
 0x1bf   :  { %3738 = vmatpush3.bf16.msra.mxu0 %v4373_v18 }
 0x1c0   :  { %3739 = vmatprep.subr.bf16.mxu0 %v4374_v20 }
 0x1c3   :  { %3740 = vmatpush3.bf16.msra.mxu0 %v4375_v24 }
 0x1c4   :  { %3741 = vmatprep.subr.bf16.mxu0 %v4376_v29 }
 0x1c7   :  { %3742 = vmatpush3.bf16.msra.mxu0 %v4377_v33 }
 0x1e6   :  { %v1938_v27 = vpop.f32.mrf.mxu0 }
 0x1e7   :  { %v1979_v45 = vpop.f32.mrf.mxu1  ;;  %v1939_v48 = vadd.f32 %v1938_v27, %v1898_v44  ;;  %v4365_v44 = vld [vmem:[#allocation4 + $0x30c] ss:$16 sps:$4 sm:$0xff]   ;;  %v4363_v27 = vld [vmem:[#allocation4 + $0x308] ss:$16 sps:$4 sm:$0xff]  }
 0x1e8   :  { %v1940_v30 = vpop.f32.mrf.mxu0 }
 0x1e9   :  { %v1981_v49 = vpop.f32.mrf.mxu1  ;;  %v1980_v50 = vadd.f32 %v1979_v45, %v1939_v48  ;;  %v1941_v28 = vadd.f32 %v1940_v30, %v1900_v46  ;;  %v4378_v46 = vld [vmem:[#allocation6 + $0x48] sm:$0xff]  }
 0x1ea   :  { %v1942_v52 = vpop.f32.mrf.mxu0  ;;  %v4379_v30 = vld [vmem:[#allocation6 + $0x8] sm:$0xff]   ;;  %3743 = vmatprep.subr.bf16.mxu0 %v4378_v46 }
 0x1eb   :  { %v1983_v53 = vpop.f32.mrf.mxu1  ;;  %v1982_v54 = vadd.f32 %v1981_v49, %v1941_v28  ;;  %v1988_v31 = vmax.f32 %v1980_v50, 0.0  ;;  %3744 = vmatpush3.bf16.msra.mxu0 %v4379_v30  ;;  %v4380_v50 = vld [vmem:[#allocation6 + $0x40] sm:$0xff]  }
 0x1ec   :  { %v1943_v55 = vpop.f32.mrf.mxu0  ;;  %v4381_v52 = vld [vmem:[#allocation6] sm:$0xff]   ;;  %3745 = vmatprep.subr.bf16.mxu0 %v4380_v50  ;;  %v4382_v53 = vld [vmem:[#allocation6 + $0xf8] sm:$0xff]  }
 0x1ed   :  { %v1984_v56 = vpop.f32.mrf.mxu1  ;;  %v1989_v57 = vmax.f32 %v1982_v54, 0.0  ;;  %v4613_v59 = vpack.c.bf16 %v1988_v31, %v1988_v31  ;;  %v4383_v54 = vld [vmem:[#allocation6 + $0xb8] sm:$0xff]   ;;  %v4384_v31 = vld [vmem:[#allocation6 + $0xf0] sm:$0xff]  }
 0x1ee   :  { %v4385_v55 = vld [vmem:[#allocation6 + $0xb0] sm:$0xff]   ;;  %v4386_v56 = vld [vmem:[#allocation6 + $0xe8] sm:$0xff]  }
 0x1ef   :  { %v1993_v58 = vpack.c.bf16 %v1989_v57, %v1989_v57  ;;  %3746 = vmatpush3.bf16.msra.mxu0 %v4381_v52  ;;  %v4387_v57 = vld [vmem:[#allocation6 + $0xa8] sm:$0xff]  }
 0x1f1   :  { %2857 = vmatprep.mubr.bf16.mxu1 %v1993_v58 }
 0x1f2   :  { %2858 = vmatmul.mubr.bf16.vlgmr.msra.gmra.mxu1 %v4613_v59 }
 0x1f3   :  { %2908 = vmatpush1.bf16.msra.mxu1 %v4318_v23  ;;  %2939 = vmatprep.mubr.bf16.mxu1 %v1993_v58  ;;  %v4388_v58 = vld [vmem:[#allocation6 + $0xe0] sm:$0xff]  }
 0x1f4   :  { %2909 = vmatprep.subr.bf16.mxu1 %v4323_v60  ;;  %v4389_v23 = vld [vmem:[#allocation6 + $0xa0] sm:$0xff]   ;;  %v4391_v60 = vld [vmem:[#allocation6 + $0x98] sm:$0xff]  }
 0x1f7   :  { %2910 = vmatpush1.bf16.msra.mxu1 %v4321_v61  ;;  %v4392_v61 = vld [vmem:[#allocation6 + $0xd0] sm:$0xff]  }
 0x1f8   :  { %2911 = vmatprep.subr.bf16.mxu1 %v4326_v62  ;;  %v4393_v62 = vld [vmem:[#allocation6 + $0x90] sm:$0xff]  }
 0x1fb   :  { %2912 = vmatpush1.bf16.msra.mxu1 %v4324_v63 }
 0x1fc   :  { %2913 = vmatprep.subr.bf16.mxu1 %v4329_v0  ;;  %v4394_v0 = vld [vmem:[#allocation6 + $0xc8] sm:$0xff]  }
 0x1ff   :  { %2914 = vmatpush1.bf16.msra.mxu1 %v4327_v4  ;;  %v4396_v4 = vld [vmem:[#allocation6 + $0xc0] sm:$0xff]  }
 0x200   :  { %2915 = vmatprep.subr.bf16.mxu1 %v4332_v8 }
 0x203   :  { %2916 = vmatpush1.bf16.msra.mxu1 %v4330_v10  ;;  %v2127_v10 = vrot.slane %v2122_v9, %v332_v22  ;;  %v2135_v22 = vrot.slane %v2122_v9, %v340_v36 }
 0x204   :  { %2917 = vmatprep.subr.bf16.mxu1 %v4335_v12 }
 0x207   :  { %2918 = vmatpush1.bf16.msra.mxu1 %v4333_v14 }
 0x208   :  { %2919 = vmatprep.subr.bf16.mxu1 %v4338_v19 }
 0x20b   :  { %2920 = vmatpush1.bf16.msra.mxu1 %v4336_v21 }
 0x20c   :  { %2921 = vmatprep.subr.bf16.mxu1 %v4341_v26 }
 0x20f   :  { %2922 = vmatpush1.bf16.msra.mxu1 %v4339_v32 }
 0x210   :  { %2923 = vmatprep.subr.bf16.mxu1 %v4344_v34 }
 0x213   :  { %2924 = vmatpush2.bf16.msra.mxu1 %v4342_v6 }
 0x214   :  { %2925 = vmatprep.subr.bf16.mxu1 %v4347_v47 }
 0x217   :  { %2926 = vmatpush2.bf16.msra.mxu1 %v4345_v7 }
 0x218   :  { %2927 = vmatprep.subr.bf16.mxu1 %v4350_v51 }
 0x21b   :  { %2928 = vmatpush2.bf16.msra.mxu1 %v4348_v16 }
 0x21c   :  { %2929 = vmatprep.subr.bf16.mxu1 %v4353_v35 }
 0x21f   :  { %2930 = vmatpush2.bf16.msra.mxu1 %v4351_v17 }
 0x220   :  { %2931 = vmatprep.subr.bf16.mxu1 %v4356_v38 }
 0x223   :  { %2932 = vmatpush2.bf16.msra.mxu1 %v4354_v39 }
 0x224   :  { %2933 = vmatprep.subr.bf16.mxu1 %v4359_v40 }
 0x227   :  { %2934 = vmatpush2.bf16.msra.mxu1 %v4357_v41 }
 0x228   :  { %2935 = vmatprep.subr.bf16.mxu1 %v4362_v42 }
 0x22b   :  { %2936 = vmatpush2.bf16.msra.mxu1 %v4360_v43 }
 0x22c   :  { %2937 = vmatprep.subr.bf16.mxu1 %v4365_v44 }
 0x22f   :  { %2938 = vmatpush2.bf16.msra.mxu1 %v4363_v27 }
 0x230   :  { %3753 = vmatprep.subr.bf16.mxu1 %v4382_v53 }
 0x232   :  { %2940 = vmatmul.mubr.bf16.vlgmr.msra.gmra.mxu1 %v4613_v59  ;;  %v2818_v45 = vpop.f32.mrf.mxu0  ;;  %v4390_v59 = vld [vmem:[#allocation6 + $0xd8] sm:$0xff]  }
 0x233   :  { %3754 = vmatpush3.bf16.msra.mxu1 %v4383_v54  ;;  %v2819_v12 = vadd.f32 %v2818_v45, %v2127_v10 }
 0x234   :  { %v2820_v48 = vpop.f32.mrf.mxu0  ;;  %3755 = vmatprep.subr.bf16.mxu1 %v4384_v31 }
 0x235   :  { %v2821_v14 = vadd.f32 %v2820_v48, %v2131_v11 }
 0x236   :  { %v2822_v49 = vpop.f32.mrf.mxu0 }
 0x237   :  { %3756 = vmatpush3.bf16.msra.mxu1 %v4385_v55 }
 0x238   :  { %v2823_v28 = vpop.f32.mrf.mxu0  ;;  %3757 = vmatprep.subr.bf16.mxu1 %v4386_v56 }
 0x23b   :  { %3758 = vmatpush3.bf16.msra.mxu1 %v4387_v57 }
 0x23c   :  { %3759 = vmatprep.subr.bf16.mxu1 %v4388_v58 }
 0x23f   :  { %3760 = vmatpush3.bf16.msra.mxu1 %v4389_v23 }
 0x240   :  { %3761 = vmatprep.subr.bf16.mxu1 %v4390_v59 }
 0x243   :  { %3762 = vmatpush3.bf16.msra.mxu1 %v4391_v60 }
 0x244   :  { %3763 = vmatprep.subr.bf16.mxu1 %v4392_v61 }
 0x247   :  { %3764 = vmatpush3.bf16.msra.mxu1 %v4393_v62 }
 0x248   :  { %3765 = vmatprep.subr.bf16.mxu1 %v4394_v0 }
 0x24b   :  { %3766 = vmatpush3.bf16.msra.mxu1 %v4395_v1 }
 0x24c   :  { %3767 = vmatprep.subr.bf16.mxu1 %v4396_v4 }
 0x24f   :  { %3768 = vmatpush3.bf16.msra.mxu1 %v4397_v5 }
 0x272   :  { %v2900_v63 = vpop.f32.mrf.mxu0 }
 0x273   :  { %v2901_v34 = vadd.f32 %v2900_v63, %v2135_v22 }
 0x274   :  { %v2902_v2 = vpop.f32.mrf.mxu0 }
 0x275   :  { %v2903_v47 = vadd.f32 %v2902_v2, %v2139_v25 }
 0x276   :  { %v2904_v3 = vpop.f32.mrf.mxu0 }
 0x278   :  { %v2905_v8 = vpop.f32.mrf.mxu0 }
 0x2b2   :  { %v2859_v13 = vpop.f32.mrf.mxu1 }
 0x2b3   :  { %v2860_v18 = vadd.f32 %v2859_v13, %v2819_v12 }
 0x2b4   :  { %v2861_v19 = vpop.f32.mrf.mxu1 }
 0x2b5   :  { %v2862_v20 = vadd.f32 %v2861_v19, %v2821_v14  ;;  %v2948_v21 = vmax.f32 %v2860_v18, 0.0 }
 0x2b6   :  { %v2863_v24 = vpop.f32.mrf.mxu1 }
 0x2b7   :  { %v2949_v26 = vmax.f32 %v2862_v20, 0.0  ;;  %v2952_v33 = vpack.c.bf16 %v2948_v21, %v2948_v21 }
 0x2b8   :  { %v2864_v29 = vpop.f32.mrf.mxu1 }
 0x2b9   :  { %v2953_v32 = vpack.c.bf16 %v2949_v26, %v2949_v26 }
 0x2bb   :  { %3251 = vmatprep.mubr.bf16.mxu0 %v2953_v32 }
 0x2bc   :  { %3252 = vmatmul.mubr.bf16.vlgmr.msra.gmra.mxu0 %v2952_v33 }
 0x2f2   :  { %v2941_v6 = vpop.f32.mrf.mxu1 }
 0x2f3   :  { %v2942_v7 = vadd.f32 %v2941_v6, %v2901_v34 }
 0x2f4   :  { %v2943_v51 = vpop.f32.mrf.mxu1 }
 0x2f5   :  { %v2944_v16 = vadd.f32 %v2943_v51, %v2903_v47  ;;  %v2950_v35 = vmax.f32 %v2942_v7, 0.0 }
 0x2f6   :  { %v2945_v17 = vpop.f32.mrf.mxu1 }
 0x2f7   :  { %v2951_v38 = vmax.f32 %v2944_v16, 0.0  ;;  %v2954_v41 = vpack.c.bf16 %v2950_v35, %v2950_v35 }
 0x2f8   :  { %v2946_v39 = vpop.f32.mrf.mxu1 }
 0x2f9   :  { %v2955_v40 = vpack.c.bf16 %v2951_v38, %v2951_v38 }
 0x2fb   :  { %3291 = vmatprep.mubr.bf16.mxu1 %v2955_v40 }
 0x2fc   :  { %3292 = vmatmul.mubr.bf16.vlgmr.msra.gmra.mxu1 %v2954_v41 }
 0x37c   :  { %v3747_v42 = vpop.f32.mrf.mxu0 }
 0x37e   :  { %v3748_v43 = vpop.f32.mrf.mxu0 }
 0x37f   :  { %v3749_v15 = vadd.f32 %v3748_v43, %v3747_v42 }
 0x380   :  { %v3750_v36 = vpop.f32.mrf.mxu0 }
 0x381   :  { %v3254_v46 = vadd.f32 %v3749_v15, %v3698_v37 }
 0x382   :  { %v3751_v44 = vpop.f32.mrf.mxu0 }
 0x3bc   :  { %v3769_v27 = vpop.f32.mrf.mxu1 }
 0x3be   :  { %v3770_v45 = vpop.f32.mrf.mxu1 }
 0x3bf   :  { %v3771_v48 = vadd.f32 %v3770_v45, %v3769_v27 }
 0x3c0   :  { %v3772_v30 = vpop.f32.mrf.mxu1 }
 0x3c1   :  { %v3294_v49 = vadd.f32 %v3771_v48, %v3254_v46 }
 0x3c2   :  { %v3773_v50 = vpop.f32.mrf.mxu1 }
 0x3c3   :  { %3299 = vst [vmem:[%s4641_s7] sm:$0xff] %v3294_v49 }
 0x3c4   :  { %3304 = vsyncpa [#allocation3], 1 }
 0x3c5   :  { %3305 = vsyncpa [#allocation5], 1 }

</bundles_post_ra>
